<compile_context>
chip_gen: v7x
topology: tpu7x:2x2x1
jax: 0.10.0
libtpu: 0.0.40
codegen_flags: <defaults>
</compile_context>

<pallas_src>
import functools

import jax
import jax.numpy as jnp
from jax.experimental import pallas as pl
from jax.experimental.pallas import tpu as pltpu


def _round_up(x, m):
    return ((x + m - 1) // m) * m


def _cconv_kernel(x_ref, w_ref, b_ref, o_ref, pt_ref, *,
                  C2, KH, KW, DIL, SH, TOH, NBH, OW, KTOT, KP):
    # x_ref  : (C2, Hp, Wp)   bf16  -- one padded NCHW image
    # w_ref  : (OC2, KP)      bf16  -- fused complex weight (VMEM resident)
    # b_ref  : (OC2, 1)       f32   -- fused bias          (VMEM resident)
    # o_ref  : (OC2, TOH, OW)       -- NCHW output strip for this grid step
    # pt_ref : (KP, OW)       bf16  -- persistent patchesT scratch
    Wp = x_ref.shape[-1]
    OC2 = w_ref.shape[0]

    # Re-zero only the K-padding rows of the scratch.  This is a few KiB per
    # step and is safe even when each TensorCore of a multi-core chip owns its
    # own scratch instance (a one-shot pl.when(first step) would not be).
    if KP > KTOT:
        pt_ref[KTOT:, :] = jnp.zeros((KP - KTOT, OW), jnp.bfloat16)

    # Hoist resident loads / broadcasts out of the row loop.
    wmat = w_ref[...]
    bias = jnp.broadcast_to(b_ref[...], (OC2, OW))

    # Base output row of this OH strip.  NBH == 1 keeps every index static.
    h_base = 0 if NBH == 1 else pl.program_id(1) * (TOH * SH)

    # TODO(synk): for very tall strips (large TOH) switch this static unroll to
    # lax.fori_loop(..., unroll=True) to bound code size / live ranges.
    for t in range(TOH):
        # ---- sublane-granular im2col: tap (kh,kw) -> scratch rows tap*C2 ----
        for kh in range(KH):
            r = t * SH + kh * DIL
            if NBH == 1:
                xrow = x_ref[:, h_base + r, :]                        # (C2, Wp)
            else:
                xrow = x_ref[:, pl.ds(h_base + r, 1), :].reshape(C2, Wp)
            for kw in range(KW):
                tap = kh * KW + kw
                pt_ref[tap * C2:(tap + 1) * C2, :] = \
                    xrow[:, kw * DIL:kw * DIL + OW]
        # ---- one MXU pass per output row: (OC2,KP) @ (KP,OW), f32 accum -----
        acc = jnp.dot(wmat, pt_ref[...], preferred_element_type=jnp.float32)
        o_ref[:, t, :] = (acc + bias).astype(o_ref.dtype)


def complex_conv2d_pallas(x, real_w, real_b, imag_w, imag_b,
                          kernel_size, stride, padding, dilation=1,
                          groups=1, causal=True, complex_axis=1,
                          out_dtype=jnp.float32):
    """ComplexConv2d forward (NCHW in, NCHW out).

    x       : (N, 2*Cin, H, W) float32   -- first Cin channels = real part
    real_w  : (OC, Cin, KH, KW) float32   (real_conv weight, OIHW)
    imag_w  : (OC, Cin, KH, KW) float32   (imag_conv weight, OIHW)
    real_b, imag_b : (OC,) float32
    returns : (N, 2*OC, OH, OW) out_dtype, channels = [real | imag].
              (Pass out_dtype=jnp.bfloat16 to halve output writeback if the
               downstream layer tolerates it.)
    """
    if groups != 1:
        # TODO(synk): grouped complex conv not implemented.
        raise NotImplementedError("groups != 1 not supported")
    if complex_axis != 1:
        # TODO(synk): complex_axis == 0 branch (chunking conv outputs) not implemented.
        raise NotImplementedError("only complex_axis == 1 is supported")

    KH, KW = kernel_size
    SH, SW = stride
    P0, P1 = padding
    DIL = int(dilation)
    if SW != 1:
        # TODO(synk): SW > 1 needs a wrapper-side (Wp//SW, SW) lane-decimation
        # split of the time axis; DCCRN/mpANC always uses time stride 1.
        raise NotImplementedError("time-axis stride (stride[1]) must be 1")

    N, C2, H, W = x.shape
    assert C2 % 2 == 0, "channel dim must hold [real | imag] halves"
    CIN = C2 // 2
    OC = real_w.shape[0]
    OC2 = 2 * OC
    assert real_w.shape == (OC, CIN, KH, KW) and imag_w.shape == (OC, CIN, KH, KW)

    # ---- module-style spatial padding (input stays NCHW -> no transpose pass)
    wpad = (P1, 0) if (P1 != 0 and causal) else (P1, P1)
    Hp = H + 2 * P0
    Wp = W + wpad[0] + wpad[1]
    OH = (Hp - DIL * (KH - 1) - 1) // SH + 1
    OW = Wp - DIL * (KW - 1)                      # SW == 1
    assert OH >= 1 and OW >= 1

    xp = jnp.pad(x, ((0, 0), (0, 0), (P0, P0), wpad)).astype(jnp.bfloat16)

    # ---- fold the four partial convs into one (2*OC, K) weight matrix -------
    #   rows [0:OC)   (real outputs):  [ Wr | -Wi ]
    #   rows [OC:2OC) (imag outputs):  [ Wi |  Wr ]
    # contraction-column order is ((kh*KW + kw) * C2 + c) -- the exact order in
    # which the kernel writes taps into the patch scratch.
    w_top = jnp.concatenate([real_w, -imag_w], axis=1)        # (OC, C2, KH, KW)
    w_bot = jnp.concatenate([imag_w, real_w], axis=1)
    w_f = jnp.concatenate([w_top, w_bot], axis=0)             # (OC2, C2, KH, KW)
    KTOT = KH * KW * C2
    KP = _round_up(KTOT, 128)                                  # MXU-friendly K
    wT = jnp.transpose(w_f, (0, 2, 3, 1)).reshape(OC2, KTOT)
    wT = jnp.pad(wT, ((0, 0), (0, KP - KTOT))).astype(jnp.bfloat16)
    b2 = jnp.concatenate([real_b - imag_b, real_b + imag_b])
    b2 = b2.reshape(OC2, 1).astype(jnp.float32)

    # ---- grid: (batch, OH strips); both axes "parallel" ----------------------
    # TOH must divide OH and be a multiple of 8 (or be OH itself) so the NCHW
    # output block obeys the (8,128) rule; keep enough rows per step to
    # amortize the per-step overhead.
    if OH % 8 != 0 or OH * OW * OC2 <= 64 * 1024:
        TOH = OH
    else:
        TOH = 8
        while TOH * 2 <= OH and OH % (TOH * 2) == 0 and TOH * OW < 512:
            TOH *= 2
    NBH = OH // TOH
    assert TOH * NBH == OH

    kernel = functools.partial(
        _cconv_kernel, C2=C2, KH=KH, KW=KW, DIL=DIL, SH=SH,
        TOH=TOH, NBH=NBH, OW=OW, KTOT=KTOT, KP=KP)

    flops = 2 * N * OH * OW * KTOT * OC2
    bytes_accessed = (xp.size * 2 + wT.size * 2 + b2.size * 4
                      + N * OC2 * OH * OW * jnp.dtype(out_dtype).itemsize)

    out = pl.pallas_call(
        kernel,
        out_shape=jax.ShapeDtypeStruct((N, OC2, OH, OW), out_dtype),
        grid=(N, NBH),
        in_specs=[
            # TODO(synk): when NBH > 1 this re-DMAs the full freq axis for each
            # strip; switch to a manual halo DMA (pl.ANY + make_async_copy) if
            # OH-striping ever dominates input read traffic.
            pl.BlockSpec((None, C2, Hp, Wp), lambda n, hb: (n, 0, 0, 0)),
            pl.BlockSpec((OC2, KP), lambda n, hb: (0, 0)),     # resident weights
            pl.BlockSpec((OC2, 1), lambda n, hb: (0, 0)),      # resident bias
        ],
        out_specs=pl.BlockSpec((None, OC2, TOH, OW),
                               lambda n, hb: (n, 0, hb, 0)),
        scratch_shapes=[pltpu.VMEM((KP, OW), jnp.bfloat16)],   # patchesT scratch
        compiler_params=pltpu.CompilerParams(
            dimension_semantics=("parallel", "parallel"),
            vmem_limit_bytes=32 * 1024 * 1024),
        cost_estimate=pl.CostEstimate(
            flops=flops, transcendentals=0, bytes_accessed=bytes_accessed),
    )(xp, wT, b2)
    return out


if __name__ == "__main__":
    # Typical mpANC/DCCRN encoder config (per-complex-half channel counts).
    in_channels = 4          # per half -> input has 8 channels
    out_channels = 8         # per half -> output has 16 channels
    kernel_size = (5, 2)
    stride = (2, 1)
    padding = (2, 1)
    causal = True
    N, H, W = 2, 16, 16

    key = jax.random.PRNGKey(0)
    kx, kwr, kwi, kbr, kbi = jax.random.split(key, 5)

    x = jax.random.normal(kx, (N, 2 * in_channels, H, W), dtype=jnp.float32)
    real_w = 0.05 * jax.random.normal(
        kwr, (out_channels, in_channels, *kernel_size), dtype=jnp.float32)
    imag_w = 0.05 * jax.random.normal(
        kwi, (out_channels, in_channels, *kernel_size), dtype=jnp.float32)
    # (Module default init zeroes the biases; small nonzero values here so the
    #  bias path of the kernel is actually exercised by the check.)
    real_b = 0.05 * jax.random.normal(kbr, (out_channels,), dtype=jnp.float32)
    imag_b = 0.05 * jax.random.normal(kbi, (out_channels,), dtype=jnp.float32)

    y = complex_conv2d_pallas(x, real_w, real_b, imag_w, imag_b,
                              kernel_size, stride, padding,
                              dilation=1, causal=causal)
    y = jax.block_until_ready(y)

    # ---- f32 XLA reference mirroring the PyTorch forward --------------------
    xq = jnp.pad(x, ((0, 0), (0, 0), (0, 0), (padding[1], 0)))   # causal W pad
    real_in, imag_in = jnp.split(xq, 2, axis=1)

    def conv(inp, w, b):
        o = jax.lax.conv_general_dilated(
            inp, w, window_strides=stride,
            padding=[(padding[0], padding[0]), (0, 0)],
            dimension_numbers=("NCHW", "OIHW", "NCHW"))
        return o + b.reshape(1, -1, 1, 1)

    r2r = conv(real_in, real_w, real_b)
    i2i = conv(imag_in, imag_w, imag_b)
    r2i = conv(real_in, imag_w, imag_b)
    i2r = conv(imag_in, real_w, real_b)
    ref = jnp.concatenate([r2r - i2i, r2i + i2r], axis=1)

    assert y.shape == ref.shape, (y.shape, ref.shape)
    # bf16 operands / f32 accumulation -> widened tolerance vs the f32 reference.
    err = float(jnp.max(jnp.abs(y - ref)))
    assert jnp.allclose(y, ref, atol=2e-2, rtol=2e-2), err

    print("KERNEL_OK")
</pallas_src>

<mosaic_0001>
module attributes {stable_mosaic.version = 11 : i64} {
  func.func @_cconv_kernel(%arg0: i32, %arg1: i32, %arg2: memref<1x8x20x17xbf16, #tpu.memory_space<vmem>>, %arg3: memref<16x128xbf16, #tpu.memory_space<vmem>>, %arg4: memref<16x1xf32, #tpu.memory_space<vmem>>, %arg5: memref<1x16x8x16xf32, #tpu.memory_space<vmem>>, %arg6: memref<128x16xbf16, #tpu.memory_space<vmem>>) attributes {dimension_semantics = [#tpu.dimension_semantics<parallel>, #tpu.dimension_semantics<parallel>], iteration_bounds = array<i64: 2, 1>, scalar_prefetch = 0 : i64, scratch_operands = 1 : i64, tpu.core_type = #tpu.core_type<tc>, window_params = [{transform_indices = @transform_0, window_bounds = array<i64: 1, 8, 20, 17>}, {pipeline_mode = #tpu.pipeline_mode<synchronous>, transform_indices = @transform_1, window_bounds = array<i64: 16, 128>}, {pipeline_mode = #tpu.pipeline_mode<synchronous>, transform_indices = @transform_2, window_bounds = array<i64: 16, 1>}, {transform_indices = @transform_3, window_bounds = array<i64: 1, 16, 8, 16>}]} {
    %cst = arith.constant 0.000000e+00 : bf16
    %0 = vector.broadcast %cst : bf16 to vector<48x16xbf16>
    %c80 = arith.constant 80 : index
    %c0 = arith.constant 0 : index
    %1 = vector.load %arg6[%c80, %c0] : memref<128x16xbf16, #tpu.memory_space<vmem>>, vector<48x16xbf16>
    tpu.vector_store %arg6[%c80, %c0], %0 {strides = array<i32>} : memref<128x16xbf16, #tpu.memory_space<vmem>>, vector<48x16xbf16>,
    %c0_0 = arith.constant 0 : index
    %c0_1 = arith.constant 0 : index
    %2 = vector.load %arg3[%c0_0, %c0_1] : memref<16x128xbf16, #tpu.memory_space<vmem>>, vector<16x128xbf16>
    %c0_2 = arith.constant 0 : index
    %c0_3 = arith.constant 0 : index
    %3 = vector.load %arg4[%c0_2, %c0_3] : memref<16x1xf32, #tpu.memory_space<vmem>>, vector<16x1xf32>
    %4 = vector.shape_cast %3 : vector<16x1xf32> to vector<16x1xf32>
    %5 = vector.broadcast %4 : vector<16x1xf32> to vector<16x16xf32>
    %c0_4 = arith.constant 0 : index
    %c0_5 = arith.constant 0 : index
    %c0_6 = arith.constant 0 : index
    %c0_7 = arith.constant 0 : index
    %6 = vector.load %arg2[%c0_4, %c0_5, %c0_6, %c0_7] : memref<1x8x20x17xbf16, #tpu.memory_space<vmem>>, vector<1x8x1x17xbf16>
    %7 = vector.shape_cast %6 : vector<1x8x1x17xbf16> to vector<8x17xbf16>
    %8 = vector.extract_strided_slice %7 {offsets = [0, 0], sizes = [8, 16], strides = [1, 1]} : vector<8x17xbf16> to vector<8x16xbf16>
    %c0_8 = arith.constant 0 : index
    %c0_9 = arith.constant 0 : index
    %9 = vector.load %arg6[%c0_8, %c0_9] : memref<128x16xbf16, #tpu.memory_space<vmem>>, vector<8x16xbf16>
    tpu.vector_store %arg6[%c0_8, %c0_9], %8 {strides = array<i32>} : memref<128x16xbf16, #tpu.memory_space<vmem>>, vector<8x16xbf16>,
    %10 = vector.extract_strided_slice %7 {offsets = [0, 1], sizes = [8, 16], strides = [1, 1]} : vector<8x17xbf16> to vector<8x16xbf16>
    %c8 = arith.constant 8 : index
    %c0_10 = arith.constant 0 : index
    %11 = vector.load %arg6[%c8, %c0_10] : memref<128x16xbf16, #tpu.memory_space<vmem>>, vector<8x16xbf16>
    tpu.vector_store %arg6[%c8, %c0_10], %10 {strides = array<i32>} : memref<128x16xbf16, #tpu.memory_space<vmem>>, vector<8x16xbf16>,
    %c0_11 = arith.constant 0 : index
    %c0_12 = arith.constant 0 : index
    %c1 = arith.constant 1 : index
    %c0_13 = arith.constant 0 : index
    %12 = vector.load %arg2[%c0_11, %c0_12, %c1, %c0_13] : memref<1x8x20x17xbf16, #tpu.memory_space<vmem>>, vector<1x8x1x17xbf16>
    %13 = vector.shape_cast %12 : vector<1x8x1x17xbf16> to vector<8x17xbf16>
    %14 = vector.extract_strided_slice %13 {offsets = [0, 0], sizes = [8, 16], strides = [1, 1]} : vector<8x17xbf16> to vector<8x16xbf16>
    %c16 = arith.constant 16 : index
    %c0_14 = arith.constant 0 : index
    %15 = vector.load %arg6[%c16, %c0_14] : memref<128x16xbf16, #tpu.memory_space<vmem>>, vector<8x16xbf16>
    tpu.vector_store %arg6[%c16, %c0_14], %14 {strides = array<i32>} : memref<128x16xbf16, #tpu.memory_space<vmem>>, vector<8x16xbf16>,
    %16 = vector.extract_strided_slice %13 {offsets = [0, 1], sizes = [8, 16], strides = [1, 1]} : vector<8x17xbf16> to vector<8x16xbf16>
    %c24 = arith.constant 24 : index
    %c0_15 = arith.constant 0 : index
    %17 = vector.load %arg6[%c24, %c0_15] : memref<128x16xbf16, #tpu.memory_space<vmem>>, vector<8x16xbf16>
    tpu.vector_store %arg6[%c24, %c0_15], %16 {strides = array<i32>} : memref<128x16xbf16, #tpu.memory_space<vmem>>, vector<8x16xbf16>,
    %c0_16 = arith.constant 0 : index
    %c0_17 = arith.constant 0 : index
    %c2 = arith.constant 2 : index
    %c0_18 = arith.constant 0 : index
    %18 = vector.load %arg2[%c0_16, %c0_17, %c2, %c0_18] : memref<1x8x20x17xbf16, #tpu.memory_space<vmem>>, vector<1x8x1x17xbf16>
    %19 = vector.shape_cast %18 : vector<1x8x1x17xbf16> to vector<8x17xbf16>
    %20 = vector.extract_strided_slice %19 {offsets = [0, 0], sizes = [8, 16], strides = [1, 1]} : vector<8x17xbf16> to vector<8x16xbf16>
    %c32 = arith.constant 32 : index
    %c0_19 = arith.constant 0 : index
    %21 = vector.load %arg6[%c32, %c0_19] : memref<128x16xbf16, #tpu.memory_space<vmem>>, vector<8x16xbf16>
    tpu.vector_store %arg6[%c32, %c0_19], %20 {strides = array<i32>} : memref<128x16xbf16, #tpu.memory_space<vmem>>, vector<8x16xbf16>,
    %22 = vector.extract_strided_slice %19 {offsets = [0, 1], sizes = [8, 16], strides = [1, 1]} : vector<8x17xbf16> to vector<8x16xbf16>
    %c40 = arith.constant 40 : index
    %c0_20 = arith.constant 0 : index
    %23 = vector.load %arg6[%c40, %c0_20] : memref<128x16xbf16, #tpu.memory_space<vmem>>, vector<8x16xbf16>
    tpu.vector_store %arg6[%c40, %c0_20], %22 {strides = array<i32>} : memref<128x16xbf16, #tpu.memory_space<vmem>>, vector<8x16xbf16>,
    %c0_21 = arith.constant 0 : index
    %c0_22 = arith.constant 0 : index
    %c3 = arith.constant 3 : index
    %c0_23 = arith.constant 0 : index
    %24 = vector.load %arg2[%c0_21, %c0_22, %c3, %c0_23] : memref<1x8x20x17xbf16, #tpu.memory_space<vmem>>, vector<1x8x1x17xbf16>
    %25 = vector.shape_cast %24 : vector<1x8x1x17xbf16> to vector<8x17xbf16>
    %26 = vector.extract_strided_slice %25 {offsets = [0, 0], sizes = [8, 16], strides = [1, 1]} : vector<8x17xbf16> to vector<8x16xbf16>
    %c48 = arith.constant 48 : index
    %c0_24 = arith.constant 0 : index
    %27 = vector.load %arg6[%c48, %c0_24] : memref<128x16xbf16, #tpu.memory_space<vmem>>, vector<8x16xbf16>
    tpu.vector_store %arg6[%c48, %c0_24], %26 {strides = array<i32>} : memref<128x16xbf16, #tpu.memory_space<vmem>>, vector<8x16xbf16>,
    %28 = vector.extract_strided_slice %25 {offsets = [0, 1], sizes = [8, 16], strides = [1, 1]} : vector<8x17xbf16> to vector<8x16xbf16>
    %c56 = arith.constant 56 : index
    %c0_25 = arith.constant 0 : index
    %29 = vector.load %arg6[%c56, %c0_25] : memref<128x16xbf16, #tpu.memory_space<vmem>>, vector<8x16xbf16>
    tpu.vector_store %arg6[%c56, %c0_25], %28 {strides = array<i32>} : memref<128x16xbf16, #tpu.memory_space<vmem>>, vector<8x16xbf16>,
    %c0_26 = arith.constant 0 : index
    %c0_27 = arith.constant 0 : index
    %c4 = arith.constant 4 : index
    %c0_28 = arith.constant 0 : index
    %30 = vector.load %arg2[%c0_26, %c0_27, %c4, %c0_28] : memref<1x8x20x17xbf16, #tpu.memory_space<vmem>>, vector<1x8x1x17xbf16>
    %31 = vector.shape_cast %30 : vector<1x8x1x17xbf16> to vector<8x17xbf16>
    %32 = vector.extract_strided_slice %31 {offsets = [0, 0], sizes = [8, 16], strides = [1, 1]} : vector<8x17xbf16> to vector<8x16xbf16>
    %c64 = arith.constant 64 : index
    %c0_29 = arith.constant 0 : index
    %33 = vector.load %arg6[%c64, %c0_29] : memref<128x16xbf16, #tpu.memory_space<vmem>>, vector<8x16xbf16>
    tpu.vector_store %arg6[%c64, %c0_29], %32 {strides = array<i32>} : memref<128x16xbf16, #tpu.memory_space<vmem>>, vector<8x16xbf16>,
    %34 = vector.extract_strided_slice %31 {offsets = [0, 1], sizes = [8, 16], strides = [1, 1]} : vector<8x17xbf16> to vector<8x16xbf16>
    %c72 = arith.constant 72 : index
    %c0_30 = arith.constant 0 : index
    %35 = vector.load %arg6[%c72, %c0_30] : memref<128x16xbf16, #tpu.memory_space<vmem>>, vector<8x16xbf16>
    tpu.vector_store %arg6[%c72, %c0_30], %34 {strides = array<i32>} : memref<128x16xbf16, #tpu.memory_space<vmem>>, vector<8x16xbf16>,
    %c0_31 = arith.constant 0 : index
    %c0_32 = arith.constant 0 : index
    %36 = vector.load %arg6[%c0_31, %c0_32] : memref<128x16xbf16, #tpu.memory_space<vmem>>, vector<128x16xbf16>
    %cst_33 = arith.constant dense<0.000000e+00> : vector<16x16xf32>
    %37 = tpu.matmul %2, %36, %cst_33 {dimension_numbers = #tpu.dot_dimension_numbers<[1], [0], [0], [1], [0, 0, 1, 1], [], []>} : vector<16x128xbf16>, vector<128x16xbf16>, vector<16x16xf32> -> vector<16x16xf32>
    %38 = arith.addf %37, %5 : vector<16x16xf32>
    %c0_34 = arith.constant 0 : index
    %c0_35 = arith.constant 0 : index
    %c0_36 = arith.constant 0 : index
    %c0_37 = arith.constant 0 : index
    %39 = vector.load %arg5[%c0_34, %c0_35, %c0_36, %c0_37] : memref<1x16x8x16xf32, #tpu.memory_space<vmem>>, vector<1x16x1x16xf32>
    %40 = vector.shape_cast %39 : vector<1x16x1x16xf32> to vector<16x16xf32>
    %41 = vector.shape_cast %38 : vector<16x16xf32> to vector<1x16x1x16xf32>
    tpu.vector_store %arg5[%c0_34, %c0_35, %c0_36, %c0_37], %41 {strides = array<i32>} : memref<1x16x8x16xf32, #tpu.memory_space<vmem>>, vector<1x16x1x16xf32>,
    %c0_38 = arith.constant 0 : index
    %c0_39 = arith.constant 0 : index
    %c2_40 = arith.constant 2 : index
    %c0_41 = arith.constant 0 : index
    %42 = vector.load %arg2[%c0_38, %c0_39, %c2_40, %c0_41] : memref<1x8x20x17xbf16, #tpu.memory_space<vmem>>, vector<1x8x1x17xbf16>
    %43 = vector.shape_cast %42 : vector<1x8x1x17xbf16> to vector<8x17xbf16>
    %44 = vector.extract_strided_slice %43 {offsets = [0, 0], sizes = [8, 16], strides = [1, 1]} : vector<8x17xbf16> to vector<8x16xbf16>
    %c0_42 = arith.constant 0 : index
    %c0_43 = arith.constant 0 : index
    %45 = vector.load %arg6[%c0_42, %c0_43] : memref<128x16xbf16, #tpu.memory_space<vmem>>, vector<8x16xbf16>
    tpu.vector_store %arg6[%c0_42, %c0_43], %44 {strides = array<i32>} : memref<128x16xbf16, #tpu.memory_space<vmem>>, vector<8x16xbf16>,
    %46 = vector.extract_strided_slice %43 {offsets = [0, 1], sizes = [8, 16], strides = [1, 1]} : vector<8x17xbf16> to vector<8x16xbf16>
    %c8_44 = arith.constant 8 : index
    %c0_45 = arith.constant 0 : index
    %47 = vector.load %arg6[%c8_44, %c0_45] : memref<128x16xbf16, #tpu.memory_space<vmem>>, vector<8x16xbf16>
    tpu.vector_store %arg6[%c8_44, %c0_45], %46 {strides = array<i32>} : memref<128x16xbf16, #tpu.memory_space<vmem>>, vector<8x16xbf16>,
    %c0_46 = arith.constant 0 : index
    %c0_47 = arith.constant 0 : index
    %c3_48 = arith.constant 3 : index
    %c0_49 = arith.constant 0 : index
    %48 = vector.load %arg2[%c0_46, %c0_47, %c3_48, %c0_49] : memref<1x8x20x17xbf16, #tpu.memory_space<vmem>>, vector<1x8x1x17xbf16>
    %49 = vector.shape_cast %48 : vector<1x8x1x17xbf16> to vector<8x17xbf16>
    %50 = vector.extract_strided_slice %49 {offsets = [0, 0], sizes = [8, 16], strides = [1, 1]} : vector<8x17xbf16> to vector<8x16xbf16>
    %c16_50 = arith.constant 16 : index
    %c0_51 = arith.constant 0 : index
    %51 = vector.load %arg6[%c16_50, %c0_51] : memref<128x16xbf16, #tpu.memory_space<vmem>>, vector<8x16xbf16>
    tpu.vector_store %arg6[%c16_50, %c0_51], %50 {strides = array<i32>} : memref<128x16xbf16, #tpu.memory_space<vmem>>, vector<8x16xbf16>,
    %52 = vector.extract_strided_slice %49 {offsets = [0, 1], sizes = [8, 16], strides = [1, 1]} : vector<8x17xbf16> to vector<8x16xbf16>
    %c24_52 = arith.constant 24 : index
    %c0_53 = arith.constant 0 : index
    %53 = vector.load %arg6[%c24_52, %c0_53] : memref<128x16xbf16, #tpu.memory_space<vmem>>, vector<8x16xbf16>
    tpu.vector_store %arg6[%c24_52, %c0_53], %52 {strides = array<i32>} : memref<128x16xbf16, #tpu.memory_space<vmem>>, vector<8x16xbf16>,
    %c0_54 = arith.constant 0 : index
    %c0_55 = arith.constant 0 : index
    %c4_56 = arith.constant 4 : index
    %c0_57 = arith.constant 0 : index
    %54 = vector.load %arg2[%c0_54, %c0_55, %c4_56, %c0_57] : memref<1x8x20x17xbf16, #tpu.memory_space<vmem>>, vector<1x8x1x17xbf16>
    %55 = vector.shape_cast %54 : vector<1x8x1x17xbf16> to vector<8x17xbf16>
    %56 = vector.extract_strided_slice %55 {offsets = [0, 0], sizes = [8, 16], strides = [1, 1]} : vector<8x17xbf16> to vector<8x16xbf16>
    %c32_58 = arith.constant 32 : index
    %c0_59 = arith.constant 0 : index
    %57 = vector.load %arg6[%c32_58, %c0_59] : memref<128x16xbf16, #tpu.memory_space<vmem>>, vector<8x16xbf16>
    tpu.vector_store %arg6[%c32_58, %c0_59], %56 {strides = array<i32>} : memref<128x16xbf16, #tpu.memory_space<vmem>>, vector<8x16xbf16>,
    %58 = vector.extract_strided_slice %55 {offsets = [0, 1], sizes = [8, 16], strides = [1, 1]} : vector<8x17xbf16> to vector<8x16xbf16>
    %c40_60 = arith.constant 40 : index
    %c0_61 = arith.constant 0 : index
    %59 = vector.load %arg6[%c40_60, %c0_61] : memref<128x16xbf16, #tpu.memory_space<vmem>>, vector<8x16xbf16>
    tpu.vector_store %arg6[%c40_60, %c0_61], %58 {strides = array<i32>} : memref<128x16xbf16, #tpu.memory_space<vmem>>, vector<8x16xbf16>,
    %c0_62 = arith.constant 0 : index
    %c0_63 = arith.constant 0 : index
    %c5 = arith.constant 5 : index
    %c0_64 = arith.constant 0 : index
    %60 = vector.load %arg2[%c0_62, %c0_63, %c5, %c0_64] : memref<1x8x20x17xbf16, #tpu.memory_space<vmem>>, vector<1x8x1x17xbf16>
    %61 = vector.shape_cast %60 : vector<1x8x1x17xbf16> to vector<8x17xbf16>
    %62 = vector.extract_strided_slice %61 {offsets = [0, 0], sizes = [8, 16], strides = [1, 1]} : vector<8x17xbf16> to vector<8x16xbf16>
    %c48_65 = arith.constant 48 : index
    %c0_66 = arith.constant 0 : index
    %63 = vector.load %arg6[%c48_65, %c0_66] : memref<128x16xbf16, #tpu.memory_space<vmem>>, vector<8x16xbf16>
    tpu.vector_store %arg6[%c48_65, %c0_66], %62 {strides = array<i32>} : memref<128x16xbf16, #tpu.memory_space<vmem>>, vector<8x16xbf16>,
    %64 = vector.extract_strided_slice %61 {offsets = [0, 1], sizes = [8, 16], strides = [1, 1]} : vector<8x17xbf16> to vector<8x16xbf16>
    %c56_67 = arith.constant 56 : index
    %c0_68 = arith.constant 0 : index
    %65 = vector.load %arg6[%c56_67, %c0_68] : memref<128x16xbf16, #tpu.memory_space<vmem>>, vector<8x16xbf16>
    tpu.vector_store %arg6[%c56_67, %c0_68], %64 {strides = array<i32>} : memref<128x16xbf16, #tpu.memory_space<vmem>>, vector<8x16xbf16>,
    %c0_69 = arith.constant 0 : index
    %c0_70 = arith.constant 0 : index
    %c6 = arith.constant 6 : index
    %c0_71 = arith.constant 0 : index
    %66 = vector.load %arg2[%c0_69, %c0_70, %c6, %c0_71] : memref<1x8x20x17xbf16, #tpu.memory_space<vmem>>, vector<1x8x1x17xbf16>
    %67 = vector.shape_cast %66 : vector<1x8x1x17xbf16> to vector<8x17xbf16>
    %68 = vector.extract_strided_slice %67 {offsets = [0, 0], sizes = [8, 16], strides = [1, 1]} : vector<8x17xbf16> to vector<8x16xbf16>
    %c64_72 = arith.constant 64 : index
    %c0_73 = arith.constant 0 : index
    %69 = vector.load %arg6[%c64_72, %c0_73] : memref<128x16xbf16, #tpu.memory_space<vmem>>, vector<8x16xbf16>
    tpu.vector_store %arg6[%c64_72, %c0_73], %68 {strides = array<i32>} : memref<128x16xbf16, #tpu.memory_space<vmem>>, vector<8x16xbf16>,
    %70 = vector.extract_strided_slice %67 {offsets = [0, 1], sizes = [8, 16], strides = [1, 1]} : vector<8x17xbf16> to vector<8x16xbf16>
    %c72_74 = arith.constant 72 : index
    %c0_75 = arith.constant 0 : index
    %71 = vector.load %arg6[%c72_74, %c0_75] : memref<128x16xbf16, #tpu.memory_space<vmem>>, vector<8x16xbf16>
    tpu.vector_store %arg6[%c72_74, %c0_75], %70 {strides = array<i32>} : memref<128x16xbf16, #tpu.memory_space<vmem>>, vector<8x16xbf16>,
    %c0_76 = arith.constant 0 : index
    %c0_77 = arith.constant 0 : index
    %72 = vector.load %arg6[%c0_76, %c0_77] : memref<128x16xbf16, #tpu.memory_space<vmem>>, vector<128x16xbf16>
    %cst_78 = arith.constant dense<0.000000e+00> : vector<16x16xf32>
    %73 = tpu.matmul %2, %72, %cst_78 {dimension_numbers = #tpu.dot_dimension_numbers<[1], [0], [0], [1], [0, 0, 1, 1], [], []>} : vector<16x128xbf16>, vector<128x16xbf16>, vector<16x16xf32> -> vector<16x16xf32>
    %74 = arith.addf %73, %5 : vector<16x16xf32>
    %c0_79 = arith.constant 0 : index
    %c0_80 = arith.constant 0 : index
    %c1_81 = arith.constant 1 : index
    %c0_82 = arith.constant 0 : index
    %75 = vector.load %arg5[%c0_79, %c0_80, %c1_81, %c0_82] : memref<1x16x8x16xf32, #tpu.memory_space<vmem>>, vector<1x16x1x16xf32>
    %76 = vector.shape_cast %75 : vector<1x16x1x16xf32> to vector<16x16xf32>
    %77 = vector.shape_cast %74 : vector<16x16xf32> to vector<1x16x1x16xf32>
    tpu.vector_store %arg5[%c0_79, %c0_80, %c1_81, %c0_82], %77 {strides = array<i32>} : memref<1x16x8x16xf32, #tpu.memory_space<vmem>>, vector<1x16x1x16xf32>,
    %c0_83 = arith.constant 0 : index
    %c0_84 = arith.constant 0 : index
    %c4_85 = arith.constant 4 : index
    %c0_86 = arith.constant 0 : index
    %78 = vector.load %arg2[%c0_83, %c0_84, %c4_85, %c0_86] : memref<1x8x20x17xbf16, #tpu.memory_space<vmem>>, vector<1x8x1x17xbf16>
    %79 = vector.shape_cast %78 : vector<1x8x1x17xbf16> to vector<8x17xbf16>
    %80 = vector.extract_strided_slice %79 {offsets = [0, 0], sizes = [8, 16], strides = [1, 1]} : vector<8x17xbf16> to vector<8x16xbf16>
    %c0_87 = arith.constant 0 : index
    %c0_88 = arith.constant 0 : index
    %81 = vector.load %arg6[%c0_87, %c0_88] : memref<128x16xbf16, #tpu.memory_space<vmem>>, vector<8x16xbf16>
    tpu.vector_store %arg6[%c0_87, %c0_88], %80 {strides = array<i32>} : memref<128x16xbf16, #tpu.memory_space<vmem>>, vector<8x16xbf16>,
    %82 = vector.extract_strided_slice %79 {offsets = [0, 1], sizes = [8, 16], strides = [1, 1]} : vector<8x17xbf16> to vector<8x16xbf16>
    %c8_89 = arith.constant 8 : index
    %c0_90 = arith.constant 0 : index
    %83 = vector.load %arg6[%c8_89, %c0_90] : memref<128x16xbf16, #tpu.memory_space<vmem>>, vector<8x16xbf16>
    tpu.vector_store %arg6[%c8_89, %c0_90], %82 {strides = array<i32>} : memref<128x16xbf16, #tpu.memory_space<vmem>>, vector<8x16xbf16>,
    %c0_91 = arith.constant 0 : index
    %c0_92 = arith.constant 0 : index
    %c5_93 = arith.constant 5 : index
    %c0_94 = arith.constant 0 : index
    %84 = vector.load %arg2[%c0_91, %c0_92, %c5_93, %c0_94] : memref<1x8x20x17xbf16, #tpu.memory_space<vmem>>, vector<1x8x1x17xbf16>
    %85 = vector.shape_cast %84 : vector<1x8x1x17xbf16> to vector<8x17xbf16>
    %86 = vector.extract_strided_slice %85 {offsets = [0, 0], sizes = [8, 16], strides = [1, 1]} : vector<8x17xbf16> to vector<8x16xbf16>
    %c16_95 = arith.constant 16 : index
    %c0_96 = arith.constant 0 : index
    %87 = vector.load %arg6[%c16_95, %c0_96] : memref<128x16xbf16, #tpu.memory_space<vmem>>, vector<8x16xbf16>
    tpu.vector_store %arg6[%c16_95, %c0_96], %86 {strides = array<i32>} : memref<128x16xbf16, #tpu.memory_space<vmem>>, vector<8x16xbf16>,
    %88 = vector.extract_strided_slice %85 {offsets = [0, 1], sizes = [8, 16], strides = [1, 1]} : vector<8x17xbf16> to vector<8x16xbf16>
    %c24_97 = arith.constant 24 : index
    %c0_98 = arith.constant 0 : index
    %89 = vector.load %arg6[%c24_97, %c0_98] : memref<128x16xbf16, #tpu.memory_space<vmem>>, vector<8x16xbf16>
    tpu.vector_store %arg6[%c24_97, %c0_98], %88 {strides = array<i32>} : memref<128x16xbf16, #tpu.memory_space<vmem>>, vector<8x16xbf16>,
    %c0_99 = arith.constant 0 : index
    %c0_100 = arith.constant 0 : index
    %c6_101 = arith.constant 6 : index
    %c0_102 = arith.constant 0 : index
    %90 = vector.load %arg2[%c0_99, %c0_100, %c6_101, %c0_102] : memref<1x8x20x17xbf16, #tpu.memory_space<vmem>>, vector<1x8x1x17xbf16>
    %91 = vector.shape_cast %90 : vector<1x8x1x17xbf16> to vector<8x17xbf16>
    %92 = vector.extract_strided_slice %91 {offsets = [0, 0], sizes = [8, 16], strides = [1, 1]} : vector<8x17xbf16> to vector<8x16xbf16>
    %c32_103 = arith.constant 32 : index
    %c0_104 = arith.constant 0 : index
    %93 = vector.load %arg6[%c32_103, %c0_104] : memref<128x16xbf16, #tpu.memory_space<vmem>>, vector<8x16xbf16>
    tpu.vector_store %arg6[%c32_103, %c0_104], %92 {strides = array<i32>} : memref<128x16xbf16, #tpu.memory_space<vmem>>, vector<8x16xbf16>,
    %94 = vector.extract_strided_slice %91 {offsets = [0, 1], sizes = [8, 16], strides = [1, 1]} : vector<8x17xbf16> to vector<8x16xbf16>
    %c40_105 = arith.constant 40 : index
    %c0_106 = arith.constant 0 : index
    %95 = vector.load %arg6[%c40_105, %c0_106] : memref<128x16xbf16, #tpu.memory_space<vmem>>, vector<8x16xbf16>
    tpu.vector_store %arg6[%c40_105, %c0_106], %94 {strides = array<i32>} : memref<128x16xbf16, #tpu.memory_space<vmem>>, vector<8x16xbf16>,
    %c0_107 = arith.constant 0 : index
    %c0_108 = arith.constant 0 : index
    %c7 = arith.constant 7 : index
    %c0_109 = arith.constant 0 : index
    %96 = vector.load %arg2[%c0_107, %c0_108, %c7, %c0_109] : memref<1x8x20x17xbf16, #tpu.memory_space<vmem>>, vector<1x8x1x17xbf16>
    %97 = vector.shape_cast %96 : vector<1x8x1x17xbf16> to vector<8x17xbf16>
    %98 = vector.extract_strided_slice %97 {offsets = [0, 0], sizes = [8, 16], strides = [1, 1]} : vector<8x17xbf16> to vector<8x16xbf16>
    %c48_110 = arith.constant 48 : index
    %c0_111 = arith.constant 0 : index
    %99 = vector.load %arg6[%c48_110, %c0_111] : memref<128x16xbf16, #tpu.memory_space<vmem>>, vector<8x16xbf16>
    tpu.vector_store %arg6[%c48_110, %c0_111], %98 {strides = array<i32>} : memref<128x16xbf16, #tpu.memory_space<vmem>>, vector<8x16xbf16>,
    %100 = vector.extract_strided_slice %97 {offsets = [0, 1], sizes = [8, 16], strides = [1, 1]} : vector<8x17xbf16> to vector<8x16xbf16>
    %c56_112 = arith.constant 56 : index
    %c0_113 = arith.constant 0 : index
    %101 = vector.load %arg6[%c56_112, %c0_113] : memref<128x16xbf16, #tpu.memory_space<vmem>>, vector<8x16xbf16>
    tpu.vector_store %arg6[%c56_112, %c0_113], %100 {strides = array<i32>} : memref<128x16xbf16, #tpu.memory_space<vmem>>, vector<8x16xbf16>,
    %c0_114 = arith.constant 0 : index
    %c0_115 = arith.constant 0 : index
    %c8_116 = arith.constant 8 : index
    %c0_117 = arith.constant 0 : index
    %102 = vector.load %arg2[%c0_114, %c0_115, %c8_116, %c0_117] : memref<1x8x20x17xbf16, #tpu.memory_space<vmem>>, vector<1x8x1x17xbf16>
    %103 = vector.shape_cast %102 : vector<1x8x1x17xbf16> to vector<8x17xbf16>
    %104 = vector.extract_strided_slice %103 {offsets = [0, 0], sizes = [8, 16], strides = [1, 1]} : vector<8x17xbf16> to vector<8x16xbf16>
    %c64_118 = arith.constant 64 : index
    %c0_119 = arith.constant 0 : index
    %105 = vector.load %arg6[%c64_118, %c0_119] : memref<128x16xbf16, #tpu.memory_space<vmem>>, vector<8x16xbf16>
    tpu.vector_store %arg6[%c64_118, %c0_119], %104 {strides = array<i32>} : memref<128x16xbf16, #tpu.memory_space<vmem>>, vector<8x16xbf16>,
    %106 = vector.extract_strided_slice %103 {offsets = [0, 1], sizes = [8, 16], strides = [1, 1]} : vector<8x17xbf16> to vector<8x16xbf16>
    %c72_120 = arith.constant 72 : index
    %c0_121 = arith.constant 0 : index
    %107 = vector.load %arg6[%c72_120, %c0_121] : memref<128x16xbf16, #tpu.memory_space<vmem>>, vector<8x16xbf16>
    tpu.vector_store %arg6[%c72_120, %c0_121], %106 {strides = array<i32>} : memref<128x16xbf16, #tpu.memory_space<vmem>>, vector<8x16xbf16>,
    %c0_122 = arith.constant 0 : index
    %c0_123 = arith.constant 0 : index
    %108 = vector.load %arg6[%c0_122, %c0_123] : memref<128x16xbf16, #tpu.memory_space<vmem>>, vector<128x16xbf16>
    %cst_124 = arith.constant dense<0.000000e+00> : vector<16x16xf32>
    %109 = tpu.matmul %2, %108, %cst_124 {dimension_numbers = #tpu.dot_dimension_numbers<[1], [0], [0], [1], [0, 0, 1, 1], [], []>} : vector<16x128xbf16>, vector<128x16xbf16>, vector<16x16xf32> -> vector<16x16xf32>
    %110 = arith.addf %109, %5 : vector<16x16xf32>
    %c0_125 = arith.constant 0 : index
    %c0_126 = arith.constant 0 : index
    %c2_127 = arith.constant 2 : index
    %c0_128 = arith.constant 0 : index
    %111 = vector.load %arg5[%c0_125, %c0_126, %c2_127, %c0_128] : memref<1x16x8x16xf32, #tpu.memory_space<vmem>>, vector<1x16x1x16xf32>
    %112 = vector.shape_cast %111 : vector<1x16x1x16xf32> to vector<16x16xf32>
    %113 = vector.shape_cast %110 : vector<16x16xf32> to vector<1x16x1x16xf32>
    tpu.vector_store %arg5[%c0_125, %c0_126, %c2_127, %c0_128], %113 {strides = array<i32>} : memref<1x16x8x16xf32, #tpu.memory_space<vmem>>, vector<1x16x1x16xf32>,
    %c0_129 = arith.constant 0 : index
    %c0_130 = arith.constant 0 : index
    %c6_131 = arith.constant 6 : index
    %c0_132 = arith.constant 0 : index
    %114 = vector.load %arg2[%c0_129, %c0_130, %c6_131, %c0_132] : memref<1x8x20x17xbf16, #tpu.memory_space<vmem>>, vector<1x8x1x17xbf16>
    %115 = vector.shape_cast %114 : vector<1x8x1x17xbf16> to vector<8x17xbf16>
    %116 = vector.extract_strided_slice %115 {offsets = [0, 0], sizes = [8, 16], strides = [1, 1]} : vector<8x17xbf16> to vector<8x16xbf16>
    %c0_133 = arith.constant 0 : index
    %c0_134 = arith.constant 0 : index
    %117 = vector.load %arg6[%c0_133, %c0_134] : memref<128x16xbf16, #tpu.memory_space<vmem>>, vector<8x16xbf16>
    tpu.vector_store %arg6[%c0_133, %c0_134], %116 {strides = array<i32>} : memref<128x16xbf16, #tpu.memory_space<vmem>>, vector<8x16xbf16>,
    %118 = vector.extract_strided_slice %115 {offsets = [0, 1], sizes = [8, 16], strides = [1, 1]} : vector<8x17xbf16> to vector<8x16xbf16>
    %c8_135 = arith.constant 8 : index
    %c0_136 = arith.constant 0 : index
    %119 = vector.load %arg6[%c8_135, %c0_136] : memref<128x16xbf16, #tpu.memory_space<vmem>>, vector<8x16xbf16>
    tpu.vector_store %arg6[%c8_135, %c0_136], %118 {strides = array<i32>} : memref<128x16xbf16, #tpu.memory_space<vmem>>, vector<8x16xbf16>,
    %c0_137 = arith.constant 0 : index
    %c0_138 = arith.constant 0 : index
    %c7_139 = arith.constant 7 : index
    %c0_140 = arith.constant 0 : index
    %120 = vector.load %arg2[%c0_137, %c0_138, %c7_139, %c0_140] : memref<1x8x20x17xbf16, #tpu.memory_space<vmem>>, vector<1x8x1x17xbf16>
    %121 = vector.shape_cast %120 : vector<1x8x1x17xbf16> to vector<8x17xbf16>
    %122 = vector.extract_strided_slice %121 {offsets = [0, 0], sizes = [8, 16], strides = [1, 1]} : vector<8x17xbf16> to vector<8x16xbf16>
    %c16_141 = arith.constant 16 : index
    %c0_142 = arith.constant 0 : index
    %123 = vector.load %arg6[%c16_141, %c0_142] : memref<128x16xbf16, #tpu.memory_space<vmem>>, vector<8x16xbf16>
    tpu.vector_store %arg6[%c16_141, %c0_142], %122 {strides = array<i32>} : memref<128x16xbf16, #tpu.memory_space<vmem>>, vector<8x16xbf16>,
    %124 = vector.extract_strided_slice %121 {offsets = [0, 1], sizes = [8, 16], strides = [1, 1]} : vector<8x17xbf16> to vector<8x16xbf16>
    %c24_143 = arith.constant 24 : index
    %c0_144 = arith.constant 0 : index
    %125 = vector.load %arg6[%c24_143, %c0_144] : memref<128x16xbf16, #tpu.memory_space<vmem>>, vector<8x16xbf16>
    tpu.vector_store %arg6[%c24_143, %c0_144], %124 {strides = array<i32>} : memref<128x16xbf16, #tpu.memory_space<vmem>>, vector<8x16xbf16>,
    %c0_145 = arith.constant 0 : index
    %c0_146 = arith.constant 0 : index
    %c8_147 = arith.constant 8 : index
    %c0_148 = arith.constant 0 : index
    %126 = vector.load %arg2[%c0_145, %c0_146, %c8_147, %c0_148] : memref<1x8x20x17xbf16, #tpu.memory_space<vmem>>, vector<1x8x1x17xbf16>
    %127 = vector.shape_cast %126 : vector<1x8x1x17xbf16> to vector<8x17xbf16>
    %128 = vector.extract_strided_slice %127 {offsets = [0, 0], sizes = [8, 16], strides = [1, 1]} : vector<8x17xbf16> to vector<8x16xbf16>
    %c32_149 = arith.constant 32 : index
    %c0_150 = arith.constant 0 : index
    %129 = vector.load %arg6[%c32_149, %c0_150] : memref<128x16xbf16, #tpu.memory_space<vmem>>, vector<8x16xbf16>
    tpu.vector_store %arg6[%c32_149, %c0_150], %128 {strides = array<i32>} : memref<128x16xbf16, #tpu.memory_space<vmem>>, vector<8x16xbf16>,
    %130 = vector.extract_strided_slice %127 {offsets = [0, 1], sizes = [8, 16], strides = [1, 1]} : vector<8x17xbf16> to vector<8x16xbf16>
    %c40_151 = arith.constant 40 : index
    %c0_152 = arith.constant 0 : index
    %131 = vector.load %arg6[%c40_151, %c0_152] : memref<128x16xbf16, #tpu.memory_space<vmem>>, vector<8x16xbf16>
    tpu.vector_store %arg6[%c40_151, %c0_152], %130 {strides = array<i32>} : memref<128x16xbf16, #tpu.memory_space<vmem>>, vector<8x16xbf16>,
    %c0_153 = arith.constant 0 : index
    %c0_154 = arith.constant 0 : index
    %c9 = arith.constant 9 : index
    %c0_155 = arith.constant 0 : index
    %132 = vector.load %arg2[%c0_153, %c0_154, %c9, %c0_155] : memref<1x8x20x17xbf16, #tpu.memory_space<vmem>>, vector<1x8x1x17xbf16>
    %133 = vector.shape_cast %132 : vector<1x8x1x17xbf16> to vector<8x17xbf16>
    %134 = vector.extract_strided_slice %133 {offsets = [0, 0], sizes = [8, 16], strides = [1, 1]} : vector<8x17xbf16> to vector<8x16xbf16>
    %c48_156 = arith.constant 48 : index
    %c0_157 = arith.constant 0 : index
    %135 = vector.load %arg6[%c48_156, %c0_157] : memref<128x16xbf16, #tpu.memory_space<vmem>>, vector<8x16xbf16>
    tpu.vector_store %arg6[%c48_156, %c0_157], %134 {strides = array<i32>} : memref<128x16xbf16, #tpu.memory_space<vmem>>, vector<8x16xbf16>,
    %136 = vector.extract_strided_slice %133 {offsets = [0, 1], sizes = [8, 16], strides = [1, 1]} : vector<8x17xbf16> to vector<8x16xbf16>
    %c56_158 = arith.constant 56 : index
    %c0_159 = arith.constant 0 : index
    %137 = vector.load %arg6[%c56_158, %c0_159] : memref<128x16xbf16, #tpu.memory_space<vmem>>, vector<8x16xbf16>
    tpu.vector_store %arg6[%c56_158, %c0_159], %136 {strides = array<i32>} : memref<128x16xbf16, #tpu.memory_space<vmem>>, vector<8x16xbf16>,
    %c0_160 = arith.constant 0 : index
    %c0_161 = arith.constant 0 : index
    %c10 = arith.constant 10 : index
    %c0_162 = arith.constant 0 : index
    %138 = vector.load %arg2[%c0_160, %c0_161, %c10, %c0_162] : memref<1x8x20x17xbf16, #tpu.memory_space<vmem>>, vector<1x8x1x17xbf16>
    %139 = vector.shape_cast %138 : vector<1x8x1x17xbf16> to vector<8x17xbf16>
    %140 = vector.extract_strided_slice %139 {offsets = [0, 0], sizes = [8, 16], strides = [1, 1]} : vector<8x17xbf16> to vector<8x16xbf16>
    %c64_163 = arith.constant 64 : index
    %c0_164 = arith.constant 0 : index
    %141 = vector.load %arg6[%c64_163, %c0_164] : memref<128x16xbf16, #tpu.memory_space<vmem>>, vector<8x16xbf16>
    tpu.vector_store %arg6[%c64_163, %c0_164], %140 {strides = array<i32>} : memref<128x16xbf16, #tpu.memory_space<vmem>>, vector<8x16xbf16>,
    %142 = vector.extract_strided_slice %139 {offsets = [0, 1], sizes = [8, 16], strides = [1, 1]} : vector<8x17xbf16> to vector<8x16xbf16>
    %c72_165 = arith.constant 72 : index
    %c0_166 = arith.constant 0 : index
    %143 = vector.load %arg6[%c72_165, %c0_166] : memref<128x16xbf16, #tpu.memory_space<vmem>>, vector<8x16xbf16>
    tpu.vector_store %arg6[%c72_165, %c0_166], %142 {strides = array<i32>} : memref<128x16xbf16, #tpu.memory_space<vmem>>, vector<8x16xbf16>,
    %c0_167 = arith.constant 0 : index
    %c0_168 = arith.constant 0 : index
    %144 = vector.load %arg6[%c0_167, %c0_168] : memref<128x16xbf16, #tpu.memory_space<vmem>>, vector<128x16xbf16>
    %cst_169 = arith.constant dense<0.000000e+00> : vector<16x16xf32>
    %145 = tpu.matmul %2, %144, %cst_169 {dimension_numbers = #tpu.dot_dimension_numbers<[1], [0], [0], [1], [0, 0, 1, 1], [], []>} : vector<16x128xbf16>, vector<128x16xbf16>, vector<16x16xf32> -> vector<16x16xf32>
    %146 = arith.addf %145, %5 : vector<16x16xf32>
    %c0_170 = arith.constant 0 : index
    %c0_171 = arith.constant 0 : index
    %c3_172 = arith.constant 3 : index
    %c0_173 = arith.constant 0 : index
    %147 = vector.load %arg5[%c0_170, %c0_171, %c3_172, %c0_173] : memref<1x16x8x16xf32, #tpu.memory_space<vmem>>, vector<1x16x1x16xf32>
    %148 = vector.shape_cast %147 : vector<1x16x1x16xf32> to vector<16x16xf32>
    %149 = vector.shape_cast %146 : vector<16x16xf32> to vector<1x16x1x16xf32>
    tpu.vector_store %arg5[%c0_170, %c0_171, %c3_172, %c0_173], %149 {strides = array<i32>} : memref<1x16x8x16xf32, #tpu.memory_space<vmem>>, vector<1x16x1x16xf32>,
    %c0_174 = arith.constant 0 : index
    %c0_175 = arith.constant 0 : index
    %c8_176 = arith.constant 8 : index
    %c0_177 = arith.constant 0 : index
    %150 = vector.load %arg2[%c0_174, %c0_175, %c8_176, %c0_177] : memref<1x8x20x17xbf16, #tpu.memory_space<vmem>>, vector<1x8x1x17xbf16>
    %151 = vector.shape_cast %150 : vector<1x8x1x17xbf16> to vector<8x17xbf16>
    %152 = vector.extract_strided_slice %151 {offsets = [0, 0], sizes = [8, 16], strides = [1, 1]} : vector<8x17xbf16> to vector<8x16xbf16>
    %c0_178 = arith.constant 0 : index
    %c0_179 = arith.constant 0 : index
    %153 = vector.load %arg6[%c0_178, %c0_179] : memref<128x16xbf16, #tpu.memory_space<vmem>>, vector<8x16xbf16>
    tpu.vector_store %arg6[%c0_178, %c0_179], %152 {strides = array<i32>} : memref<128x16xbf16, #tpu.memory_space<vmem>>, vector<8x16xbf16>,
    %154 = vector.extract_strided_slice %151 {offsets = [0, 1], sizes = [8, 16], strides = [1, 1]} : vector<8x17xbf16> to vector<8x16xbf16>
    %c8_180 = arith.constant 8 : index
    %c0_181 = arith.constant 0 : index
    %155 = vector.load %arg6[%c8_180, %c0_181] : memref<128x16xbf16, #tpu.memory_space<vmem>>, vector<8x16xbf16>
    tpu.vector_store %arg6[%c8_180, %c0_181], %154 {strides = array<i32>} : memref<128x16xbf16, #tpu.memory_space<vmem>>, vector<8x16xbf16>,
    %c0_182 = arith.constant 0 : index
    %c0_183 = arith.constant 0 : index
    %c9_184 = arith.constant 9 : index
    %c0_185 = arith.constant 0 : index
    %156 = vector.load %arg2[%c0_182, %c0_183, %c9_184, %c0_185] : memref<1x8x20x17xbf16, #tpu.memory_space<vmem>>, vector<1x8x1x17xbf16>
    %157 = vector.shape_cast %156 : vector<1x8x1x17xbf16> to vector<8x17xbf16>
    %158 = vector.extract_strided_slice %157 {offsets = [0, 0], sizes = [8, 16], strides = [1, 1]} : vector<8x17xbf16> to vector<8x16xbf16>
    %c16_186 = arith.constant 16 : index
    %c0_187 = arith.constant 0 : index
    %159 = vector.load %arg6[%c16_186, %c0_187] : memref<128x16xbf16, #tpu.memory_space<vmem>>, vector<8x16xbf16>
    tpu.vector_store %arg6[%c16_186, %c0_187], %158 {strides = array<i32>} : memref<128x16xbf16, #tpu.memory_space<vmem>>, vector<8x16xbf16>,
    %160 = vector.extract_strided_slice %157 {offsets = [0, 1], sizes = [8, 16], strides = [1, 1]} : vector<8x17xbf16> to vector<8x16xbf16>
    %c24_188 = arith.constant 24 : index
    %c0_189 = arith.constant 0 : index
    %161 = vector.load %arg6[%c24_188, %c0_189] : memref<128x16xbf16, #tpu.memory_space<vmem>>, vector<8x16xbf16>
    tpu.vector_store %arg6[%c24_188, %c0_189], %160 {strides = array<i32>} : memref<128x16xbf16, #tpu.memory_space<vmem>>, vector<8x16xbf16>,
    %c0_190 = arith.constant 0 : index
    %c0_191 = arith.constant 0 : index
    %c10_192 = arith.constant 10 : index
    %c0_193 = arith.constant 0 : index
    %162 = vector.load %arg2[%c0_190, %c0_191, %c10_192, %c0_193] : memref<1x8x20x17xbf16, #tpu.memory_space<vmem>>, vector<1x8x1x17xbf16>
    %163 = vector.shape_cast %162 : vector<1x8x1x17xbf16> to vector<8x17xbf16>
    %164 = vector.extract_strided_slice %163 {offsets = [0, 0], sizes = [8, 16], strides = [1, 1]} : vector<8x17xbf16> to vector<8x16xbf16>
    %c32_194 = arith.constant 32 : index
    %c0_195 = arith.constant 0 : index
    %165 = vector.load %arg6[%c32_194, %c0_195] : memref<128x16xbf16, #tpu.memory_space<vmem>>, vector<8x16xbf16>
    tpu.vector_store %arg6[%c32_194, %c0_195], %164 {strides = array<i32>} : memref<128x16xbf16, #tpu.memory_space<vmem>>, vector<8x16xbf16>,
    %166 = vector.extract_strided_slice %163 {offsets = [0, 1], sizes = [8, 16], strides = [1, 1]} : vector<8x17xbf16> to vector<8x16xbf16>
    %c40_196 = arith.constant 40 : index
    %c0_197 = arith.constant 0 : index
    %167 = vector.load %arg6[%c40_196, %c0_197] : memref<128x16xbf16, #tpu.memory_space<vmem>>, vector<8x16xbf16>
    tpu.vector_store %arg6[%c40_196, %c0_197], %166 {strides = array<i32>} : memref<128x16xbf16, #tpu.memory_space<vmem>>, vector<8x16xbf16>,
    %c0_198 = arith.constant 0 : index
    %c0_199 = arith.constant 0 : index
    %c11 = arith.constant 11 : index
    %c0_200 = arith.constant 0 : index
    %168 = vector.load %arg2[%c0_198, %c0_199, %c11, %c0_200] : memref<1x8x20x17xbf16, #tpu.memory_space<vmem>>, vector<1x8x1x17xbf16>
    %169 = vector.shape_cast %168 : vector<1x8x1x17xbf16> to vector<8x17xbf16>
    %170 = vector.extract_strided_slice %169 {offsets = [0, 0], sizes = [8, 16], strides = [1, 1]} : vector<8x17xbf16> to vector<8x16xbf16>
    %c48_201 = arith.constant 48 : index
    %c0_202 = arith.constant 0 : index
    %171 = vector.load %arg6[%c48_201, %c0_202] : memref<128x16xbf16, #tpu.memory_space<vmem>>, vector<8x16xbf16>
    tpu.vector_store %arg6[%c48_201, %c0_202], %170 {strides = array<i32>} : memref<128x16xbf16, #tpu.memory_space<vmem>>, vector<8x16xbf16>,
    %172 = vector.extract_strided_slice %169 {offsets = [0, 1], sizes = [8, 16], strides = [1, 1]} : vector<8x17xbf16> to vector<8x16xbf16>
    %c56_203 = arith.constant 56 : index
    %c0_204 = arith.constant 0 : index
    %173 = vector.load %arg6[%c56_203, %c0_204] : memref<128x16xbf16, #tpu.memory_space<vmem>>, vector<8x16xbf16>
    tpu.vector_store %arg6[%c56_203, %c0_204], %172 {strides = array<i32>} : memref<128x16xbf16, #tpu.memory_space<vmem>>, vector<8x16xbf16>,
    %c0_205 = arith.constant 0 : index
    %c0_206 = arith.constant 0 : index
    %c12 = arith.constant 12 : index
    %c0_207 = arith.constant 0 : index
    %174 = vector.load %arg2[%c0_205, %c0_206, %c12, %c0_207] : memref<1x8x20x17xbf16, #tpu.memory_space<vmem>>, vector<1x8x1x17xbf16>
    %175 = vector.shape_cast %174 : vector<1x8x1x17xbf16> to vector<8x17xbf16>
    %176 = vector.extract_strided_slice %175 {offsets = [0, 0], sizes = [8, 16], strides = [1, 1]} : vector<8x17xbf16> to vector<8x16xbf16>
    %c64_208 = arith.constant 64 : index
    %c0_209 = arith.constant 0 : index
    %177 = vector.load %arg6[%c64_208, %c0_209] : memref<128x16xbf16, #tpu.memory_space<vmem>>, vector<8x16xbf16>
    tpu.vector_store %arg6[%c64_208, %c0_209], %176 {strides = array<i32>} : memref<128x16xbf16, #tpu.memory_space<vmem>>, vector<8x16xbf16>,
    %178 = vector.extract_strided_slice %175 {offsets = [0, 1], sizes = [8, 16], strides = [1, 1]} : vector<8x17xbf16> to vector<8x16xbf16>
    %c72_210 = arith.constant 72 : index
    %c0_211 = arith.constant 0 : index
    %179 = vector.load %arg6[%c72_210, %c0_211] : memref<128x16xbf16, #tpu.memory_space<vmem>>, vector<8x16xbf16>
    tpu.vector_store %arg6[%c72_210, %c0_211], %178 {strides = array<i32>} : memref<128x16xbf16, #tpu.memory_space<vmem>>, vector<8x16xbf16>,
    %c0_212 = arith.constant 0 : index
    %c0_213 = arith.constant 0 : index
    %180 = vector.load %arg6[%c0_212, %c0_213] : memref<128x16xbf16, #tpu.memory_space<vmem>>, vector<128x16xbf16>
    %cst_214 = arith.constant dense<0.000000e+00> : vector<16x16xf32>
    %181 = tpu.matmul %2, %180, %cst_214 {dimension_numbers = #tpu.dot_dimension_numbers<[1], [0], [0], [1], [0, 0, 1, 1], [], []>} : vector<16x128xbf16>, vector<128x16xbf16>, vector<16x16xf32> -> vector<16x16xf32>
    %182 = arith.addf %181, %5 : vector<16x16xf32>
    %c0_215 = arith.constant 0 : index
    %c0_216 = arith.constant 0 : index
    %c4_217 = arith.constant 4 : index
    %c0_218 = arith.constant 0 : index
    %183 = vector.load %arg5[%c0_215, %c0_216, %c4_217, %c0_218] : memref<1x16x8x16xf32, #tpu.memory_space<vmem>>, vector<1x16x1x16xf32>
    %184 = vector.shape_cast %183 : vector<1x16x1x16xf32> to vector<16x16xf32>
    %185 = vector.shape_cast %182 : vector<16x16xf32> to vector<1x16x1x16xf32>
    tpu.vector_store %arg5[%c0_215, %c0_216, %c4_217, %c0_218], %185 {strides = array<i32>} : memref<1x16x8x16xf32, #tpu.memory_space<vmem>>, vector<1x16x1x16xf32>,
    %c0_219 = arith.constant 0 : index
    %c0_220 = arith.constant 0 : index
    %c10_221 = arith.constant 10 : index
    %c0_222 = arith.constant 0 : index
    %186 = vector.load %arg2[%c0_219, %c0_220, %c10_221, %c0_222] : memref<1x8x20x17xbf16, #tpu.memory_space<vmem>>, vector<1x8x1x17xbf16>
    %187 = vector.shape_cast %186 : vector<1x8x1x17xbf16> to vector<8x17xbf16>
    %188 = vector.extract_strided_slice %187 {offsets = [0, 0], sizes = [8, 16], strides = [1, 1]} : vector<8x17xbf16> to vector<8x16xbf16>
    %c0_223 = arith.constant 0 : index
    %c0_224 = arith.constant 0 : index
    %189 = vector.load %arg6[%c0_223, %c0_224] : memref<128x16xbf16, #tpu.memory_space<vmem>>, vector<8x16xbf16>
    tpu.vector_store %arg6[%c0_223, %c0_224], %188 {strides = array<i32>} : memref<128x16xbf16, #tpu.memory_space<vmem>>, vector<8x16xbf16>,
    %190 = vector.extract_strided_slice %187 {offsets = [0, 1], sizes = [8, 16], strides = [1, 1]} : vector<8x17xbf16> to vector<8x16xbf16>
    %c8_225 = arith.constant 8 : index
    %c0_226 = arith.constant 0 : index
    %191 = vector.load %arg6[%c8_225, %c0_226] : memref<128x16xbf16, #tpu.memory_space<vmem>>, vector<8x16xbf16>
    tpu.vector_store %arg6[%c8_225, %c0_226], %190 {strides = array<i32>} : memref<128x16xbf16, #tpu.memory_space<vmem>>, vector<8x16xbf16>,
    %c0_227 = arith.constant 0 : index
    %c0_228 = arith.constant 0 : index
    %c11_229 = arith.constant 11 : index
    %c0_230 = arith.constant 0 : index
    %192 = vector.load %arg2[%c0_227, %c0_228, %c11_229, %c0_230] : memref<1x8x20x17xbf16, #tpu.memory_space<vmem>>, vector<1x8x1x17xbf16>
    %193 = vector.shape_cast %192 : vector<1x8x1x17xbf16> to vector<8x17xbf16>
    %194 = vector.extract_strided_slice %193 {offsets = [0, 0], sizes = [8, 16], strides = [1, 1]} : vector<8x17xbf16> to vector<8x16xbf16>
    %c16_231 = arith.constant 16 : index
    %c0_232 = arith.constant 0 : index
    %195 = vector.load %arg6[%c16_231, %c0_232] : memref<128x16xbf16, #tpu.memory_space<vmem>>, vector<8x16xbf16>
    tpu.vector_store %arg6[%c16_231, %c0_232], %194 {strides = array<i32>} : memref<128x16xbf16, #tpu.memory_space<vmem>>, vector<8x16xbf16>,
    %196 = vector.extract_strided_slice %193 {offsets = [0, 1], sizes = [8, 16], strides = [1, 1]} : vector<8x17xbf16> to vector<8x16xbf16>
    %c24_233 = arith.constant 24 : index
    %c0_234 = arith.constant 0 : index
    %197 = vector.load %arg6[%c24_233, %c0_234] : memref<128x16xbf16, #tpu.memory_space<vmem>>, vector<8x16xbf16>
    tpu.vector_store %arg6[%c24_233, %c0_234], %196 {strides = array<i32>} : memref<128x16xbf16, #tpu.memory_space<vmem>>, vector<8x16xbf16>,
    %c0_235 = arith.constant 0 : index
    %c0_236 = arith.constant 0 : index
    %c12_237 = arith.constant 12 : index
    %c0_238 = arith.constant 0 : index
    %198 = vector.load %arg2[%c0_235, %c0_236, %c12_237, %c0_238] : memref<1x8x20x17xbf16, #tpu.memory_space<vmem>>, vector<1x8x1x17xbf16>
    %199 = vector.shape_cast %198 : vector<1x8x1x17xbf16> to vector<8x17xbf16>
    %200 = vector.extract_strided_slice %199 {offsets = [0, 0], sizes = [8, 16], strides = [1, 1]} : vector<8x17xbf16> to vector<8x16xbf16>
    %c32_239 = arith.constant 32 : index
    %c0_240 = arith.constant 0 : index
    %201 = vector.load %arg6[%c32_239, %c0_240] : memref<128x16xbf16, #tpu.memory_space<vmem>>, vector<8x16xbf16>
    tpu.vector_store %arg6[%c32_239, %c0_240], %200 {strides = array<i32>} : memref<128x16xbf16, #tpu.memory_space<vmem>>, vector<8x16xbf16>,
    %202 = vector.extract_strided_slice %199 {offsets = [0, 1], sizes = [8, 16], strides = [1, 1]} : vector<8x17xbf16> to vector<8x16xbf16>
    %c40_241 = arith.constant 40 : index
    %c0_242 = arith.constant 0 : index
    %203 = vector.load %arg6[%c40_241, %c0_242] : memref<128x16xbf16, #tpu.memory_space<vmem>>, vector<8x16xbf16>
    tpu.vector_store %arg6[%c40_241, %c0_242], %202 {strides = array<i32>} : memref<128x16xbf16, #tpu.memory_space<vmem>>, vector<8x16xbf16>,
    %c0_243 = arith.constant 0 : index
    %c0_244 = arith.constant 0 : index
    %c13 = arith.constant 13 : index
    %c0_245 = arith.constant 0 : index
    %204 = vector.load %arg2[%c0_243, %c0_244, %c13, %c0_245] : memref<1x8x20x17xbf16, #tpu.memory_space<vmem>>, vector<1x8x1x17xbf16>
    %205 = vector.shape_cast %204 : vector<1x8x1x17xbf16> to vector<8x17xbf16>
    %206 = vector.extract_strided_slice %205 {offsets = [0, 0], sizes = [8, 16], strides = [1, 1]} : vector<8x17xbf16> to vector<8x16xbf16>
    %c48_246 = arith.constant 48 : index
    %c0_247 = arith.constant 0 : index
    %207 = vector.load %arg6[%c48_246, %c0_247] : memref<128x16xbf16, #tpu.memory_space<vmem>>, vector<8x16xbf16>
    tpu.vector_store %arg6[%c48_246, %c0_247], %206 {strides = array<i32>} : memref<128x16xbf16, #tpu.memory_space<vmem>>, vector<8x16xbf16>,
    %208 = vector.extract_strided_slice %205 {offsets = [0, 1], sizes = [8, 16], strides = [1, 1]} : vector<8x17xbf16> to vector<8x16xbf16>
    %c56_248 = arith.constant 56 : index
    %c0_249 = arith.constant 0 : index
    %209 = vector.load %arg6[%c56_248, %c0_249] : memref<128x16xbf16, #tpu.memory_space<vmem>>, vector<8x16xbf16>
    tpu.vector_store %arg6[%c56_248, %c0_249], %208 {strides = array<i32>} : memref<128x16xbf16, #tpu.memory_space<vmem>>, vector<8x16xbf16>,
    %c0_250 = arith.constant 0 : index
    %c0_251 = arith.constant 0 : index
    %c14 = arith.constant 14 : index
    %c0_252 = arith.constant 0 : index
    %210 = vector.load %arg2[%c0_250, %c0_251, %c14, %c0_252] : memref<1x8x20x17xbf16, #tpu.memory_space<vmem>>, vector<1x8x1x17xbf16>
    %211 = vector.shape_cast %210 : vector<1x8x1x17xbf16> to vector<8x17xbf16>
    %212 = vector.extract_strided_slice %211 {offsets = [0, 0], sizes = [8, 16], strides = [1, 1]} : vector<8x17xbf16> to vector<8x16xbf16>
    %c64_253 = arith.constant 64 : index
    %c0_254 = arith.constant 0 : index
    %213 = vector.load %arg6[%c64_253, %c0_254] : memref<128x16xbf16, #tpu.memory_space<vmem>>, vector<8x16xbf16>
    tpu.vector_store %arg6[%c64_253, %c0_254], %212 {strides = array<i32>} : memref<128x16xbf16, #tpu.memory_space<vmem>>, vector<8x16xbf16>,
    %214 = vector.extract_strided_slice %211 {offsets = [0, 1], sizes = [8, 16], strides = [1, 1]} : vector<8x17xbf16> to vector<8x16xbf16>
    %c72_255 = arith.constant 72 : index
    %c0_256 = arith.constant 0 : index
    %215 = vector.load %arg6[%c72_255, %c0_256] : memref<128x16xbf16, #tpu.memory_space<vmem>>, vector<8x16xbf16>
    tpu.vector_store %arg6[%c72_255, %c0_256], %214 {strides = array<i32>} : memref<128x16xbf16, #tpu.memory_space<vmem>>, vector<8x16xbf16>,
    %c0_257 = arith.constant 0 : index
    %c0_258 = arith.constant 0 : index
    %216 = vector.load %arg6[%c0_257, %c0_258] : memref<128x16xbf16, #tpu.memory_space<vmem>>, vector<128x16xbf16>
    %cst_259 = arith.constant dense<0.000000e+00> : vector<16x16xf32>
    %217 = tpu.matmul %2, %216, %cst_259 {dimension_numbers = #tpu.dot_dimension_numbers<[1], [0], [0], [1], [0, 0, 1, 1], [], []>} : vector<16x128xbf16>, vector<128x16xbf16>, vector<16x16xf32> -> vector<16x16xf32>
    %218 = arith.addf %217, %5 : vector<16x16xf32>
    %c0_260 = arith.constant 0 : index
    %c0_261 = arith.constant 0 : index
    %c5_262 = arith.constant 5 : index
    %c0_263 = arith.constant 0 : index
    %219 = vector.load %arg5[%c0_260, %c0_261, %c5_262, %c0_263] : memref<1x16x8x16xf32, #tpu.memory_space<vmem>>, vector<1x16x1x16xf32>
    %220 = vector.shape_cast %219 : vector<1x16x1x16xf32> to vector<16x16xf32>
    %221 = vector.shape_cast %218 : vector<16x16xf32> to vector<1x16x1x16xf32>
    tpu.vector_store %arg5[%c0_260, %c0_261, %c5_262, %c0_263], %221 {strides = array<i32>} : memref<1x16x8x16xf32, #tpu.memory_space<vmem>>, vector<1x16x1x16xf32>,
    %c0_264 = arith.constant 0 : index
    %c0_265 = arith.constant 0 : index
    %c12_266 = arith.constant 12 : index
    %c0_267 = arith.constant 0 : index
    %222 = vector.load %arg2[%c0_264, %c0_265, %c12_266, %c0_267] : memref<1x8x20x17xbf16, #tpu.memory_space<vmem>>, vector<1x8x1x17xbf16>
    %223 = vector.shape_cast %222 : vector<1x8x1x17xbf16> to vector<8x17xbf16>
    %224 = vector.extract_strided_slice %223 {offsets = [0, 0], sizes = [8, 16], strides = [1, 1]} : vector<8x17xbf16> to vector<8x16xbf16>
    %c0_268 = arith.constant 0 : index
    %c0_269 = arith.constant 0 : index
    %225 = vector.load %arg6[%c0_268, %c0_269] : memref<128x16xbf16, #tpu.memory_space<vmem>>, vector<8x16xbf16>
    tpu.vector_store %arg6[%c0_268, %c0_269], %224 {strides = array<i32>} : memref<128x16xbf16, #tpu.memory_space<vmem>>, vector<8x16xbf16>,
    %226 = vector.extract_strided_slice %223 {offsets = [0, 1], sizes = [8, 16], strides = [1, 1]} : vector<8x17xbf16> to vector<8x16xbf16>
    %c8_270 = arith.constant 8 : index
    %c0_271 = arith.constant 0 : index
    %227 = vector.load %arg6[%c8_270, %c0_271] : memref<128x16xbf16, #tpu.memory_space<vmem>>, vector<8x16xbf16>
    tpu.vector_store %arg6[%c8_270, %c0_271], %226 {strides = array<i32>} : memref<128x16xbf16, #tpu.memory_space<vmem>>, vector<8x16xbf16>,
    %c0_272 = arith.constant 0 : index
    %c0_273 = arith.constant 0 : index
    %c13_274 = arith.constant 13 : index
    %c0_275 = arith.constant 0 : index
    %228 = vector.load %arg2[%c0_272, %c0_273, %c13_274, %c0_275] : memref<1x8x20x17xbf16, #tpu.memory_space<vmem>>, vector<1x8x1x17xbf16>
    %229 = vector.shape_cast %228 : vector<1x8x1x17xbf16> to vector<8x17xbf16>
    %230 = vector.extract_strided_slice %229 {offsets = [0, 0], sizes = [8, 16], strides = [1, 1]} : vector<8x17xbf16> to vector<8x16xbf16>
    %c16_276 = arith.constant 16 : index
    %c0_277 = arith.constant 0 : index
    %231 = vector.load %arg6[%c16_276, %c0_277] : memref<128x16xbf16, #tpu.memory_space<vmem>>, vector<8x16xbf16>
    tpu.vector_store %arg6[%c16_276, %c0_277], %230 {strides = array<i32>} : memref<128x16xbf16, #tpu.memory_space<vmem>>, vector<8x16xbf16>,
    %232 = vector.extract_strided_slice %229 {offsets = [0, 1], sizes = [8, 16], strides = [1, 1]} : vector<8x17xbf16> to vector<8x16xbf16>
    %c24_278 = arith.constant 24 : index
    %c0_279 = arith.constant 0 : index
    %233 = vector.load %arg6[%c24_278, %c0_279] : memref<128x16xbf16, #tpu.memory_space<vmem>>, vector<8x16xbf16>
    tpu.vector_store %arg6[%c24_278, %c0_279], %232 {strides = array<i32>} : memref<128x16xbf16, #tpu.memory_space<vmem>>, vector<8x16xbf16>,
    %c0_280 = arith.constant 0 : index
    %c0_281 = arith.constant 0 : index
    %c14_282 = arith.constant 14 : index
    %c0_283 = arith.constant 0 : index
    %234 = vector.load %arg2[%c0_280, %c0_281, %c14_282, %c0_283] : memref<1x8x20x17xbf16, #tpu.memory_space<vmem>>, vector<1x8x1x17xbf16>
    %235 = vector.shape_cast %234 : vector<1x8x1x17xbf16> to vector<8x17xbf16>
    %236 = vector.extract_strided_slice %235 {offsets = [0, 0], sizes = [8, 16], strides = [1, 1]} : vector<8x17xbf16> to vector<8x16xbf16>
    %c32_284 = arith.constant 32 : index
    %c0_285 = arith.constant 0 : index
    %237 = vector.load %arg6[%c32_284, %c0_285] : memref<128x16xbf16, #tpu.memory_space<vmem>>, vector<8x16xbf16>
    tpu.vector_store %arg6[%c32_284, %c0_285], %236 {strides = array<i32>} : memref<128x16xbf16, #tpu.memory_space<vmem>>, vector<8x16xbf16>,
    %238 = vector.extract_strided_slice %235 {offsets = [0, 1], sizes = [8, 16], strides = [1, 1]} : vector<8x17xbf16> to vector<8x16xbf16>
    %c40_286 = arith.constant 40 : index
    %c0_287 = arith.constant 0 : index
    %239 = vector.load %arg6[%c40_286, %c0_287] : memref<128x16xbf16, #tpu.memory_space<vmem>>, vector<8x16xbf16>
    tpu.vector_store %arg6[%c40_286, %c0_287], %238 {strides = array<i32>} : memref<128x16xbf16, #tpu.memory_space<vmem>>, vector<8x16xbf16>,
    %c0_288 = arith.constant 0 : index
    %c0_289 = arith.constant 0 : index
    %c15 = arith.constant 15 : index
    %c0_290 = arith.constant 0 : index
    %240 = vector.load %arg2[%c0_288, %c0_289, %c15, %c0_290] : memref<1x8x20x17xbf16, #tpu.memory_space<vmem>>, vector<1x8x1x17xbf16>
    %241 = vector.shape_cast %240 : vector<1x8x1x17xbf16> to vector<8x17xbf16>
    %242 = vector.extract_strided_slice %241 {offsets = [0, 0], sizes = [8, 16], strides = [1, 1]} : vector<8x17xbf16> to vector<8x16xbf16>
    %c48_291 = arith.constant 48 : index
    %c0_292 = arith.constant 0 : index
    %243 = vector.load %arg6[%c48_291, %c0_292] : memref<128x16xbf16, #tpu.memory_space<vmem>>, vector<8x16xbf16>
    tpu.vector_store %arg6[%c48_291, %c0_292], %242 {strides = array<i32>} : memref<128x16xbf16, #tpu.memory_space<vmem>>, vector<8x16xbf16>,
    %244 = vector.extract_strided_slice %241 {offsets = [0, 1], sizes = [8, 16], strides = [1, 1]} : vector<8x17xbf16> to vector<8x16xbf16>
    %c56_293 = arith.constant 56 : index
    %c0_294 = arith.constant 0 : index
    %245 = vector.load %arg6[%c56_293, %c0_294] : memref<128x16xbf16, #tpu.memory_space<vmem>>, vector<8x16xbf16>
    tpu.vector_store %arg6[%c56_293, %c0_294], %244 {strides = array<i32>} : memref<128x16xbf16, #tpu.memory_space<vmem>>, vector<8x16xbf16>,
    %c0_295 = arith.constant 0 : index
    %c0_296 = arith.constant 0 : index
    %c16_297 = arith.constant 16 : index
    %c0_298 = arith.constant 0 : index
    %246 = vector.load %arg2[%c0_295, %c0_296, %c16_297, %c0_298] : memref<1x8x20x17xbf16, #tpu.memory_space<vmem>>, vector<1x8x1x17xbf16>
    %247 = vector.shape_cast %246 : vector<1x8x1x17xbf16> to vector<8x17xbf16>
    %248 = vector.extract_strided_slice %247 {offsets = [0, 0], sizes = [8, 16], strides = [1, 1]} : vector<8x17xbf16> to vector<8x16xbf16>
    %c64_299 = arith.constant 64 : index
    %c0_300 = arith.constant 0 : index
    %249 = vector.load %arg6[%c64_299, %c0_300] : memref<128x16xbf16, #tpu.memory_space<vmem>>, vector<8x16xbf16>
    tpu.vector_store %arg6[%c64_299, %c0_300], %248 {strides = array<i32>} : memref<128x16xbf16, #tpu.memory_space<vmem>>, vector<8x16xbf16>,
    %250 = vector.extract_strided_slice %247 {offsets = [0, 1], sizes = [8, 16], strides = [1, 1]} : vector<8x17xbf16> to vector<8x16xbf16>
    %c72_301 = arith.constant 72 : index
    %c0_302 = arith.constant 0 : index
    %251 = vector.load %arg6[%c72_301, %c0_302] : memref<128x16xbf16, #tpu.memory_space<vmem>>, vector<8x16xbf16>
    tpu.vector_store %arg6[%c72_301, %c0_302], %250 {strides = array<i32>} : memref<128x16xbf16, #tpu.memory_space<vmem>>, vector<8x16xbf16>,
    %c0_303 = arith.constant 0 : index
    %c0_304 = arith.constant 0 : index
    %252 = vector.load %arg6[%c0_303, %c0_304] : memref<128x16xbf16, #tpu.memory_space<vmem>>, vector<128x16xbf16>
    %cst_305 = arith.constant dense<0.000000e+00> : vector<16x16xf32>
    %253 = tpu.matmul %2, %252, %cst_305 {dimension_numbers = #tpu.dot_dimension_numbers<[1], [0], [0], [1], [0, 0, 1, 1], [], []>} : vector<16x128xbf16>, vector<128x16xbf16>, vector<16x16xf32> -> vector<16x16xf32>
    %254 = arith.addf %253, %5 : vector<16x16xf32>
    %c0_306 = arith.constant 0 : index
    %c0_307 = arith.constant 0 : index
    %c6_308 = arith.constant 6 : index
    %c0_309 = arith.constant 0 : index
    %255 = vector.load %arg5[%c0_306, %c0_307, %c6_308, %c0_309] : memref<1x16x8x16xf32, #tpu.memory_space<vmem>>, vector<1x16x1x16xf32>
    %256 = vector.shape_cast %255 : vector<1x16x1x16xf32> to vector<16x16xf32>
    %257 = vector.shape_cast %254 : vector<16x16xf32> to vector<1x16x1x16xf32>
    tpu.vector_store %arg5[%c0_306, %c0_307, %c6_308, %c0_309], %257 {strides = array<i32>} : memref<1x16x8x16xf32, #tpu.memory_space<vmem>>, vector<1x16x1x16xf32>,
    %c0_310 = arith.constant 0 : index
    %c0_311 = arith.constant 0 : index
    %c14_312 = arith.constant 14 : index
    %c0_313 = arith.constant 0 : index
    %258 = vector.load %arg2[%c0_310, %c0_311, %c14_312, %c0_313] : memref<1x8x20x17xbf16, #tpu.memory_space<vmem>>, vector<1x8x1x17xbf16>
    %259 = vector.shape_cast %258 : vector<1x8x1x17xbf16> to vector<8x17xbf16>
    %260 = vector.extract_strided_slice %259 {offsets = [0, 0], sizes = [8, 16], strides = [1, 1]} : vector<8x17xbf16> to vector<8x16xbf16>
    %c0_314 = arith.constant 0 : index
    %c0_315 = arith.constant 0 : index
    %261 = vector.load %arg6[%c0_314, %c0_315] : memref<128x16xbf16, #tpu.memory_space<vmem>>, vector<8x16xbf16>
    tpu.vector_store %arg6[%c0_314, %c0_315], %260 {strides = array<i32>} : memref<128x16xbf16, #tpu.memory_space<vmem>>, vector<8x16xbf16>,
    %262 = vector.extract_strided_slice %259 {offsets = [0, 1], sizes = [8, 16], strides = [1, 1]} : vector<8x17xbf16> to vector<8x16xbf16>
    %c8_316 = arith.constant 8 : index
    %c0_317 = arith.constant 0 : index
    %263 = vector.load %arg6[%c8_316, %c0_317] : memref<128x16xbf16, #tpu.memory_space<vmem>>, vector<8x16xbf16>
    tpu.vector_store %arg6[%c8_316, %c0_317], %262 {strides = array<i32>} : memref<128x16xbf16, #tpu.memory_space<vmem>>, vector<8x16xbf16>,
    %c0_318 = arith.constant 0 : index
    %c0_319 = arith.constant 0 : index
    %c15_320 = arith.constant 15 : index
    %c0_321 = arith.constant 0 : index
    %264 = vector.load %arg2[%c0_318, %c0_319, %c15_320, %c0_321] : memref<1x8x20x17xbf16, #tpu.memory_space<vmem>>, vector<1x8x1x17xbf16>
    %265 = vector.shape_cast %264 : vector<1x8x1x17xbf16> to vector<8x17xbf16>
    %266 = vector.extract_strided_slice %265 {offsets = [0, 0], sizes = [8, 16], strides = [1, 1]} : vector<8x17xbf16> to vector<8x16xbf16>
    %c16_322 = arith.constant 16 : index
    %c0_323 = arith.constant 0 : index
    %267 = vector.load %arg6[%c16_322, %c0_323] : memref<128x16xbf16, #tpu.memory_space<vmem>>, vector<8x16xbf16>
    tpu.vector_store %arg6[%c16_322, %c0_323], %266 {strides = array<i32>} : memref<128x16xbf16, #tpu.memory_space<vmem>>, vector<8x16xbf16>,
    %268 = vector.extract_strided_slice %265 {offsets = [0, 1], sizes = [8, 16], strides = [1, 1]} : vector<8x17xbf16> to vector<8x16xbf16>
    %c24_324 = arith.constant 24 : index
    %c0_325 = arith.constant 0 : index
    %269 = vector.load %arg6[%c24_324, %c0_325] : memref<128x16xbf16, #tpu.memory_space<vmem>>, vector<8x16xbf16>
    tpu.vector_store %arg6[%c24_324, %c0_325], %268 {strides = array<i32>} : memref<128x16xbf16, #tpu.memory_space<vmem>>, vector<8x16xbf16>,
    %c0_326 = arith.constant 0 : index
    %c0_327 = arith.constant 0 : index
    %c16_328 = arith.constant 16 : index
    %c0_329 = arith.constant 0 : index
    %270 = vector.load %arg2[%c0_326, %c0_327, %c16_328, %c0_329] : memref<1x8x20x17xbf16, #tpu.memory_space<vmem>>, vector<1x8x1x17xbf16>
    %271 = vector.shape_cast %270 : vector<1x8x1x17xbf16> to vector<8x17xbf16>
    %272 = vector.extract_strided_slice %271 {offsets = [0, 0], sizes = [8, 16], strides = [1, 1]} : vector<8x17xbf16> to vector<8x16xbf16>
    %c32_330 = arith.constant 32 : index
    %c0_331 = arith.constant 0 : index
    %273 = vector.load %arg6[%c32_330, %c0_331] : memref<128x16xbf16, #tpu.memory_space<vmem>>, vector<8x16xbf16>
    tpu.vector_store %arg6[%c32_330, %c0_331], %272 {strides = array<i32>} : memref<128x16xbf16, #tpu.memory_space<vmem>>, vector<8x16xbf16>,
    %274 = vector.extract_strided_slice %271 {offsets = [0, 1], sizes = [8, 16], strides = [1, 1]} : vector<8x17xbf16> to vector<8x16xbf16>
    %c40_332 = arith.constant 40 : index
    %c0_333 = arith.constant 0 : index
    %275 = vector.load %arg6[%c40_332, %c0_333] : memref<128x16xbf16, #tpu.memory_space<vmem>>, vector<8x16xbf16>
    tpu.vector_store %arg6[%c40_332, %c0_333], %274 {strides = array<i32>} : memref<128x16xbf16, #tpu.memory_space<vmem>>, vector<8x16xbf16>,
    %c0_334 = arith.constant 0 : index
    %c0_335 = arith.constant 0 : index
    %c17 = arith.constant 17 : index
    %c0_336 = arith.constant 0 : index
    %276 = vector.load %arg2[%c0_334, %c0_335, %c17, %c0_336] : memref<1x8x20x17xbf16, #tpu.memory_space<vmem>>, vector<1x8x1x17xbf16>
    %277 = vector.shape_cast %276 : vector<1x8x1x17xbf16> to vector<8x17xbf16>
    %278 = vector.extract_strided_slice %277 {offsets = [0, 0], sizes = [8, 16], strides = [1, 1]} : vector<8x17xbf16> to vector<8x16xbf16>
    %c48_337 = arith.constant 48 : index
    %c0_338 = arith.constant 0 : index
    %279 = vector.load %arg6[%c48_337, %c0_338] : memref<128x16xbf16, #tpu.memory_space<vmem>>, vector<8x16xbf16>
    tpu.vector_store %arg6[%c48_337, %c0_338], %278 {strides = array<i32>} : memref<128x16xbf16, #tpu.memory_space<vmem>>, vector<8x16xbf16>,
    %280 = vector.extract_strided_slice %277 {offsets = [0, 1], sizes = [8, 16], strides = [1, 1]} : vector<8x17xbf16> to vector<8x16xbf16>
    %c56_339 = arith.constant 56 : index
    %c0_340 = arith.constant 0 : index
    %281 = vector.load %arg6[%c56_339, %c0_340] : memref<128x16xbf16, #tpu.memory_space<vmem>>, vector<8x16xbf16>
    tpu.vector_store %arg6[%c56_339, %c0_340], %280 {strides = array<i32>} : memref<128x16xbf16, #tpu.memory_space<vmem>>, vector<8x16xbf16>,
    %c0_341 = arith.constant 0 : index
    %c0_342 = arith.constant 0 : index
    %c18 = arith.constant 18 : index
    %c0_343 = arith.constant 0 : index
    %282 = vector.load %arg2[%c0_341, %c0_342, %c18, %c0_343] : memref<1x8x20x17xbf16, #tpu.memory_space<vmem>>, vector<1x8x1x17xbf16>
    %283 = vector.shape_cast %282 : vector<1x8x1x17xbf16> to vector<8x17xbf16>
    %284 = vector.extract_strided_slice %283 {offsets = [0, 0], sizes = [8, 16], strides = [1, 1]} : vector<8x17xbf16> to vector<8x16xbf16>
    %c64_344 = arith.constant 64 : index
    %c0_345 = arith.constant 0 : index
    %285 = vector.load %arg6[%c64_344, %c0_345] : memref<128x16xbf16, #tpu.memory_space<vmem>>, vector<8x16xbf16>
    tpu.vector_store %arg6[%c64_344, %c0_345], %284 {strides = array<i32>} : memref<128x16xbf16, #tpu.memory_space<vmem>>, vector<8x16xbf16>,
    %286 = vector.extract_strided_slice %283 {offsets = [0, 1], sizes = [8, 16], strides = [1, 1]} : vector<8x17xbf16> to vector<8x16xbf16>
    %c72_346 = arith.constant 72 : index
    %c0_347 = arith.constant 0 : index
    %287 = vector.load %arg6[%c72_346, %c0_347] : memref<128x16xbf16, #tpu.memory_space<vmem>>, vector<8x16xbf16>
    tpu.vector_store %arg6[%c72_346, %c0_347], %286 {strides = array<i32>} : memref<128x16xbf16, #tpu.memory_space<vmem>>, vector<8x16xbf16>,
    %c0_348 = arith.constant 0 : index
    %c0_349 = arith.constant 0 : index
    %288 = vector.load %arg6[%c0_348, %c0_349] : memref<128x16xbf16, #tpu.memory_space<vmem>>, vector<128x16xbf16>
    %cst_350 = arith.constant dense<0.000000e+00> : vector<16x16xf32>
    %289 = tpu.matmul %2, %288, %cst_350 {dimension_numbers = #tpu.dot_dimension_numbers<[1], [0], [0], [1], [0, 0, 1, 1], [], []>} : vector<16x128xbf16>, vector<128x16xbf16>, vector<16x16xf32> -> vector<16x16xf32>
    %290 = arith.addf %289, %5 : vector<16x16xf32>
    %c0_351 = arith.constant 0 : index
    %c0_352 = arith.constant 0 : index
    %c7_353 = arith.constant 7 : index
    %c0_354 = arith.constant 0 : index
    %291 = vector.load %arg5[%c0_351, %c0_352, %c7_353, %c0_354] : memref<1x16x8x16xf32, #tpu.memory_space<vmem>>, vector<1x16x1x16xf32>
    %292 = vector.shape_cast %291 : vector<1x16x1x16xf32> to vector<16x16xf32>
    %293 = vector.shape_cast %290 : vector<16x16xf32> to vector<1x16x1x16xf32>
    tpu.vector_store %arg5[%c0_351, %c0_352, %c7_353, %c0_354], %293 {strides = array<i32>} : memref<1x16x8x16xf32, #tpu.memory_space<vmem>>, vector<1x16x1x16xf32>,
    return
  }
  func.func @transform_0(%arg0: i32, %arg1: i32) -> (i32, i32, i32, i32) {
    %c0_i32 = arith.constant 0 : i32
    %c0_i32_0 = arith.constant 0 : i32
    %c0_i32_1 = arith.constant 0 : i32
    %c0_i32_2 = arith.constant 0 : i32
    return %arg0, %c0_i32, %c0_i32_0, %c0_i32_1 : i32, i32, i32, i32
  }
  func.func @transform_1(%arg0: i32, %arg1: i32) -> (i32, i32) {
    %c0_i32 = arith.constant 0 : i32
    %c0_i32_0 = arith.constant 0 : i32
    %c0_i32_1 = arith.constant 0 : i32
    return %c0_i32, %c0_i32_0 : i32, i32
  }
  func.func @transform_2(%arg0: i32, %arg1: i32) -> (i32, i32) {
    %c0_i32 = arith.constant 0 : i32
    %c0_i32_0 = arith.constant 0 : i32
    %c0_i32_1 = arith.constant 0 : i32
    return %c0_i32, %c0_i32_0 : i32, i32
  }
  func.func @transform_3(%arg0: i32, %arg1: i32) -> (i32, i32, i32, i32) {
    %c0_i32 = arith.constant 0 : i32
    %c0_i32_0 = arith.constant 0 : i32
    %c0_i32_1 = arith.constant 0 : i32
    return %arg0, %c0_i32, %arg1, %c0_i32_0 : i32, i32, i32, i32
  }
}

</mosaic_0001>

<bundles_post_ra>
// kernel: tpu_custom_call.1
= control target key start
LH: loop header
LB: loop body
LE: loop exit
PB: predicated region body
PF: predicated region fallthrough
CT: control target
= control target key end

     0   :  { %8 = vsyncpa [#allocation4], 0  ;;  %s7121_s0 = inlined_call_operand.vmem [shape: bf16[2,8,20,17], index: 0, kind: input, shape index: {}]   ;;  %s7122_s1 = inlined_call_operand.vmem [shape: bf16[16,128], index: 1, kind: input, shape index: {}]   ;;  %s7123_s2 = inlined_call_operand.vmem [shape: f32[16,1], index: 2, kind: input, shape index: {}]   ;;  %s7124_s3 = inlined_call_operand.hbm [shape: f32[2,16,8,16], index: 3, kind: output, shape index: {}]  }
   0x1   :  { %10 = vsyncpa [#allocation4 + $0x1], 0  ;;  %s5391_s12 = smov 0   ;;  %s5393_s13 = smov 0  }
   0x2   :  { %s5395_s14 = smov 0   ;;  %s5397_s15 = smov 0  }
   0x3   :  { %s5399_s16 = smov 0   ;;  %s5401_s17 = smov 0  }
   0x4 LB: > { %s4331_s18 = sadd.s32 4294967295, %s5361_s17   ;;  %s4332_s19 = sadd.s32 4294967294, %s5361_s17   ;;  %s5361_s17 = sphi %s5401_s17, %s16_s17   ;;  %s5357_s16 = sphi %s5399_s16, %s7163_s16   ;;  %s5353_s15 = sphi %s5397_s15, %s7162_s15   ;;  %s5349_s14 = sphi %s5395_s14, %s7161_s14   ;;  %s5345_s13 = sphi %s5393_s13, %s7160_s13   ;;  %s5341_s12 = sphi %s5391_s12, %s7159_s12  }
   0x5   : > { %s28_s20 = sadd.s32 1, %s5357_s16  ;;  %s105_s21 = sadd.s32 1, %s5349_s14 }
   0x6   : > { %p30_p0 = scmp.ge.s32.totalorder %s28_s20, 2  ;;  %p115_p1 = scmp.ne.s32.totalorder %s5349_s14, %s5345_s13 }
   0x7   : > { %p116_p2 = scmp.eq.s32.totalorder %s4331_s18, 1  ;;  %p121_p3 = scmp.ne.s32.totalorder %s5345_s13, %s5341_s12 }
   0x8   : > { %s7165_s20 = smov (%p30_p0, %s28_s20), 0  ;;  %p122_p5 = scmp.eq.s32.totalorder %s4332_s19, 1 }
   0x9   : > { %p5431_p4 = por %p116_p2, %p115_p1  ;;  %s100_s23 = ssub.s32 %s5357_s16, %s7165_s20 }
   0xa   : > { %p4335_p6 = scmp.ge.s32.totalorder %s5361_s17, 1  ;;  %p103_p7 = scmp.eq.s32.totalorder %s100_s23, 0 }
   0xb   : > { %p5438_p8 = por %p122_p5, %p121_p3  ;;  %p154_p9 = scmp.lt.s32.totalorder %s5361_s17, 3 }
   0xc   : > { %s5444_s25 = scalar_select %p103_p7, %s5349_s14, %s105_s21  }
   0xd   : > { %p155_p10 = pnand %p4335_p6, %p154_p9 }
   0xf   : > { %158 = sbr.rel (%p155_p10) target bundleno = 684 (0x2ac), region = 32 }
  0x16   : > { %p178_p11 = scmp.lt.s32.totalorder %s5353_s15, 1  ;;  %vm243_vm0 = vcmask 1041409   ;;  %vm246_vm1 = vcmask 1042434   ;;  %vm249_vm2 = vcmask 1043459   ;;  %vm252_vm3 = vcmask 1044484   ;;  %s5363_s4 = smov 127  }
  0x17   : > { %vm255_vm4 = vcmask 1045509   ;;  %vm258_vm5 = vcmask 1046534   ;;  %vm261_vm6 = vcmask 1047559   ;;  %vm265_vm7 = vcmask 125952   ;;  %s175_s11 = sand.u32 1, %s5345_s13   ;;  %s4664_s21 = sshll.u32 %s5353_s15, 11 }
  0x18   : > { %s179_s26 = scalar_select %p178_p11, %s5353_s15, 1  ;;  %vm293_vm8 = vcmask 130052   ;;  %vm184_vm9 = vcmask 130048   ;;  %vm5366_vm10 = vmmov 0   ;;  %vm710_vm11 = vcmask 122880  }
  0x19   : > { %s4336_s18 = sshll.u32 %s175_s11, 7  ;;  %s7075_s28 = scalar_lea.sflag [#allocation4], %s175_s11 }
  0x1a   : > { %s4897_s27 = smul.u32 96, %s179_s26  ;;  %s6696_s19 = scalar_lea.vmem [#allocation3], %s4336_s18 }
  0x1b   : > { %s4259_s23 = sshll.u32 %s6696_s19, 4  ;;  %s7063_s23 = int_to_ptr.vmem [resolvable:$true] %s4259_s23 }
  0x1c   : > { %s5451_s30 = scalar_lea.vmem %s7121_s0, %s4897_s27  ;;  %s7061_s27 = scalar_lea.hbm %s7124_s3, %s4664_s21 }
  0x1d   : > { %v4962_v0 = vld [vmem:[%s5451_s30] ss:$0 sps:$4 sm:$0x11]   ;;  %v4963_v1 = vld [vmem:[%s5451_s30 + $0xc] ss:$0 sps:$4 sm:$0x11]  }
  0x1e   : > { %v4964_v2 = vld [vmem:[%s5451_s30 + $0x18] ss:$0 sps:$4 sm:$0x11]   ;;  %v4965_v3 = vld [vmem:[%s5451_s30 + $0x24] ss:$0 sps:$4 sm:$0x11]   ;;  %v235_v6 = vunpack.c.l.b16 %v4963_v1  ;;  %v267_v7 = vunpack.c.h.b16 %v4962_v0  ;;  %v268_v8 = vunpack.c.h.b16 %v4963_v1  ;;  %v234_v9 = vunpack.c.l.b16 %v4962_v0 }
  0x1f   : > { %v4966_v4 = vld [vmem:[%s5451_s30 + $0x30] ss:$0 sps:$4 sm:$0x11]   ;;  %v4967_v5 = vld [vmem:[%s5451_s30 + $0x3c] ss:$0 sps:$4 sm:$0x11]   ;;  %v236_v12 = vunpack.c.l.b16 %v4964_v2  ;;  %v237_v13 = vunpack.c.l.b16 %v4965_v3  ;;  %v269_v14 = vunpack.c.h.b16 %v4964_v2  ;;  %v270_v15 = vunpack.c.h.b16 %v4965_v3 }
  0x20   : > { %v4968_v10 = vld [vmem:[%s5451_s30 + $0x48] ss:$0 sps:$4 sm:$0x11]   ;;  %v4969_v11 = vld [vmem:[%s5451_s30 + $0x54] ss:$0 sps:$4 sm:$0x11]   ;;  %v238_v16 = vunpack.c.l.b16 %v4966_v4  ;;  %v239_v17 = vunpack.c.l.b16 %v4967_v5  ;;  %v271_v19 = vunpack.c.h.b16 %v4966_v4  ;;  %v272_v26 = vunpack.c.h.b16 %v4967_v5 }
  0x21   : > { %v242_v18 = vrot.slane %v235_v6, 7  ;;  %v240_v20 = vunpack.c.l.b16 %v4968_v10  ;;  %v241_v21 = vunpack.c.l.b16 %v4969_v11  ;;  %v245_v22 = vrot.slane %v236_v12, 6  ;;  %v4970_v40 = vld [vmem:[%s5451_s30] ss:$0 sps:$4 sm:$0x22]   ;;  %s5283_s29 = scalar_lea.vmem %s7063_s23, 2048 }
  0x22   : > { %v248_v23 = vrot.slane %v237_v13, 5  ;;  %v251_v24 = vrot.slane %v238_v16, 4  ;;  %v254_v25 = vrot.slane %v239_v17, 3  ;;  %v273_v27 = vunpack.c.h.b16 %v4968_v10  ;;  %v4971_v43 = vld [vmem:[%s5451_s30 + $0xc] ss:$0 sps:$4 sm:$0x22]   ;;  %p5284_p12 = scmp.ne.s32.totalorder %s7063_s23, %s5283_s29 }
  0x23   : > { %v257_v28 = vrot.slane %v240_v20, 2  ;;  %v260_v29 = vrot.slane %v241_v21, 1  ;;  %v274_v30 = vunpack.c.h.b16 %v4969_v11  ;;  %v275_v31 = vrot.slane %v268_v8, 7  ;;  %v4972_v44 = vld [vmem:[%s5451_s30 + $0x18] ss:$0 sps:$4 sm:$0x22]  }
  0x24   : > { %v277_v32 = vrot.slane %v269_v14, 6  ;;  %v279_v33 = vrot.slane %v270_v15, 5  ;;  %v281_v34 = vrot.slane %v271_v19, 4  ;;  %v283_v35 = vrot.slane %v272_v26, 3  ;;  %p5285_p13 = pnand %p5284_p12, %p5431_p4 }
  0x25   : > { %v276_v36 = vsel %vm243_vm0, %v275_v31, %v267_v7  ;;  %v285_v37 = vrot.slane %v273_v27, 2  ;;  %v287_v38 = vrot.slane %v274_v30, 1  ;;  %v244_v39 = vsel %vm243_vm0, %v242_v18, %v234_v9  ;;  %v4973_v47 = vld [vmem:[%s5451_s30 + $0x24] ss:$0 sps:$4 sm:$0x22]  }
  0x26   : > { %v278_v41 = vsel %vm246_vm1, %v277_v32, %v276_v36  ;;  %v247_v42 = vsel %vm246_vm1, %v245_v22, %v244_v39  ;;  %v4974_v48 = vld [vmem:[%s5451_s30 + $0x30] ss:$0 sps:$4 sm:$0x22]   ;;  %v388_v49 = vunpack.c.l.b16 %v4970_v40  ;;  %v4975_v52 = vld [vmem:[%s5451_s30 + $0x3c] ss:$0 sps:$4 sm:$0x22]   ;;  %v389_v54 = vunpack.c.l.b16 %v4971_v43  ;;  %p5286_p0 = pneg %p5285_p13 }
  0x27   : > { %v280_v45 = vsel %vm249_vm2, %v279_v33, %v278_v41  ;;  %v250_v46 = vsel %vm249_vm2, %v248_v23, %v247_v42  ;;  %v4976_v53 = vld [vmem:[%s5451_s30 + $0x48] ss:$0 sps:$4 sm:$0x22]   ;;  %v390_v55 = vunpack.c.l.b16 %v4972_v44  ;;  %v4977_v58 = vld [vmem:[%s5451_s30 + $0x54] ss:$0 sps:$4 sm:$0x22]   ;;  %v391_v59 = vunpack.c.l.b16 %v4973_v47 }
  0x28   : > { %v282_v50 = vsel %vm252_vm3, %v281_v34, %v280_v45  ;;  %v253_v51 = vsel %vm252_vm3, %v251_v24, %v250_v46  ;;  %v392_v60 = vunpack.c.l.b16 %v4974_v48  ;;  %v393_v63 = vunpack.c.l.b16 %v4975_v52  ;;  %v4978_v14 = vld [vmem:[%s5451_s30] ss:$0 sps:$4 sm:$0x11]   ;;  %v4979_v15 = vld [vmem:[%s5451_s30 + $0xc] ss:$0 sps:$4 sm:$0x11]  }
  0x29   : > { %v284_v56 = vsel %vm255_vm4, %v283_v35, %v282_v50  ;;  %v256_v57 = vsel %vm255_vm4, %v254_v25, %v253_v51  ;;  %v394_v0 = vunpack.c.l.b16 %v4976_v53  ;;  %v395_v3 = vunpack.c.l.b16 %v4977_v58  ;;  %v4980_v17 = vld [vmem:[%s5451_s30 + $0x18] ss:$0 sps:$4 sm:$0x11]   ;;  %v4981_v18 = vld [vmem:[%s5451_s30 + $0x24] ss:$0 sps:$4 sm:$0x11]  }
  0x2a   : > { %v286_v61 = vsel %vm258_vm5, %v285_v37, %v284_v56  ;;  %v259_v62 = vsel %vm258_vm5, %v257_v28, %v256_v57  ;;  %v396_v4 = vrot.slane %v388_v49, 2  ;;  %v397_v7 = vrot.slane %v389_v54, 1  ;;  %v4982_v20 = vld [vmem:[%s5451_s30 + $0x30] ss:$0 sps:$4 sm:$0x11]  }
  0x2b   : > { %v288_v1 = vsel %vm261_vm6, %v287_v38, %v286_v61  ;;  %v262_v2 = vsel %vm261_vm6, %v260_v29, %v259_v62  ;;  %v400_v8 = vrot.slane %v391_v59, 7  ;;  %v402_v9 = vrot.slane %v392_v60, 6  ;;  %v4983_v21 = vld [vmem:[%s5451_s30 + $0x3c] ss:$0 sps:$4 sm:$0x11]  }
  0x2c   : > { %v289_v5 = vpack.c.b16 %v288_v1, %v288_v1  ;;  %v263_v6 = vpack.c.b16 %v262_v2, %v262_v2  ;;  %v404_v10 = vrot.slane %v393_v63, 5  ;;  %v406_v11 = vrot.slane %v394_v0, 4  ;;  %v4984_v25 = vld [vmem:[%s5451_s30 + $0x48] ss:$0 sps:$4 sm:$0x11]  }
  0x2d   : > { %v408_v12 = vrot.slane %v395_v3, 3  ;;  %v398_v13 = vsel %vm243_vm0, %v397_v7, %v396_v4  ;;  %v327_v22 = vunpack.c.l.b16 %v4978_v14  ;;  %v328_v23 = vunpack.c.l.b16 %v4979_v15  ;;  %v4985_v26 = vld [vmem:[%s5451_s30 + $0x54] ss:$0 sps:$4 sm:$0x11]  }
  0x2e   : > { %290 = vrot.lane.b32.xlu0 %v289_v5, %s5363_s4  ;;  %266 = vst.msk [vmem:[#allocation2] sm:$0xf] %vm265_vm7, %v263_v6  ;;  %v399_v16 = vsel %vm246_vm1, %v390_v55, %v398_v13  ;;  %v329_v27 = vunpack.c.l.b16 %v4980_v17  ;;  %v330_v28 = vunpack.c.l.b16 %v4981_v18  ;;  %v331_v30 = vunpack.c.l.b16 %v4982_v20  ;;  %v4986_v45 = vld [vmem:[%s5451_s30] ss:$0 sps:$4 sm:$0x22]  }
  0x2f   : > { %v401_v19 = vsel %vm249_vm2, %v400_v8, %v399_v16  ;;  %v332_v31 = vunpack.c.l.b16 %v4983_v21  ;;  %v335_v32 = vrot.slane %v327_v22, 1  ;;  %v333_v34 = vunpack.c.l.b16 %v4984_v25  ;;  %v4987_v48 = vld [vmem:[%s5451_s30 + $0xc] ss:$0 sps:$4 sm:$0x22]  }
  0x30   : > { %v403_v24 = vsel %vm252_vm3, %v402_v9, %v401_v19  ;;  %v334_v35 = vunpack.c.l.b16 %v4985_v26  ;;  %v337_v36 = vrot.slane %v329_v27, 7  ;;  %v339_v39 = vrot.slane %v330_v28, 6  ;;  %v4988_v50 = vld [vmem:[%s5451_s30 + $0x18] ss:$0 sps:$4 sm:$0x22]  }
  0x31   : > { %v405_v29 = vsel %vm255_vm4, %v404_v10, %v403_v24  ;;  %v336_v38 = vsel %vm243_vm0, %v328_v23, %v335_v32  ;;  %v341_v40 = vrot.slane %v331_v30, 5  ;;  %v343_v43 = vrot.slane %v332_v31, 4  ;;  %v4989_v51 = vld [vmem:[%s5451_s30 + $0x24] ss:$0 sps:$4 sm:$0x22]  }
  0x32   : > { %v407_v33 = vsel %vm258_vm5, %v406_v11, %v405_v29  ;;  %v338_v42 = vsel %vm246_vm1, %v337_v36, %v336_v38  ;;  %v345_v44 = vrot.slane %v333_v34, 3  ;;  %v347_v47 = vrot.slane %v334_v35, 2  ;;  %v4990_v54 = vld [vmem:[%s5451_s30 + $0x30] ss:$0 sps:$4 sm:$0x22]  }
  0x33   : > { %v409_v37 = vsel %vm261_vm6, %v408_v12, %v407_v33  ;;  %v340_v46 = vsel %vm249_vm2, %v339_v39, %v338_v42  ;;  %v759_v52 = vunpack.c.l.b16 %v4986_v45  ;;  %v4991_v55 = vld [vmem:[%s5451_s30 + $0x3c] ss:$0 sps:$4 sm:$0x22]   ;;  %v760_v56 = vunpack.c.l.b16 %v4987_v48  ;;  %v4992_v58 = vld [vmem:[%s5451_s30 + $0x48] ss:$0 sps:$4 sm:$0x22]  }
  0x34   : > { %v410_v41 = vpack.c.b16 %v409_v37, %v409_v37  ;;  %v342_v49 = vsel %vm252_vm3, %v341_v40, %v340_v46  ;;  %v4993_v59 = vld [vmem:[%s5451_s30 + $0x54] ss:$0 sps:$4 sm:$0x22]   ;;  %v761_v60 = vunpack.c.l.b16 %v4988_v50  ;;  %v762_v61 = vunpack.c.l.b16 %v4989_v51  ;;  %v4994_v13 = vld [vmem:[%s5451_s30] ss:$0 sps:$4 sm:$0x22]  }
  0x35   : > { %v344_v53 = vsel %vm255_vm4, %v343_v43, %v342_v49  ;;  %v763_v63 = vunpack.c.l.b16 %v4990_v54  ;;  %v764_v0 = vunpack.c.l.b16 %v4991_v55  ;;  %v767_v1 = vrot.slane %v759_v52, 2  ;;  %v4995_v14 = vld [vmem:[%s5451_s30 + $0xc] ss:$0 sps:$4 sm:$0x22]  }
  0x36   : > { %413 = vrot.lane.b32.xlu1 %v410_v41, %s5363_s4  ;;  %412 = vst.msk [vmem:[#allocation2 + $0x10] sm:$0xf] %vm265_vm7, %v410_v41  ;;  %v346_v57 = vsel %vm258_vm5, %v345_v44, %v344_v53  ;;  %v765_v3 = vunpack.c.l.b16 %v4992_v58  ;;  %v766_v4 = vunpack.c.l.b16 %v4993_v59  ;;  %v768_v5 = vrot.slane %v760_v56, 1  ;;  %v4996_v16 = vld [vmem:[%s5451_s30 + $0x18] ss:$0 sps:$4 sm:$0x22]  }
  0x37   : > { %v348_v62 = vsel %vm261_vm6, %v347_v47, %v346_v57  ;;  %v771_v6 = vrot.slane %v762_v61, 7  ;;  %v773_v7 = vrot.slane %v763_v63, 6  ;;  %v775_v8 = vrot.slane %v764_v0, 5  ;;  %v4997_v17 = vld [vmem:[%s5451_s30 + $0x24] ss:$0 sps:$4 sm:$0x22]  }
  0x38   : > { %v349_v2 = vpack.c.b16 %v348_v62, %v348_v62  ;;  %v769_v9 = vsel %vm243_vm0, %v768_v5, %v767_v1  ;;  %v777_v10 = vrot.slane %v765_v3, 4  ;;  %v779_v11 = vrot.slane %v766_v4, 3  ;;  %v4998_v19 = vld [vmem:[%s5451_s30 + $0x30] ss:$0 sps:$4 sm:$0x22]  }
  0x39   : > { %v770_v12 = vsel %vm246_vm1, %v761_v60, %v769_v9  ;;  %v4999_v20 = vld [vmem:[%s5451_s30 + $0x3c] ss:$0 sps:$4 sm:$0x22]   ;;  %v820_v21 = vunpack.c.l.b16 %v4994_v13  ;;  %v821_v22 = vunpack.c.l.b16 %v4995_v14  ;;  %v5000_v24 = vld [vmem:[%s5451_s30 + $0x48] ss:$0 sps:$4 sm:$0x22]   ;;  %v822_v26 = vunpack.c.l.b16 %v4996_v16 }
  0x3a   : > { %351 = vst.msk [vmem:[#allocation2 + $0x8] sm:$0xf] %vm265_vm7, %v349_v2  ;;  %352 = vrot.lane.b32.xlu0 %v349_v2, %s5363_s4  ;;  %v772_v15 = vsel %vm249_vm2, %v771_v6, %v770_v12  ;;  %v5001_v25 = vld [vmem:[%s5451_s30 + $0x54] ss:$0 sps:$4 sm:$0x22]   ;;  %v823_v27 = vunpack.c.l.b16 %v4997_v17  ;;  %v824_v29 = vunpack.c.l.b16 %v4998_v19  ;;  %v825_v30 = vunpack.c.l.b16 %v4999_v20 }
  0x3b   : > { %v774_v18 = vsel %vm252_vm3, %v773_v7, %v772_v15  ;;  %v828_v31 = vrot.slane %v820_v21, 3  ;;  %v826_v33 = vunpack.c.l.b16 %v5000_v24  ;;  %v827_v34 = vunpack.c.l.b16 %v5001_v25  ;;  %v5002_v44 = vld [vmem:[%s5451_s30] ss:$0 sps:$4 sm:$0x22]  }
  0x3c   : > { %v776_v23 = vsel %vm255_vm4, %v775_v8, %v774_v18  ;;  %v829_v35 = vrot.slane %v821_v22, 2  ;;  %v831_v37 = vrot.slane %v822_v26, 1  ;;  %v834_v38 = vrot.slane %v824_v29, 7  ;;  %v5003_v46 = vld [vmem:[%s5451_s30 + $0xc] ss:$0 sps:$4 sm:$0x22]  }
  0x3d   : > { %v778_v28 = vsel %vm258_vm5, %v777_v10, %v776_v23  ;;  %v836_v40 = vrot.slane %v825_v30, 6  ;;  %v838_v41 = vrot.slane %v826_v33, 5  ;;  %v840_v43 = vrot.slane %v827_v34, 4  ;;  %v5004_v47 = vld [vmem:[%s5451_s30 + $0x18] ss:$0 sps:$4 sm:$0x22]  }
  0x3e   : > { %v780_v32 = vsel %vm261_vm6, %v779_v11, %v778_v28  ;;  %v830_v39 = vsel %vm243_vm0, %v829_v35, %v828_v31  ;;  %v5005_v49 = vld [vmem:[%s5451_s30 + $0x24] ss:$0 sps:$4 sm:$0x22]   ;;  %v5006_v50 = vld [vmem:[%s5451_s30 + $0x30] ss:$0 sps:$4 sm:$0x22]   ;;  %v449_v51 = vunpack.c.l.b16 %v5002_v44  ;;  %v450_v55 = vunpack.c.l.b16 %v5003_v46 }
  0x3f   : > { %v5534_v36 = vpack.c.b16 %v780_v32, %v780_v32  ;;  %v832_v42 = vsel %vm246_vm1, %v831_v37, %v830_v39  ;;  %v5007_v53 = vld [vmem:[%s5451_s30 + $0x3c] ss:$0 sps:$4 sm:$0x22]   ;;  %v5008_v54 = vld [vmem:[%s5451_s30 + $0x48] ss:$0 sps:$4 sm:$0x22]   ;;  %v451_v56 = vunpack.c.l.b16 %v5004_v47  ;;  %v452_v59 = vunpack.c.l.b16 %v5005_v49 }
  0x40   : > { %v833_v45 = vsel %vm249_vm2, %v823_v27, %v832_v42  ;;  %v5009_v58 = vld [vmem:[%s5451_s30 + $0x54] ss:$0 sps:$4 sm:$0x22]   ;;  %v453_v60 = vunpack.c.l.b16 %v5006_v50  ;;  %v457_v61 = vrot.slane %v449_v51, 3  ;;  %v454_v63 = vunpack.c.l.b16 %v5007_v53 }
  0x41   : > { %784 = vrot.lane.b32.xlu1 %v5534_v36, %s5363_s4  ;;  %v835_v48 = vsel %vm252_vm3, %v834_v38, %v833_v45  ;;  %v455_v0 = vunpack.c.l.b16 %v5008_v54  ;;  %v458_v1 = vrot.slane %v450_v55, 2  ;;  %v456_v3 = vunpack.c.l.b16 %v5009_v58  ;;  %v5010_v11 = vld [vmem:[%s5451_s30] ss:$0 sps:$4 sm:$0x44]  }
  0x42   : > { %v837_v52 = vsel %vm255_vm4, %v836_v40, %v835_v48  ;;  %v460_v4 = vrot.slane %v451_v56, 1  ;;  %v463_v5 = vrot.slane %v453_v60, 7  ;;  %v465_v7 = vrot.slane %v454_v63, 6  ;;  %v5011_v13 = vld [vmem:[%s5451_s30 + $0xc] ss:$0 sps:$4 sm:$0x44]  }
  0x43   : > { %v839_v57 = vsel %vm258_vm5, %v838_v41, %v837_v52  ;;  %v459_v6 = vsel %vm243_vm0, %v458_v1, %v457_v61  ;;  %v467_v8 = vrot.slane %v455_v0, 5  ;;  %v469_v10 = vrot.slane %v456_v3, 4  ;;  %v5012_v14 = vld [vmem:[%s5451_s30 + $0x18] ss:$0 sps:$4 sm:$0x44]  }
  0x44   : > { %v841_v62 = vsel %vm261_vm6, %v840_v43, %v839_v57  ;;  %v461_v9 = vsel %vm246_vm1, %v460_v4, %v459_v6  ;;  %v5013_v16 = vld [vmem:[%s5451_s30 + $0x24] ss:$0 sps:$4 sm:$0x44]   ;;  %v5014_v17 = vld [vmem:[%s5451_s30 + $0x30] ss:$0 sps:$4 sm:$0x44]   ;;  %v881_v18 = vunpack.c.l.b16 %v5010_v11  ;;  %v882_v22 = vunpack.c.l.b16 %v5011_v13 }
  0x45   : > { %v5553_v2 = vpack.c.b16 %v841_v62, %v841_v62  ;;  %v462_v12 = vsel %vm249_vm2, %v452_v59, %v461_v9  ;;  %v5015_v20 = vld [vmem:[%s5451_s30 + $0x3c] ss:$0 sps:$4 sm:$0x44]   ;;  %v5016_v21 = vld [vmem:[%s5451_s30 + $0x48] ss:$0 sps:$4 sm:$0x44]   ;;  %v883_v23 = vunpack.c.l.b16 %v5012_v14  ;;  %v884_v26 = vunpack.c.l.b16 %v5013_v16 }
  0x46   : > { %v464_v15 = vsel %vm252_vm3, %v463_v5, %v462_v12  ;;  %v5017_v25 = vld [vmem:[%s5451_s30 + $0x54] ss:$0 sps:$4 sm:$0x44]   ;;  %v885_v27 = vunpack.c.l.b16 %v5014_v17  ;;  %v889_v28 = vrot.slane %v881_v18, 4  ;;  %v886_v30 = vunpack.c.l.b16 %v5015_v20 }
  0x47   : > { %845 = vrot.lane.b32.xlu1 %v5553_v2, %s5363_s4  ;;  %v466_v19 = vsel %vm255_vm4, %v465_v7, %v464_v15  ;;  %v887_v31 = vunpack.c.l.b16 %v5016_v21  ;;  %v890_v32 = vrot.slane %v882_v22, 3  ;;  %v888_v34 = vunpack.c.l.b16 %v5017_v25  ;;  %v5018_v43 = vld [vmem:[%s5451_s30] ss:$0 sps:$4 sm:$0x44]  }
  0x48   : > { %v468_v24 = vsel %vm258_vm5, %v467_v8, %v466_v19  ;;  %v892_v35 = vrot.slane %v883_v23, 2  ;;  %v894_v37 = vrot.slane %v884_v26, 1  ;;  %v897_v39 = vrot.slane %v886_v30, 7  ;;  %v5019_v45 = vld [vmem:[%s5451_s30 + $0xc] ss:$0 sps:$4 sm:$0x44]  }
  0x49   : > { %v470_v29 = vsel %vm261_vm6, %v469_v10, %v468_v24  ;;  %v891_v38 = vsel %vm243_vm0, %v890_v32, %v889_v28  ;;  %v899_v40 = vrot.slane %v887_v31, 6  ;;  %v901_v42 = vrot.slane %v888_v34, 5  ;;  %v5020_v46 = vld [vmem:[%s5451_s30 + $0x18] ss:$0 sps:$4 sm:$0x44]  }
  0x4a   : > { %v471_v33 = vpack.c.b16 %v470_v29, %v470_v29  ;;  %v893_v41 = vsel %vm246_vm1, %v892_v35, %v891_v38  ;;  %v5021_v48 = vld [vmem:[%s5451_s30 + $0x24] ss:$0 sps:$4 sm:$0x44]   ;;  %v5022_v49 = vld [vmem:[%s5451_s30 + $0x30] ss:$0 sps:$4 sm:$0x44]   ;;  %v510_v50 = vunpack.c.l.b16 %v5018_v43  ;;  %v511_v54 = vunpack.c.l.b16 %v5019_v45 }
  0x4b   : > { %v895_v44 = vsel %vm249_vm2, %v894_v37, %v893_v41  ;;  %v5023_v52 = vld [vmem:[%s5451_s30 + $0x3c] ss:$0 sps:$4 sm:$0x44]   ;;  %v5024_v53 = vld [vmem:[%s5451_s30 + $0x48] ss:$0 sps:$4 sm:$0x44]   ;;  %v512_v55 = vunpack.c.l.b16 %v5020_v46  ;;  %v513_v58 = vunpack.c.l.b16 %v5021_v48  ;;  %v514_v59 = vunpack.c.l.b16 %v5022_v49 }
  0x4c   : > { %473 = vst.msk [vmem:[#allocation2 + $0x18] sm:$0xf] %vm265_vm7, %v471_v33  ;;  %474 = vrot.lane.b32.xlu0 %v471_v33, %s5363_s4  ;;  %v896_v47 = vsel %vm252_vm3, %v885_v27, %v895_v44  ;;  %v5025_v57 = vld [vmem:[%s5451_s30 + $0x54] ss:$0 sps:$4 sm:$0x44]   ;;  %v518_v60 = vrot.slane %v510_v50, 4  ;;  %v515_v62 = vunpack.c.l.b16 %v5023_v52  ;;  %v516_v63 = vunpack.c.l.b16 %v5024_v53 }
  0x4d   : > { %v898_v51 = vsel %vm255_vm4, %v897_v39, %v896_v47  ;;  %v519_v0 = vrot.slane %v511_v54, 3  ;;  %v517_v3 = vunpack.c.l.b16 %v5025_v57  ;;  %v521_v4 = vrot.slane %v512_v55, 2  ;;  %v5026_v11 = vld [vmem:[%s5451_s30] ss:$0 sps:$4 sm:$0x44]  }
  0x4e   : > { %v900_v56 = vsel %vm258_vm5, %v899_v40, %v898_v51  ;;  %v523_v5 = vrot.slane %v513_v58, 1  ;;  %v526_v7 = vrot.slane %v515_v62, 7  ;;  %v528_v8 = vrot.slane %v516_v63, 6  ;;  %v5027_v13 = vld [vmem:[%s5451_s30 + $0xc] ss:$0 sps:$4 sm:$0x44]  }
  0x4f   : > { %v902_v61 = vsel %vm261_vm6, %v901_v42, %v900_v56  ;;  %v520_v6 = vsel %vm243_vm0, %v519_v0, %v518_v60  ;;  %v530_v10 = vrot.slane %v517_v3, 5  ;;  %v5028_v14 = vld [vmem:[%s5451_s30 + $0x18] ss:$0 sps:$4 sm:$0x44]   ;;  %v942_v18 = vunpack.c.l.b16 %v5026_v11 }
  0x50   : > { %v5589_v1 = vpack.c.b16 %v902_v61, %v902_v61  ;;  %v522_v9 = vsel %vm246_vm1, %v521_v4, %v520_v6  ;;  %v5029_v16 = vld [vmem:[%s5451_s30 + $0x24] ss:$0 sps:$4 sm:$0x44]   ;;  %v5030_v17 = vld [vmem:[%s5451_s30 + $0x30] ss:$0 sps:$4 sm:$0x44]   ;;  %v943_v22 = vunpack.c.l.b16 %v5027_v13  ;;  %v944_v23 = vunpack.c.l.b16 %v5028_v14 }
  0x51   : > { %v524_v12 = vsel %vm249_vm2, %v523_v5, %v522_v9  ;;  %v5031_v20 = vld [vmem:[%s5451_s30 + $0x3c] ss:$0 sps:$4 sm:$0x44]   ;;  %v5032_v21 = vld [vmem:[%s5451_s30 + $0x48] ss:$0 sps:$4 sm:$0x44]   ;;  %v945_v26 = vunpack.c.l.b16 %v5029_v16  ;;  %v946_v27 = vunpack.c.l.b16 %v5030_v17 }
  0x52   : > { %906 = vrot.lane.b32.xlu1 %v5589_v1, %s5363_s4  ;;  %v525_v15 = vsel %vm252_vm3, %v514_v59, %v524_v12  ;;  %v5033_v25 = vld [vmem:[%s5451_s30 + $0x54] ss:$0 sps:$4 sm:$0x44]   ;;  %v950_v28 = vrot.slane %v942_v18, 5  ;;  %v948_v30 = vunpack.c.l.b16 %v5032_v21  ;;  %v951_v31 = vrot.slane %v943_v22, 4 }
  0x53   : > { %v527_v19 = vsel %vm255_vm4, %v526_v7, %v525_v15  ;;  %v949_v33 = vunpack.c.l.b16 %v5033_v25  ;;  %v953_v34 = vrot.slane %v944_v23, 3  ;;  %v955_v35 = vrot.slane %v945_v26, 2  ;;  %v5034_v43 = vld [vmem:[%s5451_s30] ss:$0 sps:$4 sm:$0x88]  }
  0x54   : > { %v529_v24 = vsel %vm258_vm5, %v528_v8, %v527_v19  ;;  %v947_v37 = vunpack.c.l.b16 %v5031_v20  ;;  %v952_v38 = vsel %vm243_vm0, %v951_v31, %v950_v28  ;;  %v957_v39 = vrot.slane %v946_v27, 1  ;;  %v5035_v45 = vld [vmem:[%s5451_s30 + $0xc] ss:$0 sps:$4 sm:$0x88]  }
  0x55   : > { %v531_v29 = vsel %vm261_vm6, %v530_v10, %v529_v24  ;;  %v960_v40 = vrot.slane %v948_v30, 7  ;;  %v954_v41 = vsel %vm246_vm1, %v953_v34, %v952_v38  ;;  %v962_v42 = vrot.slane %v949_v33, 6  ;;  %v5036_v46 = vld [vmem:[%s5451_s30 + $0x18] ss:$0 sps:$4 sm:$0x88]  }
  0x56   : > { %v532_v32 = vpack.c.b16 %v531_v29, %v531_v29  ;;  %v956_v44 = vsel %vm249_vm2, %v955_v35, %v954_v41  ;;  %v5037_v48 = vld [vmem:[%s5451_s30 + $0x24] ss:$0 sps:$4 sm:$0x88]   ;;  %v5038_v49 = vld [vmem:[%s5451_s30 + $0x30] ss:$0 sps:$4 sm:$0x88]   ;;  %v1003_v50 = vunpack.c.l.b16 %v5034_v43  ;;  %v1004_v54 = vunpack.c.l.b16 %v5035_v45 }
  0x57   : > { %v958_v47 = vsel %vm252_vm3, %v957_v39, %v956_v44  ;;  %v5039_v52 = vld [vmem:[%s5451_s30 + $0x3c] ss:$0 sps:$4 sm:$0x88]   ;;  %v5040_v53 = vld [vmem:[%s5451_s30 + $0x48] ss:$0 sps:$4 sm:$0x88]   ;;  %v1005_v55 = vunpack.c.l.b16 %v5036_v46  ;;  %v1006_v58 = vunpack.c.l.b16 %v5037_v48  ;;  %v1007_v59 = vunpack.c.l.b16 %v5038_v49 }
  0x58   : > { %534 = vst.msk [vmem:[#allocation2 + $0x20] sm:$0xf] %vm265_vm7, %v532_v32  ;;  %535 = vrot.lane.b32.xlu0 %v532_v32, %s5363_s4  ;;  %v959_v51 = vsel %vm255_vm4, %v947_v37, %v958_v47  ;;  %v5041_v57 = vld [vmem:[%s5451_s30 + $0x54] ss:$0 sps:$4 sm:$0x88]   ;;  %v1011_v60 = vrot.slane %v1003_v50, 6  ;;  %v1008_v62 = vunpack.c.l.b16 %v5039_v52  ;;  %v1009_v9 = vunpack.c.l.b16 %v5040_v53 }
  0x59   : > { %v961_v56 = vsel %vm258_vm5, %v960_v40, %v959_v51  ;;  %v1012_v63 = vrot.slane %v1004_v54, 5  ;;  %v1010_v3 = vunpack.c.l.b16 %v5041_v57  ;;  %v1014_v4 = vrot.slane %v1005_v55, 4  ;;  %v5042_v12 = vld [vmem:[%s5451_s30] ss:$0 sps:$4 sm:$0x44]  }
  0x5a   : > { %v963_v61 = vsel %vm261_vm6, %v962_v42, %v961_v56  ;;  %v1016_v5 = vrot.slane %v1006_v58, 3  ;;  %v1018_v7 = vrot.slane %v1007_v59, 2  ;;  %v1020_v8 = vrot.slane %v1008_v62, 1  ;;  %v5043_v14 = vld [vmem:[%s5451_s30 + $0xc] ss:$0 sps:$4 sm:$0x44]  }
  0x5b   : > { %v5625_v0 = vpack.c.b16 %v963_v61, %v963_v61  ;;  %v1013_v6 = vsel %vm243_vm0, %v1012_v63, %v1011_v60  ;;  %v1023_v11 = vrot.slane %v1010_v3, 7  ;;  %v5044_v15 = vld [vmem:[%s5451_s30 + $0x18] ss:$0 sps:$4 sm:$0x44]   ;;  %v1245_v19 = vunpack.c.l.b16 %v5042_v12 }
  0x5c   : > { %v1015_v10 = vsel %vm246_vm1, %v1014_v4, %v1013_v6  ;;  %v5045_v17 = vld [vmem:[%s5451_s30 + $0x24] ss:$0 sps:$4 sm:$0x44]   ;;  %v5046_v18 = vld [vmem:[%s5451_s30 + $0x30] ss:$0 sps:$4 sm:$0x44]   ;;  %v1246_v23 = vunpack.c.l.b16 %v5043_v14  ;;  %v1247_v24 = vunpack.c.l.b16 %v5044_v15 }
  0x5d   : > { %967 = vrot.lane.b32.xlu0 %v5625_v0, %s5363_s4  ;;  %v1017_v13 = vsel %vm249_vm2, %v1016_v5, %v1015_v10  ;;  %v5047_v21 = vld [vmem:[%s5451_s30 + $0x3c] ss:$0 sps:$4 sm:$0x44]   ;;  %v5048_v22 = vld [vmem:[%s5451_s30 + $0x48] ss:$0 sps:$4 sm:$0x44]   ;;  %v1248_v27 = vunpack.c.l.b16 %v5045_v17  ;;  %v1249_v28 = vunpack.c.l.b16 %v5046_v18 }
  0x5e   : > { %v1019_v16 = vsel %vm252_vm3, %v1018_v7, %v1017_v13  ;;  %v5049_v26 = vld [vmem:[%s5451_s30 + $0x54] ss:$0 sps:$4 sm:$0x44]   ;;  %v1253_v29 = vrot.slane %v1245_v19, 4  ;;  %v1250_v31 = vunpack.c.l.b16 %v5047_v21  ;;  %v1251_v32 = vunpack.c.l.b16 %v5048_v22 }
  0x5f   : > { %v1021_v20 = vsel %vm255_vm4, %v1020_v8, %v1019_v16  ;;  %v1254_v33 = vrot.slane %v1246_v23, 3  ;;  %v1252_v35 = vunpack.c.l.b16 %v5049_v26  ;;  %v1256_v37 = vrot.slane %v1247_v24, 2  ;;  %v5050_v44 = vld [vmem:[%s5451_s30] ss:$0 sps:$4 sm:$0x44]  }
  0x60   : > { %v1022_v25 = vsel %vm258_vm5, %v1009_v9, %v1021_v20  ;;  %v1258_v38 = vrot.slane %v1248_v27, 1  ;;  %v1261_v40 = vrot.slane %v1250_v31, 7  ;;  %v1263_v41 = vrot.slane %v1251_v32, 6  ;;  %v5051_v46 = vld [vmem:[%s5451_s30 + $0xc] ss:$0 sps:$4 sm:$0x44]  }
  0x61   : > { %v1024_v30 = vsel %vm261_vm6, %v1023_v11, %v1022_v25  ;;  %v1255_v39 = vsel %vm243_vm0, %v1254_v33, %v1253_v29  ;;  %v1265_v43 = vrot.slane %v1252_v35, 5  ;;  %v5052_v47 = vld [vmem:[%s5451_s30 + $0x18] ss:$0 sps:$4 sm:$0x44]   ;;  %v1306_v51 = vunpack.c.l.b16 %v5050_v44 }
  0x62   : > { %v5644_v34 = vpack.c.b16 %v1024_v30, %v1024_v30  ;;  %v1257_v42 = vsel %vm246_vm1, %v1256_v37, %v1255_v39  ;;  %v5053_v49 = vld [vmem:[%s5451_s30 + $0x24] ss:$0 sps:$4 sm:$0x44]   ;;  %v5054_v50 = vld [vmem:[%s5451_s30 + $0x30] ss:$0 sps:$4 sm:$0x44]   ;;  %v1307_v55 = vunpack.c.l.b16 %v5051_v46  ;;  %v1308_v56 = vunpack.c.l.b16 %v5052_v47 }
  0x63   : > { %v1259_v45 = vsel %vm249_vm2, %v1258_v38, %v1257_v42  ;;  %v5055_v53 = vld [vmem:[%s5451_s30 + $0x3c] ss:$0 sps:$4 sm:$0x44]   ;;  %v5056_v54 = vld [vmem:[%s5451_s30 + $0x48] ss:$0 sps:$4 sm:$0x44]   ;;  %v1309_v59 = vunpack.c.l.b16 %v5053_v49  ;;  %v1310_v60 = vunpack.c.l.b16 %v5054_v50 }
  0x64   : > { %1028 = vrot.lane.b32.xlu1 %v5644_v34, %s5363_s4  ;;  %v1260_v48 = vsel %vm252_vm3, %v1249_v28, %v1259_v45  ;;  %v5057_v58 = vld [vmem:[%s5451_s30 + $0x54] ss:$0 sps:$4 sm:$0x44]   ;;  %v1314_v61 = vrot.slane %v1306_v51, 5  ;;  %v1312_v63 = vunpack.c.l.b16 %v5056_v54  ;;  %v1315_v3 = vrot.slane %v1307_v55, 4 }
  0x65   : > { %v1262_v52 = vsel %vm255_vm4, %v1261_v40, %v1260_v48  ;;  %v1313_v5 = vunpack.c.l.b16 %v5057_v58  ;;  %v1317_v6 = vrot.slane %v1308_v56, 3  ;;  %v1319_v7 = vrot.slane %v1309_v59, 2  ;;  %v5058_v14 = vld [vmem:[%s5451_s30] ss:$0 sps:$4 sm:$0x88]  }
  0x66   : > { %v1264_v57 = vsel %vm258_vm5, %v1263_v41, %v1262_v52  ;;  %v1311_v8 = vunpack.c.l.b16 %v5055_v53  ;;  %v1316_v9 = vsel %vm243_vm0, %v1315_v3, %v1314_v61  ;;  %v1321_v10 = vrot.slane %v1310_v60, 1  ;;  %v5059_v16 = vld [vmem:[%s5451_s30 + $0xc] ss:$0 sps:$4 sm:$0x88]  }
  0x67   : > { %v1266_v62 = vsel %vm261_vm6, %v1265_v43, %v1264_v57  ;;  %v1324_v11 = vrot.slane %v1312_v63, 7  ;;  %v1318_v12 = vsel %vm246_vm1, %v1317_v6, %v1316_v9  ;;  %v1326_v13 = vrot.slane %v1313_v5, 6  ;;  %v5060_v17 = vld [vmem:[%s5451_s30 + $0x18] ss:$0 sps:$4 sm:$0x88]  }
  0x68   : > { %v5663_v4 = vpack.c.b16 %v1266_v62, %v1266_v62  ;;  %v1320_v15 = vsel %vm249_vm2, %v1319_v7, %v1318_v12  ;;  %v5061_v19 = vld [vmem:[%s5451_s30 + $0x24] ss:$0 sps:$4 sm:$0x88]   ;;  %v5062_v20 = vld [vmem:[%s5451_s30 + $0x30] ss:$0 sps:$4 sm:$0x88]   ;;  %v1754_v21 = vunpack.c.l.b16 %v5058_v14  ;;  %v1755_v25 = vunpack.c.l.b16 %v5059_v16 }
  0x69   : > { %v1322_v18 = vsel %vm252_vm3, %v1321_v10, %v1320_v15  ;;  %v5063_v23 = vld [vmem:[%s5451_s30 + $0x3c] ss:$0 sps:$4 sm:$0x88]   ;;  %v5064_v24 = vld [vmem:[%s5451_s30 + $0x48] ss:$0 sps:$4 sm:$0x88]   ;;  %v1756_v26 = vunpack.c.l.b16 %v5060_v17  ;;  %v1757_v29 = vunpack.c.l.b16 %v5061_v19  ;;  %v1758_v30 = vunpack.c.l.b16 %v5062_v20 }
  0x6a   : > { %1270 = vrot.lane.b32.xlu0 %v5663_v4, %s5363_s4  ;;  %v1323_v22 = vsel %vm255_vm4, %v1311_v8, %v1322_v18  ;;  %v5065_v28 = vld [vmem:[%s5451_s30 + $0x54] ss:$0 sps:$4 sm:$0x88]   ;;  %v1762_v31 = vrot.slane %v1754_v21, 6  ;;  %v1759_v33 = vunpack.c.l.b16 %v5063_v23  ;;  %v1763_v35 = vrot.slane %v1755_v25, 5 }
  0x6b   : > { %v1325_v27 = vsel %vm258_vm5, %v1324_v11, %v1323_v22  ;;  %v1761_v38 = vunpack.c.l.b16 %v5065_v28  ;;  %v1765_v39 = vrot.slane %v1756_v26, 4  ;;  %v1767_v40 = vrot.slane %v1757_v29, 3  ;;  %v5066_v47 = vld [vmem:[%s5451_s30] ss:$0 sps:$4 sm:$0x88]  }
  0x6c   : > { %v1327_v32 = vsel %vm261_vm6, %v1326_v13, %v1325_v27  ;;  %v1764_v41 = vsel %vm243_vm0, %v1763_v35, %v1762_v31  ;;  %v1769_v42 = vrot.slane %v1758_v30, 2  ;;  %v1771_v43 = vrot.slane %v1759_v33, 1  ;;  %v5067_v49 = vld [vmem:[%s5451_s30 + $0xc] ss:$0 sps:$4 sm:$0x88]  }
  0x6d   : > { %v5682_v37 = vpack.c.b16 %v1327_v32, %v1327_v32  ;;  %v1760_v44 = vunpack.c.l.b16 %v5064_v24  ;;  %v1766_v45 = vsel %vm246_vm1, %v1765_v39, %v1764_v41  ;;  %v1774_v46 = vrot.slane %v1761_v38, 7  ;;  %v5068_v50 = vld [vmem:[%s5451_s30 + $0x18] ss:$0 sps:$4 sm:$0x88]  }
  0x6e   : > { %v1768_v48 = vsel %vm249_vm2, %v1767_v40, %v1766_v45  ;;  %v5069_v52 = vld [vmem:[%s5451_s30 + $0x24] ss:$0 sps:$4 sm:$0x88]   ;;  %v5070_v53 = vld [vmem:[%s5451_s30 + $0x30] ss:$0 sps:$4 sm:$0x88]   ;;  %v1367_v54 = vunpack.c.l.b16 %v5066_v47  ;;  %v1368_v58 = vunpack.c.l.b16 %v5067_v49  ;;  %v1369_v59 = vunpack.c.l.b16 %v5068_v50 }
  0x6f   : > { %1331 = vrot.lane.b32.xlu1 %v5682_v37, %s5363_s4  ;;  %v1770_v51 = vsel %vm252_vm3, %v1769_v42, %v1768_v48  ;;  %v5071_v56 = vld [vmem:[%s5451_s30 + $0x3c] ss:$0 sps:$4 sm:$0x88]   ;;  %v5072_v57 = vld [vmem:[%s5451_s30 + $0x48] ss:$0 sps:$4 sm:$0x88]   ;;  %v1370_v62 = vunpack.c.l.b16 %v5069_v52  ;;  %v1371_v63 = vunpack.c.l.b16 %v5070_v53 }
  0x70   : > { %v1772_v55 = vsel %vm255_vm4, %v1771_v43, %v1770_v51  ;;  %v5073_v61 = vld [vmem:[%s5451_s30 + $0x54] ss:$0 sps:$4 sm:$0x88]   ;;  %v1375_v3 = vrot.slane %v1367_v54, 6  ;;  %v1372_v6 = vunpack.c.l.b16 %v5071_v56  ;;  %v1376_v7 = vrot.slane %v1368_v58, 5 }
  0x71   : > { %v1773_v60 = vsel %vm258_vm5, %v1760_v44, %v1772_v55  ;;  %v1374_v9 = vunpack.c.l.b16 %v5073_v61  ;;  %v1378_v10 = vrot.slane %v1369_v59, 4  ;;  %v1380_v11 = vrot.slane %v1370_v62, 3  ;;  %v5074_v18 = vld [vmem:[%s5451_s30] ss:$0 sps:$4 sm:$0x88]  }
  0x72   : > { %v1775_v5 = vsel %vm261_vm6, %v1774_v46, %v1773_v60  ;;  %v1377_v12 = vsel %vm243_vm0, %v1376_v7, %v1375_v3  ;;  %v1382_v13 = vrot.slane %v1371_v63, 2  ;;  %v1384_v14 = vrot.slane %v1372_v6, 1  ;;  %v5075_v20 = vld [vmem:[%s5451_s30 + $0xc] ss:$0 sps:$4 sm:$0x88]  }
  0x73   : > { %v5701_v8 = vpack.c.b16 %v1775_v5, %v1775_v5  ;;  %v1373_v15 = vunpack.c.l.b16 %v5072_v57  ;;  %v1379_v16 = vsel %vm246_vm1, %v1378_v10, %v1377_v12  ;;  %v1387_v17 = vrot.slane %v1374_v9, 7  ;;  %v5076_v21 = vld [vmem:[%s5451_s30 + $0x18] ss:$0 sps:$4 sm:$0x88]  }
  0x74   : > { %v1381_v19 = vsel %vm249_vm2, %v1380_v11, %v1379_v16  ;;  %v5077_v23 = vld [vmem:[%s5451_s30 + $0x24] ss:$0 sps:$4 sm:$0x88]   ;;  %v5078_v24 = vld [vmem:[%s5451_s30 + $0x30] ss:$0 sps:$4 sm:$0x88]   ;;  %v1815_v25 = vunpack.c.l.b16 %v5074_v18  ;;  %v1816_v29 = vunpack.c.l.b16 %v5075_v20  ;;  %v1817_v30 = vunpack.c.l.b16 %v5076_v21 }
  0x75   : > { %1779 = vrot.lane.b32.xlu1 %v5701_v8, %s5363_s4  ;;  %v1383_v22 = vsel %vm252_vm3, %v1382_v13, %v1381_v19  ;;  %v5079_v27 = vld [vmem:[%s5451_s30 + $0x3c] ss:$0 sps:$4 sm:$0x88]   ;;  %v5080_v28 = vld [vmem:[%s5451_s30 + $0x48] ss:$0 sps:$4 sm:$0x88]   ;;  %v1818_v33 = vunpack.c.l.b16 %v5077_v23  ;;  %v1819_v35 = vunpack.c.l.b16 %v5078_v24 }
  0x76   : > { %v1385_v26 = vsel %vm255_vm4, %v1384_v14, %v1383_v22  ;;  %v5081_v32 = vld [vmem:[%s5451_s30 + $0x54] ss:$0 sps:$4 sm:$0x88]   ;;  %v1823_v38 = vrot.slane %v1815_v25, 7  ;;  %v1820_v40 = vunpack.c.l.b16 %v5079_v27  ;;  %v1821_v41 = vunpack.c.l.b16 %v5080_v28 }
  0x77   : > { %v1386_v31 = vsel %vm258_vm5, %v1373_v15, %v1385_v26  ;;  %v1824_v42 = vrot.slane %v1816_v29, 6  ;;  %v1826_v44 = vrot.slane %v1817_v30, 5  ;;  %v1828_v45 = vrot.slane %v1818_v33, 4  ;;  %v5082_v53 = vld [vmem:[%s5451_s30] ss:$0 sps:$4 sm:$0x88]  }
  0x78   : > { %v1388_v39 = vsel %vm261_vm6, %v1387_v17, %v1386_v31  ;;  %v1830_v47 = vrot.slane %v1819_v35, 3  ;;  %v1832_v48 = vrot.slane %v1820_v40, 2  ;;  %v1834_v49 = vrot.slane %v1821_v41, 1  ;;  %v5083_v54 = vld [vmem:[%s5451_s30 + $0xc] ss:$0 sps:$4 sm:$0x88]  }
  0x79   : > { %v5720_v43 = vpack.c.b16 %v1388_v39, %v1388_v39  ;;  %v1825_v46 = vsel %vm243_vm0, %v1824_v42, %v1823_v38  ;;  %v1822_v51 = vunpack.c.l.b16 %v5081_v32  ;;  %v5084_v56 = vld [vmem:[%s5451_s30 + $0x18] ss:$0 sps:$4 sm:$0x88]   ;;  %v5085_v57 = vld [vmem:[%s5451_s30 + $0x24] ss:$0 sps:$4 sm:$0x88]   ;;  %v1428_v61 = vunpack.c.l.b16 %v5082_v53 }
  0x7a   : > { %v1827_v50 = vsel %vm246_vm1, %v1826_v44, %v1825_v46  ;;  %v5086_v59 = vld [vmem:[%s5451_s30 + $0x30] ss:$0 sps:$4 sm:$0x88]   ;;  %v5087_v60 = vld [vmem:[%s5451_s30 + $0x3c] ss:$0 sps:$4 sm:$0x88]   ;;  %v1429_v62 = vunpack.c.l.b16 %v5083_v54  ;;  %v1430_v6 = vunpack.c.l.b16 %v5084_v56  ;;  %v1431_v7 = vunpack.c.l.b16 %v5085_v57 }
  0x7b   : > { %1392 = vrot.lane.b32.xlu0 %v5720_v43, %s5363_s4  ;;  %v1829_v52 = vsel %vm249_vm2, %v1828_v45, %v1827_v50  ;;  %v5088_v3 = vld [vmem:[%s5451_s30 + $0x48] ss:$0 sps:$4 sm:$0x88]   ;;  %v5089_v5 = vld [vmem:[%s5451_s30 + $0x54] ss:$0 sps:$4 sm:$0x88]   ;;  %v1432_v10 = vunpack.c.l.b16 %v5086_v59  ;;  %v1433_v11 = vunpack.c.l.b16 %v5087_v60 }
  0x7c   : > { %v1831_v55 = vsel %vm252_vm3, %v1830_v47, %v1829_v52  ;;  %v1436_v12 = vrot.slane %v1428_v61, 7  ;;  %v1434_v14 = vunpack.c.l.b16 %v5088_v3  ;;  %v1437_v15 = vrot.slane %v1429_v62, 6  ;;  %v5090_v23 = vld [vmem:[%s5451_s30 + $0x4] ss:$0 sps:$4 sm:$0x11]  }
  0x7d   : > { %v1833_v58 = vsel %vm255_vm4, %v1832_v48, %v1831_v55  ;;  %v1439_v16 = vrot.slane %v1430_v6, 5  ;;  %v1441_v17 = vrot.slane %v1431_v7, 4  ;;  %v1443_v18 = vrot.slane %v1432_v10, 3  ;;  %v5091_v24 = vld [vmem:[%s5451_s30 + $0x10] ss:$0 sps:$4 sm:$0x11]  }
  0x7e   : > { %v1835_v63 = vsel %vm258_vm5, %v1834_v49, %v1833_v58  ;;  %v1438_v19 = vsel %vm243_vm0, %v1437_v15, %v1436_v12  ;;  %v1445_v20 = vrot.slane %v1433_v11, 2  ;;  %v1447_v21 = vrot.slane %v1434_v14, 1  ;;  %v5092_v27 = vld [vmem:[%s5451_s30 + $0x1c] ss:$0 sps:$4 sm:$0x11]  }
  0x7f   : > { %v1836_v9 = vsel %vm261_vm6, %v1822_v51, %v1835_v63  ;;  %v1440_v22 = vsel %vm246_vm1, %v1439_v16, %v1438_v19  ;;  %v1435_v25 = vunpack.c.l.b16 %v5089_v5  ;;  %v5093_v28 = vld [vmem:[%s5451_s30 + $0x28] ss:$0 sps:$4 sm:$0x11]   ;;  %v5094_v30 = vld [vmem:[%s5451_s30 + $0x34] ss:$0 sps:$4 sm:$0x11]   ;;  %v1876_v32 = vunpack.c.l.b16 %v5090_v23 }
  0x80   : > { %v5739_v13 = vpack.c.b16 %v1836_v9, %v1836_v9  ;;  %v1442_v26 = vsel %vm249_vm2, %v1441_v17, %v1440_v22  ;;  %v5095_v31 = vld [vmem:[%s5451_s30 + $0x40] ss:$0 sps:$4 sm:$0x11]   ;;  %v1877_v33 = vunpack.c.l.b16 %v5091_v24  ;;  %v1901_v35 = vunpack.c.h.b16 %v5090_v23  ;;  %v5096_v39 = vld [vmem:[%s5451_s30 + $0x4c] ss:$0 sps:$4 sm:$0x11]  }
  0x81   : > { %v1444_v29 = vsel %vm252_vm3, %v1443_v18, %v1442_v26  ;;  %v5097_v40 = vld [vmem:[%s5451_s30 + $0x58] ss:$0 sps:$4 sm:$0x11]   ;;  %v1878_v41 = vunpack.c.l.b16 %v5092_v27  ;;  %v1879_v42 = vunpack.c.l.b16 %v5093_v28  ;;  %v1902_v44 = vunpack.c.h.b16 %v5091_v24  ;;  %v5767_v10 = vld [vmem:[%s5451_s30 + $0x4] ss:$0 sps:$4 sm:$0x11]  }
  0x82   : > { %1840 = vrot.lane.b32.xlu1 %v5739_v13, %s5363_s4  ;;  %v1446_v38 = vsel %vm255_vm4, %v1445_v20, %v1444_v29  ;;  %v1880_v46 = vunpack.c.l.b16 %v5094_v30  ;;  %v1881_v47 = vunpack.c.l.b16 %v5095_v31  ;;  %v1884_v48 = vrot.slane %v1877_v33, 7  ;;  %v5099_v11 = vld [vmem:[%s5451_s30 + $0x10] ss:$0 sps:$4 sm:$0x11]  }
  0x83   : > { %v1448_v45 = vsel %vm258_vm5, %v1447_v21, %v1446_v38  ;;  %v1882_v50 = vunpack.c.l.b16 %v5096_v39  ;;  %v1883_v51 = vunpack.c.l.b16 %v5097_v40  ;;  %v1886_v52 = vrot.slane %v1878_v41, 6  ;;  %v5100_v12 = vld [vmem:[%s5451_s30 + $0x1c] ss:$0 sps:$4 sm:$0x11]  }
  0x84   : > { %v1449_v49 = vsel %vm261_vm6, %v1435_v25, %v1448_v45  ;;  %v1885_v54 = vsel %vm243_vm0, %v1884_v48, %v1876_v32  ;;  %v1888_v55 = vrot.slane %v1879_v42, 5  ;;  %v1890_v56 = vrot.slane %v1880_v46, 4  ;;  %v5101_v18 = vld [vmem:[%s5451_s30 + $0x28] ss:$0 sps:$4 sm:$0x11]  }
  0x85   : > { %v5758_v53 = vpack.c.b16 %v1449_v49, %v1449_v49  ;;  %v1887_v57 = vsel %vm246_vm1, %v1886_v52, %v1885_v54  ;;  %v1892_v58 = vrot.slane %v1881_v47, 3  ;;  %v1894_v59 = vrot.slane %v1882_v50, 2  ;;  %v5102_v23 = vld [vmem:[%s5451_s30 + $0x34] ss:$0 sps:$4 sm:$0x11]  }
  0x86   : > { %v1896_v60 = vrot.slane %v1883_v51, 1  ;;  %v1889_v61 = vsel %vm249_vm2, %v1888_v55, %v1887_v57  ;;  %v1903_v62 = vunpack.c.h.b16 %v5092_v27  ;;  %v1904_v63 = vunpack.c.h.b16 %v5093_v28  ;;  %v5103_v27 = vld [vmem:[%s5451_s30 + $0x40] ss:$0 sps:$4 sm:$0x11]  }
  0x87   : > { %1453 = vrot.lane.b32.xlu0 %v5758_v53, %s5363_s4  ;;  %v1905_v3 = vunpack.c.h.b16 %v5094_v30  ;;  %v1891_v5 = vsel %vm252_vm3, %v1890_v56, %v1889_v61  ;;  %v1906_v6 = vunpack.c.h.b16 %v5095_v31  ;;  %v1907_v7 = vunpack.c.h.b16 %v5096_v39  ;;  %v5104_v29 = vld [vmem:[%s5451_s30 + $0x4c] ss:$0 sps:$4 sm:$0x11]   ;;  %v5105_v30 = vld [vmem:[%s5451_s30 + $0x58] ss:$0 sps:$4 sm:$0x11]  }
  0x88   : > { %v1908_v9 = vunpack.c.h.b16 %v5097_v40  ;;  %v1893_v14 = vsel %vm255_vm4, %v1892_v58, %v1891_v5  ;;  %v1909_v15 = vrot.slane %v1902_v44, 7  ;;  %v1911_v16 = vrot.slane %v1903_v62, 6  ;;  %v5108_v5 = vld [vmem:[%s5451_s30 + $0x1c] ss:$0 sps:$4 sm:$0x11]  }
  0x89   : > { %v1913_v17 = vrot.slane %v1904_v63, 5  ;;  %v1895_v19 = vsel %vm258_vm5, %v1894_v59, %v1893_v14  ;;  %v1915_v20 = vrot.slane %v1905_v3, 4  ;;  %v1917_v21 = vrot.slane %v1906_v6, 3  ;;  %v5106_v59 = vld [vmem:[%s5451_s30 + $0x4] ss:$0 sps:$4 sm:$0x11]  }
  0x8a   : > { %v1919_v22 = vrot.slane %v1907_v7, 2  ;;  %v5776_v24 = vsel %vm261_vm6, %v1896_v60, %v1895_v19  ;;  %v1910_v25 = vsel %vm243_vm0, %v1909_v15, %v1901_v35  ;;  %v1921_v26 = vrot.slane %v1908_v9, 1  ;;  %v5107_v3 = vld [vmem:[%s5451_s30 + $0x10] ss:$0 sps:$4 sm:$0x11]  }
  0x8b   : > { %v1912_v28 = vsel %vm246_vm1, %v1911_v16, %v1910_v25  ;;  %v1489_v31 = vunpack.c.l.b16 %v5767_v10  ;;  %v1490_v32 = vunpack.c.l.b16 %v5099_v11  ;;  %v1491_v33 = vunpack.c.l.b16 %v5100_v12  ;;  %v5109_v15 = vld [vmem:[%s5451_s30 + $0x28] ss:$0 sps:$4 sm:$0x11]   ;;  %v5110_v16 = vld [vmem:[%s5451_s30 + $0x34] ss:$0 sps:$4 sm:$0x11]  }
  0x8c   : > { %v1914_v38 = vsel %vm249_vm2, %v1913_v17, %v1912_v28  ;;  %v1492_v39 = vunpack.c.l.b16 %v5101_v18  ;;  %v1493_v40 = vunpack.c.l.b16 %v5102_v23  ;;  %v1494_v41 = vunpack.c.l.b16 %v5103_v27  ;;  %v5113_v28 = vld [vmem:[%s5451_s30 + $0x58] ss:$0 sps:$4 sm:$0x11]  }
  0x8d   : > { %v1916_v42 = vsel %vm252_vm3, %v1915_v20, %v1914_v38  ;;  %v1495_v44 = vunpack.c.l.b16 %v5104_v29  ;;  %v1496_v35 = vunpack.c.l.b16 %v5105_v30  ;;  %v1497_v45 = vrot.slane %v1490_v32, 7 }
  0x8e   : > { %v1918_v46 = vsel %vm255_vm4, %v1917_v21, %v1916_v42  ;;  %v1499_v47 = vrot.slane %v1491_v33, 6  ;;  %v1501_v48 = vrot.slane %v1492_v39, 5  ;;  %v1503_v49 = vrot.slane %v1493_v40, 4 }
  0x8f   : > { %v1920_v50 = vsel %vm258_vm5, %v1919_v22, %v1918_v46  ;;  %v1498_v51 = vsel %vm243_vm0, %v1497_v45, %v1489_v31  ;;  %v1505_v52 = vrot.slane %v1494_v41, 3  ;;  %v1507_v54 = vrot.slane %v1495_v44, 2  ;;  %v5114_v45 = vld [vmem:[%s5451_s30 + $0x4] ss:$0 sps:$4 sm:$0x22]  }
  0x90   : > { %v1922_v55 = vsel %vm261_vm6, %v1921_v26, %v1920_v50  ;;  %v1500_v56 = vsel %vm246_vm1, %v1499_v47, %v1498_v51  ;;  %v1509_v57 = vrot.slane %v1496_v35, 1  ;;  %v1514_v58 = vunpack.c.h.b16 %v5767_v10  ;;  %v5112_v26 = vld [vmem:[%s5451_s30 + $0x4c] ss:$0 sps:$4 sm:$0x11]  }
  0x91   : > { %v1923_v60 = vpack.c.b16 %v1922_v55, %v1922_v55  ;;  %v1502_v61 = vsel %vm249_vm2, %v1501_v48, %v1500_v56  ;;  %v1515_v62 = vunpack.c.h.b16 %v5099_v11  ;;  %v1516_v63 = vunpack.c.h.b16 %v5100_v12  ;;  %v5111_v11 = vld [vmem:[%s5451_s30 + $0x40] ss:$0 sps:$4 sm:$0x11]   ;;  %v5115_v46 = vld [vmem:[%s5451_s30 + $0x10] ss:$0 sps:$4 sm:$0x22]  }
  0x92   : > { %v1504_v6 = vsel %vm252_vm3, %v1503_v49, %v1502_v61  ;;  %v1517_v7 = vunpack.c.h.b16 %v5101_v18  ;;  %v1518_v9 = vunpack.c.h.b16 %v5102_v23  ;;  %v1519_v14 = vunpack.c.h.b16 %v5103_v27  ;;  %v5116_v51 = vld [vmem:[%s5451_s30 + $0x1c] ss:$0 sps:$4 sm:$0x22]  }
  0x93   : > { %1924 = vrot.lane.b32.xlu1 %v1923_v60, %s5363_s4  ;;  %v1506_v10 = vsel %vm255_vm4, %v1505_v52, %v1504_v6  ;;  %v1520_v17 = vunpack.c.h.b16 %v5104_v29  ;;  %v1521_v19 = vunpack.c.h.b16 %v5105_v30  ;;  %v1522_v20 = vrot.slane %v1515_v62, 7  ;;  %v5118_v62 = vld [vmem:[%s5451_s30 + $0x34] ss:$0 sps:$4 sm:$0x22]  }
  0x94   : > { %v1508_v12 = vsel %vm258_vm5, %v1507_v54, %v1506_v10  ;;  %v1524_v21 = vrot.slane %v1516_v63, 6  ;;  %v1526_v22 = vrot.slane %v1517_v7, 5  ;;  %v1528_v25 = vrot.slane %v1518_v9, 4  ;;  %v5120_v6 = vld [vmem:[%s5451_s30 + $0x4c] ss:$0 sps:$4 sm:$0x22]  }
  0x95   : > { %v5805_v18 = vsel %vm261_vm6, %v1509_v57, %v1508_v12  ;;  %v1523_v23 = vsel %vm243_vm0, %v1522_v20, %v1514_v58  ;;  %v1530_v27 = vrot.slane %v1519_v14, 3  ;;  %v1532_v30 = vrot.slane %v1520_v17, 2  ;;  %v5117_v57 = vld [vmem:[%s5451_s30 + $0x28] ss:$0 sps:$4 sm:$0x22]  }
  0x96   : > { %v1525_v29 = vsel %vm246_vm1, %v1524_v21, %v1523_v23  ;;  %v1534_v31 = vrot.slane %v1521_v19, 1  ;;  %v1960_v32 = vunpack.c.l.b16 %v5106_v59  ;;  %v1961_v38 = vunpack.c.l.b16 %v5107_v3 }
  0x97   : > { %v1527_v33 = vsel %vm249_vm2, %v1526_v22, %v1525_v29  ;;  %v1962_v39 = vunpack.c.l.b16 %v5108_v5  ;;  %v1963_v40 = vunpack.c.l.b16 %v5109_v15  ;;  %v1964_v42 = vunpack.c.l.b16 %v5110_v16  ;;  %v5119_v5 = vld [vmem:[%s5451_s30 + $0x40] ss:$0 sps:$4 sm:$0x22]   ;;  %v5121_v15 = vld [vmem:[%s5451_s30 + $0x58] ss:$0 sps:$4 sm:$0x22]  }
  0x98   : > { %v1529_v41 = vsel %vm252_vm3, %v1528_v25, %v1527_v33  ;;  %v1965_v44 = vunpack.c.l.b16 %v5111_v11  ;;  %v1966_v35 = vunpack.c.l.b16 %v5112_v26  ;;  %v1967_v48 = vunpack.c.l.b16 %v5113_v28 }
  0x99   : > { %v1531_v47 = vsel %vm255_vm4, %v1530_v27, %v1529_v41  ;;  %v1968_v49 = vrot.slane %v1960_v32, 1  ;;  %v1970_v50 = vrot.slane %v1962_v39, 7  ;;  %v1972_v54 = vrot.slane %v1963_v40, 6  ;;  %v5122_v39 = vld [vmem:[%s5451_s30 + $0x4] ss:$0 sps:$4 sm:$0x11]  }
  0x9a   : > { %v1533_v52 = vsel %vm258_vm5, %v1532_v30, %v1531_v47  ;;  %v1974_v55 = vrot.slane %v1964_v42, 5  ;;  %v1976_v56 = vrot.slane %v1965_v44, 4  ;;  %v1978_v60 = vrot.slane %v1966_v35, 3  ;;  %v5123_v40 = vld [vmem:[%s5451_s30 + $0x10] ss:$0 sps:$4 sm:$0x11]  }
  0x9b   : > { %v1535_v58 = vsel %vm261_vm6, %v1534_v31, %v1533_v52  ;;  %v1969_v59 = vsel %vm243_vm0, %v1961_v38, %v1968_v49  ;;  %v1980_v61 = vrot.slane %v1967_v48, 2  ;;  %v2021_v7 = vunpack.c.l.b16 %v5114_v45  ;;  %v5124_v42 = vld [vmem:[%s5451_s30 + $0x1c] ss:$0 sps:$4 sm:$0x11]  }
  0x9c   : > { %v1536_v63 = vpack.c.b16 %v1535_v58, %v1535_v58  ;;  %v1971_v3 = vsel %vm246_vm1, %v1970_v50, %v1969_v59  ;;  %v2022_v9 = vunpack.c.l.b16 %v5115_v46  ;;  %v2023_v16 = vunpack.c.l.b16 %v5116_v51  ;;  %v5125_v44 = vld [vmem:[%s5451_s30 + $0x28] ss:$0 sps:$4 sm:$0x11]   ;;  %v5126_v45 = vld [vmem:[%s5451_s30 + $0x34] ss:$0 sps:$4 sm:$0x11]  }
  0x9d   : > { %v1973_v14 = vsel %vm249_vm2, %v1972_v54, %v1971_v3  ;;  %v2024_v10 = vunpack.c.l.b16 %v5117_v57  ;;  %v2025_v17 = vunpack.c.l.b16 %v5118_v62  ;;  %v2026_v20 = vunpack.c.l.b16 %v5119_v5  ;;  %v5127_v46 = vld [vmem:[%s5451_s30 + $0x40] ss:$0 sps:$4 sm:$0x11]   ;;  %v5128_v51 = vld [vmem:[%s5451_s30 + $0x4c] ss:$0 sps:$4 sm:$0x11]  }
  0x9e   : > { %1537 = vrot.lane.b32.xlu0 %v1536_v63, %s5363_s4  ;;  %v1975_v19 = vsel %vm252_vm3, %v1974_v55, %v1973_v14  ;;  %v2027_v11 = vunpack.c.l.b16 %v5120_v6  ;;  %v2029_v12 = vrot.slane %v2021_v7, 2  ;;  %v2028_v22 = vunpack.c.l.b16 %v5121_v15  ;;  %v5129_v52 = vld [vmem:[%s5451_s30 + $0x58] ss:$0 sps:$4 sm:$0x11]  }
  0x9f   : > { %v1977_v21 = vsel %vm255_vm4, %v1976_v56, %v1975_v19  ;;  %v2030_v25 = vrot.slane %v2022_v9, 1  ;;  %v2033_v26 = vrot.slane %v2024_v10, 7  ;;  %v2035_v27 = vrot.slane %v2025_v17, 6 }
  0xa0   : > { %v1979_v23 = vsel %vm258_vm5, %v1978_v60, %v1977_v21  ;;  %v2037_v28 = vrot.slane %v2026_v20, 5  ;;  %v2039_v31 = vrot.slane %v2027_v11, 4  ;;  %v2041_v32 = vrot.slane %v2028_v22, 3 }
  0xa1   : > { %v1981_v29 = vsel %vm261_vm6, %v1980_v61, %v1979_v23  ;;  %v2031_v30 = vsel %vm243_vm0, %v2030_v25, %v2029_v12  ;;  %v2263_v47 = vunpack.c.l.b16 %v5122_v39  ;;  %v2264_v48 = vunpack.c.l.b16 %v5123_v40  ;;  %v5130_v12 = vld [vmem:[%s5451_s30 + $0x4] ss:$0 sps:$4 sm:$0x11]   ;;  %v5131_v23 = vld [vmem:[%s5451_s30 + $0x10] ss:$0 sps:$4 sm:$0x11]  }
  0xa2   : > { %v5832_v33 = vpack.c.b16 %v1981_v29, %v1981_v29  ;;  %v2032_v38 = vsel %vm246_vm1, %v2023_v16, %v2031_v30  ;;  %v2288_v49 = vunpack.c.h.b16 %v5122_v39  ;;  %v2265_v54 = vunpack.c.l.b16 %v5124_v42 }
  0xa3   : > { %v2034_v41 = vsel %vm249_vm2, %v2033_v26, %v2032_v38  ;;  %v2266_v55 = vunpack.c.l.b16 %v5125_v44  ;;  %v2289_v56 = vunpack.c.h.b16 %v5123_v40  ;;  %v2267_v58 = vunpack.c.l.b16 %v5126_v45 }
  0xa4   : > { %1985 = vrot.lane.b32.xlu0 %v5832_v33, %s5363_s4  ;;  %v2036_v35 = vsel %vm252_vm3, %v2035_v27, %v2034_v41  ;;  %v2268_v59 = vunpack.c.l.b16 %v5127_v46  ;;  %v2271_v60 = vrot.slane %v2264_v48, 7  ;;  %v2269_v62 = vunpack.c.l.b16 %v5128_v51  ;;  %v5132_v27 = vld [vmem:[%s5451_s30 + $0x1c] ss:$0 sps:$4 sm:$0x11]  }
  0xa5   : > { %v2038_v50 = vsel %vm255_vm4, %v2037_v28, %v2036_v35  ;;  %v2270_v63 = vunpack.c.l.b16 %v5129_v52  ;;  %v2273_v3 = vrot.slane %v2265_v54, 6  ;;  %v2275_v7 = vrot.slane %v2266_v55, 5 }
  0xa6   : > { %v2040_v57 = vsel %vm258_vm5, %v2039_v31, %v2038_v50  ;;  %v2272_v6 = vsel %vm243_vm0, %v2271_v60, %v2263_v47  ;;  %v2277_v9 = vrot.slane %v2267_v58, 4  ;;  %v2279_v15 = vrot.slane %v2268_v59, 3  ;;  %v5136_v50 = vld [vmem:[%s5451_s30 + $0x4c] ss:$0 sps:$4 sm:$0x11]  }
  0xa7   : > { %v2042_v61 = vsel %vm261_vm6, %v2041_v32, %v2040_v57  ;;  %v2274_v14 = vsel %vm246_vm1, %v2273_v3, %v2272_v6  ;;  %v2281_v16 = vrot.slane %v2269_v62, 2  ;;  %v2283_v10 = vrot.slane %v2270_v63, 1  ;;  %v5133_v32 = vld [vmem:[%s5451_s30 + $0x28] ss:$0 sps:$4 sm:$0x11]  }
  0xa8   : > { %v5850_v5 = vpack.c.b16 %v2042_v61, %v2042_v61  ;;  %v2276_v17 = vsel %vm249_vm2, %v2275_v7, %v2274_v14  ;;  %v2290_v19 = vunpack.c.h.b16 %v5124_v42  ;;  %v2291_v20 = vunpack.c.h.b16 %v5125_v44  ;;  %v5134_v42 = vld [vmem:[%s5451_s30 + $0x34] ss:$0 sps:$4 sm:$0x11]  }
  0xa9   : > { %v2292_v11 = vunpack.c.h.b16 %v5126_v45  ;;  %v2278_v21 = vsel %vm252_vm3, %v2277_v9, %v2276_v17  ;;  %v2293_v22 = vunpack.c.h.b16 %v5127_v46  ;;  %v2294_v25 = vunpack.c.h.b16 %v5128_v51  ;;  %v5135_v46 = vld [vmem:[%s5451_s30 + $0x40] ss:$0 sps:$4 sm:$0x11]   ;;  %v5137_v51 = vld [vmem:[%s5451_s30 + $0x58] ss:$0 sps:$4 sm:$0x11]  }
  0xaa   : > { %2046 = vrot.lane.b32.xlu1 %v5850_v5, %s5363_s4  ;;  %v2295_v26 = vunpack.c.h.b16 %v5129_v52  ;;  %v2280_v28 = vsel %vm255_vm4, %v2279_v15, %v2278_v21  ;;  %v2296_v29 = vrot.slane %v2289_v56, 7  ;;  %v2298_v30 = vrot.slane %v2290_v19, 6  ;;  %v5138_v19 = vld [vmem:[%s5451_s30 + $0x4] ss:$0 sps:$4 sm:$0x22]  }
  0xab   : > { %v2300_v31 = vrot.slane %v2291_v20, 5  ;;  %v2282_v38 = vsel %vm258_vm5, %v2281_v16, %v2280_v28  ;;  %v2302_v39 = vrot.slane %v2292_v11, 4  ;;  %v2304_v40 = vrot.slane %v2293_v22, 3  ;;  %v5140_v21 = vld [vmem:[%s5451_s30 + $0x1c] ss:$0 sps:$4 sm:$0x22]  }
  0xac   : > { %v2306_v41 = vrot.slane %v2294_v25, 2  ;;  %v5866_v44 = vsel %vm261_vm6, %v2283_v10, %v2282_v38  ;;  %v2297_v35 = vsel %vm243_vm0, %v2296_v29, %v2288_v49  ;;  %v2308_v45 = vrot.slane %v2295_v26, 1  ;;  %v5141_v25 = vld [vmem:[%s5451_s30 + $0x28] ss:$0 sps:$4 sm:$0x22]  }
  0xad   : > { %v2347_v47 = vunpack.c.l.b16 %v5130_v12  ;;  %v2299_v48 = vsel %vm246_vm1, %v2298_v30, %v2297_v35  ;;  %v2348_v52 = vunpack.c.l.b16 %v5131_v23  ;;  %v2349_v54 = vunpack.c.l.b16 %v5132_v27  ;;  %v5139_v12 = vld [vmem:[%s5451_s30 + $0x10] ss:$0 sps:$4 sm:$0x22]   ;;  %v5142_v26 = vld [vmem:[%s5451_s30 + $0x34] ss:$0 sps:$4 sm:$0x22]  }
  0xae   : > { %v2301_v55 = vsel %vm249_vm2, %v2300_v31, %v2299_v48  ;;  %v2350_v56 = vunpack.c.l.b16 %v5133_v32  ;;  %v2351_v57 = vunpack.c.l.b16 %v5134_v42  ;;  %v2352_v58 = vunpack.c.l.b16 %v5135_v46  ;;  %v5143_v28 = vld [vmem:[%s5451_s30 + $0x40] ss:$0 sps:$4 sm:$0x22]   ;;  %v5144_v29 = vld [vmem:[%s5451_s30 + $0x4c] ss:$0 sps:$4 sm:$0x22]  }
  0xaf   : > { %v2303_v59 = vsel %vm252_vm3, %v2302_v39, %v2301_v55  ;;  %v2353_v60 = vunpack.c.l.b16 %v5136_v50  ;;  %v2354_v61 = vunpack.c.l.b16 %v5137_v51  ;;  %v2355_v49 = vrot.slane %v2347_v47, 1  ;;  %v5145_v38 = vld [vmem:[%s5451_s30 + $0x58] ss:$0 sps:$4 sm:$0x22]  }
  0xb0   : > { %v2305_v62 = vsel %vm255_vm4, %v2304_v40, %v2303_v59  ;;  %v2357_v63 = vrot.slane %v2349_v54, 7  ;;  %v2359_v3 = vrot.slane %v2350_v56, 6  ;;  %v2361_v6 = vrot.slane %v2351_v57, 5 }
  0xb1   : > { %v2307_v7 = vsel %vm258_vm5, %v2306_v41, %v2305_v62  ;;  %v2356_v9 = vsel %vm243_vm0, %v2348_v52, %v2355_v49  ;;  %v2363_v14 = vrot.slane %v2352_v58, 4  ;;  %v2365_v15 = vrot.slane %v2353_v60, 3  ;;  %v5146_v58 = vld [vmem:[%s5451_s30 + $0x4] ss:$0 sps:$4 sm:$0x22]  }
  0xb2   : > { %v2309_v16 = vsel %vm261_vm6, %v2308_v45, %v2307_v7  ;;  %v2358_v10 = vsel %vm246_vm1, %v2357_v63, %v2356_v9  ;;  %v2367_v17 = vrot.slane %v2354_v61, 2  ;;  %v2772_v23 = vunpack.c.l.b16 %v5138_v19  ;;  %v5147_v60 = vld [vmem:[%s5451_s30 + $0x10] ss:$0 sps:$4 sm:$0x22]  }
  0xb3   : > { %v2310_v20 = vpack.c.b16 %v2309_v16, %v2309_v16  ;;  %v2360_v11 = vsel %vm249_vm2, %v2359_v3, %v2358_v10  ;;  %v2773_v30 = vunpack.c.l.b16 %v5139_v12  ;;  %v2774_v31 = vunpack.c.l.b16 %v5140_v21  ;;  %v5148_v61 = vld [vmem:[%s5451_s30 + $0x1c] ss:$0 sps:$4 sm:$0x22]   ;;  %v5149_v62 = vld [vmem:[%s5451_s30 + $0x28] ss:$0 sps:$4 sm:$0x22]  }
  0xb4   : > { %v2362_v22 = vsel %vm252_vm3, %v2361_v6, %v2360_v11  ;;  %v2775_v39 = vunpack.c.l.b16 %v5141_v25  ;;  %v2776_v40 = vunpack.c.l.b16 %v5142_v26  ;;  %v2780_v41 = vrot.slane %v2772_v23, 2  ;;  %v5150_v63 = vld [vmem:[%s5451_s30 + $0x34] ss:$0 sps:$4 sm:$0x22]  }
  0xb5   : > { %2311 = vrot.lane.b32.xlu0 %v2310_v20, %s5363_s4  ;;  %v2364_v27 = vsel %vm255_vm4, %v2363_v14, %v2362_v22  ;;  %v2777_v35 = vunpack.c.l.b16 %v5143_v28  ;;  %v2778_v45 = vunpack.c.l.b16 %v5144_v29  ;;  %v2781_v46 = vrot.slane %v2773_v30, 1  ;;  %v5151_v7 = vld [vmem:[%s5451_s30 + $0x40] ss:$0 sps:$4 sm:$0x22]  }
  0xb6   : > { %v2366_v32 = vsel %vm258_vm5, %v2365_v15, %v2364_v27  ;;  %v2779_v48 = vunpack.c.l.b16 %v5145_v38  ;;  %v2784_v50 = vrot.slane %v2775_v39, 7  ;;  %v2786_v51 = vrot.slane %v2776_v40, 6  ;;  %v5152_v9 = vld [vmem:[%s5451_s30 + $0x4c] ss:$0 sps:$4 sm:$0x22]  }
  0xb7   : > { %v2368_v42 = vsel %vm261_vm6, %v2367_v17, %v2366_v32  ;;  %v2782_v52 = vsel %vm243_vm0, %v2781_v46, %v2780_v41  ;;  %v2788_v54 = vrot.slane %v2777_v35, 5  ;;  %v2790_v55 = vrot.slane %v2778_v45, 4  ;;  %v5153_v10 = vld [vmem:[%s5451_s30 + $0x58] ss:$0 sps:$4 sm:$0x22]  }
  0xb8   : > { %v5894_v47 = vpack.c.b16 %v2368_v42, %v2368_v42  ;;  %v2783_v56 = vsel %vm246_vm1, %v2774_v31, %v2782_v52  ;;  %v2792_v57 = vrot.slane %v2779_v48, 3  ;;  %v2408_v3 = vunpack.c.l.b16 %v5146_v58  ;;  %v5154_v38 = vld [vmem:[%s5451_s30 + $0x4] ss:$0 sps:$4 sm:$0x22]  }
  0xb9   : > { %v2785_v59 = vsel %vm249_vm2, %v2784_v50, %v2783_v56  ;;  %v2409_v14 = vunpack.c.l.b16 %v5147_v60  ;;  %v2410_v15 = vunpack.c.l.b16 %v5148_v61  ;;  %v2411_v17 = vunpack.c.l.b16 %v5149_v62  ;;  %v5155_v40 = vld [vmem:[%s5451_s30 + $0x10] ss:$0 sps:$4 sm:$0x22]   ;;  %v5156_v41 = vld [vmem:[%s5451_s30 + $0x1c] ss:$0 sps:$4 sm:$0x22]  }
  0xba   : > { %2372 = vrot.lane.b32.xlu1 %v5894_v47, %s5363_s4  ;;  %v2787_v49 = vsel %vm252_vm3, %v2786_v51, %v2785_v59  ;;  %v2412_v19 = vunpack.c.l.b16 %v5150_v63  ;;  %v2416_v20 = vrot.slane %v2408_v3, 2  ;;  %v2413_v12 = vunpack.c.l.b16 %v5151_v7  ;;  %v5157_v35 = vld [vmem:[%s5451_s30 + $0x28] ss:$0 sps:$4 sm:$0x22]  }
  0xbb   : > { %v2789_v6 = vsel %vm255_vm4, %v2788_v54, %v2787_v49  ;;  %v2414_v21 = vunpack.c.l.b16 %v5152_v9  ;;  %v2417_v22 = vrot.slane %v2409_v14, 1  ;;  %v2415_v26 = vunpack.c.l.b16 %v5153_v10  ;;  %v5158_v45 = vld [vmem:[%s5451_s30 + $0x34] ss:$0 sps:$4 sm:$0x22]  }
  0xbc   : > { %v2791_v16 = vsel %vm258_vm5, %v2790_v55, %v2789_v6  ;;  %v2420_v23 = vrot.slane %v2411_v17, 7  ;;  %v2422_v27 = vrot.slane %v2412_v19, 6  ;;  %v2424_v29 = vrot.slane %v2413_v12, 5  ;;  %v5159_v50 = vld [vmem:[%s5451_s30 + $0x40] ss:$0 sps:$4 sm:$0x22]  }
  0xbd   : > { %v2793_v11 = vsel %vm261_vm6, %v2792_v57, %v2791_v16  ;;  %v2418_v28 = vsel %vm243_vm0, %v2417_v22, %v2416_v20  ;;  %v2426_v30 = vrot.slane %v2414_v21, 4  ;;  %v2428_v32 = vrot.slane %v2415_v26, 3  ;;  %v5160_v51 = vld [vmem:[%s5451_s30 + $0x4c] ss:$0 sps:$4 sm:$0x22]  }
  0xbe   : > { %v5913_v25 = vpack.c.b16 %v2793_v11, %v2793_v11  ;;  %v2419_v31 = vsel %vm246_vm1, %v2410_v15, %v2418_v28  ;;  %v2833_v46 = vunpack.c.l.b16 %v5154_v38  ;;  %v2834_v52 = vunpack.c.l.b16 %v5155_v40  ;;  %v5161_v56 = vld [vmem:[%s5451_s30 + $0x58] ss:$0 sps:$4 sm:$0x22]   ;;  %v5162_v17 = vld [vmem:[%s5451_s30 + $0x4] ss:$0 sps:$4 sm:$0x22]  }
  0xbf   : > { %v2421_v39 = vsel %vm249_vm2, %v2420_v23, %v2419_v31  ;;  %v2835_v54 = vunpack.c.l.b16 %v5156_v41  ;;  %v2836_v57 = vunpack.c.l.b16 %v5157_v35  ;;  %v2837_v58 = vunpack.c.l.b16 %v5158_v45  ;;  %v5163_v20 = vld [vmem:[%s5451_s30 + $0x10] ss:$0 sps:$4 sm:$0x22]   ;;  %v5164_v11 = vld [vmem:[%s5451_s30 + $0x1c] ss:$0 sps:$4 sm:$0x22]  }
  0xc0   : > { %2797 = vrot.lane.b32.xlu1 %v5913_v25, %s5363_s4  ;;  %v2423_v42 = vsel %vm252_vm3, %v2422_v27, %v2421_v39  ;;  %v2841_v59 = vrot.slane %v2833_v46, 3  ;;  %v2838_v61 = vunpack.c.l.b16 %v5159_v50  ;;  %v2839_v49 = vunpack.c.l.b16 %v5160_v51  ;;  %v5165_v21 = vld [vmem:[%s5451_s30 + $0x28] ss:$0 sps:$4 sm:$0x22]  }
  0xc1   : > { %v2425_v48 = vsel %vm255_vm4, %v2424_v29, %v2423_v42  ;;  %v2842_v62 = vrot.slane %v2834_v52, 2  ;;  %v2840_v3 = vunpack.c.l.b16 %v5161_v56  ;;  %v2844_v6 = vrot.slane %v2835_v54, 1  ;;  %v5166_v22 = vld [vmem:[%s5451_s30 + $0x34] ss:$0 sps:$4 sm:$0x22]  }
  0xc2   : > { %v2427_v55 = vsel %vm258_vm5, %v2426_v30, %v2425_v48  ;;  %v2847_v7 = vrot.slane %v2837_v58, 7  ;;  %v2849_v14 = vrot.slane %v2838_v61, 6  ;;  %v2851_v15 = vrot.slane %v2839_v49, 5  ;;  %v5167_v27 = vld [vmem:[%s5451_s30 + $0x40] ss:$0 sps:$4 sm:$0x22]  }
  0xc3   : > { %v2429_v60 = vsel %vm261_vm6, %v2428_v32, %v2427_v55  ;;  %v2843_v9 = vsel %vm243_vm0, %v2842_v62, %v2841_v59  ;;  %v2853_v10 = vrot.slane %v2840_v3, 4  ;;  %v2469_v26 = vunpack.c.l.b16 %v5162_v17  ;;  %v5168_v28 = vld [vmem:[%s5451_s30 + $0x4c] ss:$0 sps:$4 sm:$0x22]  }
  0xc4   : > { %v5932_v63 = vpack.c.b16 %v2429_v60, %v2429_v60  ;;  %v2845_v16 = vsel %vm246_vm1, %v2844_v6, %v2843_v9  ;;  %v2470_v29 = vunpack.c.l.b16 %v5163_v20  ;;  %v2471_v30 = vunpack.c.l.b16 %v5164_v11  ;;  %v5169_v32 = vld [vmem:[%s5451_s30 + $0x58] ss:$0 sps:$4 sm:$0x22]   ;;  %v5170_v58 = vld [vmem:[%s5451_s30 + $0x4] ss:$0 sps:$4 sm:$0x44]  }
  0xc5   : > { %v2846_v19 = vsel %vm249_vm2, %v2836_v57, %v2845_v16  ;;  %v2472_v38 = vunpack.c.l.b16 %v5165_v21  ;;  %v2473_v39 = vunpack.c.l.b16 %v5166_v22  ;;  %v2477_v40 = vrot.slane %v2469_v26, 3  ;;  %v5171_v60 = vld [vmem:[%s5451_s30 + $0x10] ss:$0 sps:$4 sm:$0x44]  }
  0xc6   : > { %2433 = vrot.lane.b32.xlu0 %v5932_v63, %s5363_s4  ;;  %v2848_v12 = vsel %vm252_vm3, %v2847_v7, %v2846_v19  ;;  %v2474_v42 = vunpack.c.l.b16 %v5167_v27  ;;  %v2475_v35 = vunpack.c.l.b16 %v5168_v28  ;;  %v2478_v45 = vrot.slane %v2470_v29, 2  ;;  %v5172_v61 = vld [vmem:[%s5451_s30 + $0x1c] ss:$0 sps:$4 sm:$0x44]  }
  0xc7   : > { %v2850_v23 = vsel %vm255_vm4, %v2849_v14, %v2848_v12  ;;  %v2476_v48 = vunpack.c.l.b16 %v5169_v32  ;;  %v2480_v50 = vrot.slane %v2471_v30, 1  ;;  %v2483_v51 = vrot.slane %v2473_v39, 7  ;;  %v5173_v62 = vld [vmem:[%s5451_s30 + $0x28] ss:$0 sps:$4 sm:$0x44]  }
  0xc8   : > { %v2852_v31 = vsel %vm258_vm5, %v2851_v15, %v2850_v23  ;;  %v2479_v52 = vsel %vm243_vm0, %v2478_v45, %v2477_v40  ;;  %v2485_v54 = vrot.slane %v2474_v42, 6  ;;  %v2487_v55 = vrot.slane %v2475_v35, 5  ;;  %v5174_v3 = vld [vmem:[%s5451_s30 + $0x34] ss:$0 sps:$4 sm:$0x44]  }
  0xc9   : > { %v2854_v41 = vsel %vm261_vm6, %v2853_v10, %v2852_v31  ;;  %v2481_v56 = vsel %vm246_vm1, %v2480_v50, %v2479_v52  ;;  %v2489_v57 = vrot.slane %v2476_v48, 4  ;;  %v2894_v6 = vunpack.c.l.b16 %v5170_v58  ;;  %v5175_v9 = vld [vmem:[%s5451_s30 + $0x40] ss:$0 sps:$4 sm:$0x44]  }
  0xca   : > { %v5951_v46 = vpack.c.b16 %v2854_v41, %v2854_v41  ;;  %v2482_v59 = vsel %vm249_vm2, %v2472_v38, %v2481_v56  ;;  %v5176_v14 = vld [vmem:[%s5451_s30 + $0x4c] ss:$0 sps:$4 sm:$0x44]   ;;  %v2895_v15 = vunpack.c.l.b16 %v5171_v60  ;;  %v2896_v16 = vunpack.c.l.b16 %v5172_v61  ;;  %v5177_v17 = vld [vmem:[%s5451_s30 + $0x58] ss:$0 sps:$4 sm:$0x44]  }
  0xcb   : > { %v2484_v49 = vsel %vm252_vm3, %v2483_v51, %v2482_v59  ;;  %v2897_v19 = vunpack.c.l.b16 %v5173_v62  ;;  %v2898_v20 = vunpack.c.l.b16 %v5174_v3  ;;  %v2902_v11 = vrot.slane %v2894_v6, 4  ;;  %v5178_v40 = vld [vmem:[%s5451_s30 + $0x4] ss:$0 sps:$4 sm:$0x44]  }
  0xcc   : > { %2858 = vrot.lane.b32.xlu1 %v5951_v46, %s5363_s4  ;;  %v2486_v7 = vsel %vm255_vm4, %v2485_v54, %v2484_v49  ;;  %v2899_v21 = vunpack.c.l.b16 %v5175_v9  ;;  %v2900_v22 = vunpack.c.l.b16 %v5176_v14  ;;  %v2903_v26 = vrot.slane %v2895_v15, 3  ;;  %v5179_v42 = vld [vmem:[%s5451_s30 + $0x10] ss:$0 sps:$4 sm:$0x44]  }
  0xcd   : > { %v2488_v10 = vsel %vm258_vm5, %v2487_v55, %v2486_v7  ;;  %v2901_v27 = vunpack.c.l.b16 %v5177_v17  ;;  %v2905_v28 = vrot.slane %v2896_v16, 2  ;;  %v2907_v29 = vrot.slane %v2897_v19, 1  ;;  %v5180_v35 = vld [vmem:[%s5451_s30 + $0x1c] ss:$0 sps:$4 sm:$0x44]  }
  0xce   : > { %v2490_v12 = vsel %vm261_vm6, %v2489_v57, %v2488_v10  ;;  %v2904_v30 = vsel %vm243_vm0, %v2903_v26, %v2902_v11  ;;  %v2910_v31 = vrot.slane %v2899_v21, 7  ;;  %v2912_v32 = vrot.slane %v2900_v22, 6  ;;  %v5181_v48 = vld [vmem:[%s5451_s30 + $0x28] ss:$0 sps:$4 sm:$0x44]  }
  0xcf   : > { %v5970_v23 = vpack.c.b16 %v2490_v12, %v2490_v12  ;;  %v2906_v38 = vsel %vm246_vm1, %v2905_v28, %v2904_v30  ;;  %v2914_v39 = vrot.slane %v2901_v27, 5  ;;  %v5182_v50 = vld [vmem:[%s5451_s30 + $0x34] ss:$0 sps:$4 sm:$0x44]   ;;  %v2530_v51 = vunpack.c.l.b16 %v5178_v40 }
  0xd0   : > { %v2908_v41 = vsel %vm249_vm2, %v2907_v29, %v2906_v38  ;;  %v5183_v54 = vld [vmem:[%s5451_s30 + $0x40] ss:$0 sps:$4 sm:$0x44]   ;;  %v5184_v55 = vld [vmem:[%s5451_s30 + $0x4c] ss:$0 sps:$4 sm:$0x44]   ;;  %v2531_v56 = vunpack.c.l.b16 %v5179_v42  ;;  %v2532_v57 = vunpack.c.l.b16 %v5180_v35  ;;  %v2533_v60 = vunpack.c.l.b16 %v5181_v48 }
  0xd1   : > { %2494 = vrot.lane.b32.xlu0 %v5970_v23, %s5363_s4  ;;  %v2909_v45 = vsel %vm252_vm3, %v2898_v20, %v2908_v41  ;;  %v5185_v59 = vld [vmem:[%s5451_s30 + $0x58] ss:$0 sps:$4 sm:$0x44]   ;;  %v2534_v61 = vunpack.c.l.b16 %v5182_v50  ;;  %v2538_v49 = vrot.slane %v2530_v51, 4  ;;  %v2535_v3 = vunpack.c.l.b16 %v5183_v54 }
  0xd2   : > { %v2911_v52 = vsel %vm255_vm4, %v2910_v31, %v2909_v45  ;;  %v2536_v6 = vunpack.c.l.b16 %v5184_v55  ;;  %v2539_v7 = vrot.slane %v2531_v56, 3  ;;  %v2537_v14 = vunpack.c.l.b16 %v5185_v59  ;;  %v5186_v12 = vld [vmem:[%s5451_s30 + $0x4] ss:$0 sps:$4 sm:$0x44]  }
  0xd3   : > { %v2913_v58 = vsel %vm258_vm5, %v2912_v32, %v2911_v52  ;;  %v2541_v15 = vrot.slane %v2532_v57, 2  ;;  %v2543_v16 = vrot.slane %v2533_v60, 1  ;;  %v2546_v17 = vrot.slane %v2535_v3, 7  ;;  %v5187_v22 = vld [vmem:[%s5451_s30 + $0x10] ss:$0 sps:$4 sm:$0x44]  }
  0xd4   : > { %v2915_v62 = vsel %vm261_vm6, %v2914_v39, %v2913_v58  ;;  %v2540_v10 = vsel %vm243_vm0, %v2539_v7, %v2538_v49  ;;  %v2548_v19 = vrot.slane %v2536_v6, 6  ;;  %v2550_v11 = vrot.slane %v2537_v14, 5  ;;  %v5188_v26 = vld [vmem:[%s5451_s30 + $0x1c] ss:$0 sps:$4 sm:$0x44]  }
  0xd5   : > { %v5989_v9 = vpack.c.b16 %v2915_v62, %v2915_v62  ;;  %v2542_v20 = vsel %vm246_vm1, %v2541_v15, %v2540_v10  ;;  %v5189_v28 = vld [vmem:[%s5451_s30 + $0x28] ss:$0 sps:$4 sm:$0x44]   ;;  %v5190_v29 = vld [vmem:[%s5451_s30 + $0x34] ss:$0 sps:$4 sm:$0x44]   ;;  %v2955_v30 = vunpack.c.l.b16 %v5186_v12  ;;  %v2956_v39 = vunpack.c.l.b16 %v5187_v22 }
  0xd6   : > { %v2544_v21 = vsel %vm249_vm2, %v2543_v16, %v2542_v20  ;;  %v5191_v32 = vld [vmem:[%s5451_s30 + $0x40] ss:$0 sps:$4 sm:$0x44]   ;;  %v5192_v38 = vld [vmem:[%s5451_s30 + $0x4c] ss:$0 sps:$4 sm:$0x44]   ;;  %v2957_v40 = vunpack.c.l.b16 %v5188_v26  ;;  %v2958_v35 = vunpack.c.l.b16 %v5189_v28  ;;  %v2959_v45 = vunpack.c.l.b16 %v5190_v29 }
  0xd7   : > { %2919 = vrot.lane.b32.xlu1 %v5989_v9, %s5363_s4  ;;  %v2545_v27 = vsel %vm252_vm3, %v2534_v61, %v2544_v21  ;;  %v5193_v42 = vld [vmem:[%s5451_s30 + $0x58] ss:$0 sps:$4 sm:$0x44]   ;;  %v2963_v48 = vrot.slane %v2955_v30, 5  ;;  %v2961_v51 = vunpack.c.l.b16 %v5192_v38  ;;  %v2964_v52 = vrot.slane %v2956_v39, 4 }
  0xd8   : > { %v2547_v31 = vsel %vm255_vm4, %v2546_v17, %v2545_v27  ;;  %v2962_v55 = vunpack.c.l.b16 %v5193_v42  ;;  %v2966_v56 = vrot.slane %v2957_v40, 3  ;;  %v2968_v57 = vrot.slane %v2958_v35, 2  ;;  %v5194_v3 = vld [vmem:[%s5451_s30 + $0x4] ss:$0 sps:$4 sm:$0x88]  }
  0xd9   : > { %v2549_v41 = vsel %vm258_vm5, %v2548_v19, %v2547_v31  ;;  %v2960_v58 = vunpack.c.l.b16 %v5191_v32  ;;  %v2965_v59 = vsel %vm243_vm0, %v2964_v52, %v2963_v48  ;;  %v2970_v60 = vrot.slane %v2959_v45, 1  ;;  %v5195_v7 = vld [vmem:[%s5451_s30 + $0x10] ss:$0 sps:$4 sm:$0x88]  }
  0xda   : > { %v2551_v50 = vsel %vm261_vm6, %v2550_v11, %v2549_v41  ;;  %v2973_v61 = vrot.slane %v2961_v51, 7  ;;  %v2967_v49 = vsel %vm246_vm1, %v2966_v56, %v2965_v59  ;;  %v2975_v62 = vrot.slane %v2962_v55, 6  ;;  %v5196_v14 = vld [vmem:[%s5451_s30 + $0x1c] ss:$0 sps:$4 sm:$0x88]  }
  0xdb   : > { %v6008_v54 = vpack.c.b16 %v2551_v50, %v2551_v50  ;;  %v2969_v6 = vsel %vm249_vm2, %v2968_v57, %v2967_v49  ;;  %v5197_v16 = vld [vmem:[%s5451_s30 + $0x28] ss:$0 sps:$4 sm:$0x88]   ;;  %v5198_v10 = vld [vmem:[%s5451_s30 + $0x34] ss:$0 sps:$4 sm:$0x88]   ;;  %v3016_v17 = vunpack.c.l.b16 %v5194_v3  ;;  %v3017_v12 = vunpack.c.l.b16 %v5195_v7 }
  0xdc   : > { %v2971_v15 = vsel %vm252_vm3, %v2970_v60, %v2969_v6  ;;  %v5199_v20 = vld [vmem:[%s5451_s30 + $0x40] ss:$0 sps:$4 sm:$0x88]   ;;  %v5200_v11 = vld [vmem:[%s5451_s30 + $0x4c] ss:$0 sps:$4 sm:$0x88]   ;;  %v3018_v21 = vunpack.c.l.b16 %v5196_v14  ;;  %v3019_v27 = vunpack.c.l.b16 %v5197_v16  ;;  %v3020_v28 = vunpack.c.l.b16 %v5198_v10 }
  0xdd   : > { %2555 = vrot.lane.b32.xlu0 %v6008_v54, %s5363_s4  ;;  %v2972_v19 = vsel %vm255_vm4, %v2960_v58, %v2971_v15  ;;  %v5201_v26 = vld [vmem:[%s5451_s30 + $0x58] ss:$0 sps:$4 sm:$0x88]   ;;  %v3024_v29 = vrot.slane %v3016_v17, 6  ;;  %v3021_v31 = vunpack.c.l.b16 %v5199_v20  ;;  %v3025_v32 = vrot.slane %v3017_v12, 5 }
  0xde   : > { %v2974_v22 = vsel %vm258_vm5, %v2973_v61, %v2972_v19  ;;  %v3023_v39 = vunpack.c.l.b16 %v5201_v26  ;;  %v3027_v40 = vrot.slane %v3018_v21, 4  ;;  %v3029_v41 = vrot.slane %v3019_v27, 3  ;;  %v5202_v52 = vld [vmem:[%s5451_s30 + $0x4] ss:$0 sps:$4 sm:$0x44]  }
  0xdf   : > { %v2976_v30 = vsel %vm261_vm6, %v2975_v62, %v2974_v22  ;;  %v3026_v42 = vsel %vm243_vm0, %v3025_v32, %v3024_v29  ;;  %v3031_v35 = vrot.slane %v3020_v28, 2  ;;  %v3033_v45 = vrot.slane %v3021_v31, 1  ;;  %v5203_v56 = vld [vmem:[%s5451_s30 + $0x10] ss:$0 sps:$4 sm:$0x44]  }
  0xe0   : > { %v6027_v38 = vpack.c.b16 %v2976_v30, %v2976_v30  ;;  %v3022_v48 = vunpack.c.l.b16 %v5200_v11  ;;  %v3028_v50 = vsel %vm246_vm1, %v3027_v40, %v3026_v42  ;;  %v3036_v51 = vrot.slane %v3023_v39, 7  ;;  %v5204_v57 = vld [vmem:[%s5451_s30 + $0x1c] ss:$0 sps:$4 sm:$0x44]  }
  0xe1   : > { %v3030_v55 = vsel %vm249_vm2, %v3029_v41, %v3028_v50  ;;  %v5205_v59 = vld [vmem:[%s5451_s30 + $0x28] ss:$0 sps:$4 sm:$0x44]   ;;  %v5206_v60 = vld [vmem:[%s5451_s30 + $0x34] ss:$0 sps:$4 sm:$0x44]   ;;  %v3258_v61 = vunpack.c.l.b16 %v5202_v52  ;;  %v3259_v6 = vunpack.c.l.b16 %v5203_v56  ;;  %v3260_v7 = vunpack.c.l.b16 %v5204_v57 }
  0xe2   : > { %2980 = vrot.lane.b32.xlu0 %v6027_v38, %s5363_s4  ;;  %v3032_v58 = vsel %vm252_vm3, %v3031_v35, %v3030_v55  ;;  %v5207_v62 = vld [vmem:[%s5451_s30 + $0x40] ss:$0 sps:$4 sm:$0x44]   ;;  %v5208_v3 = vld [vmem:[%s5451_s30 + $0x4c] ss:$0 sps:$4 sm:$0x44]   ;;  %v3261_v16 = vunpack.c.l.b16 %v5205_v59  ;;  %v3262_v10 = vunpack.c.l.b16 %v5206_v60 }
  0xe3   : > { %v3034_v49 = vsel %vm255_vm4, %v3033_v45, %v3032_v58  ;;  %v5209_v15 = vld [vmem:[%s5451_s30 + $0x58] ss:$0 sps:$4 sm:$0x44]   ;;  %v3266_v17 = vrot.slane %v3258_v61, 4  ;;  %v3263_v20 = vunpack.c.l.b16 %v5207_v62  ;;  %v3264_v11 = vunpack.c.l.b16 %v5208_v3 }
  0xe4   : > { %v3035_v14 = vsel %vm258_vm5, %v3022_v48, %v3034_v49  ;;  %v3267_v12 = vrot.slane %v3259_v6, 3  ;;  %v3265_v22 = vunpack.c.l.b16 %v5209_v15  ;;  %v3269_v26 = vrot.slane %v3260_v7, 2  ;;  %v5210_v39 = vld [vmem:[%s5451_s30 + $0x4] ss:$0 sps:$4 sm:$0x44]  }
  0xe5   : > { %v3037_v19 = vsel %vm261_vm6, %v3036_v51, %v3035_v14  ;;  %v3271_v27 = vrot.slane %v3261_v16, 1  ;;  %v3274_v29 = vrot.slane %v3263_v20, 7  ;;  %v3276_v30 = vrot.slane %v3264_v11, 6  ;;  %v5211_v41 = vld [vmem:[%s5451_s30 + $0x10] ss:$0 sps:$4 sm:$0x44]  }
  0xe6   : > { %v6046_v21 = vpack.c.b16 %v3037_v19, %v3037_v19  ;;  %v3268_v28 = vsel %vm243_vm0, %v3267_v12, %v3266_v17  ;;  %v3278_v32 = vrot.slane %v3265_v22, 5  ;;  %v5212_v42 = vld [vmem:[%s5451_s30 + $0x1c] ss:$0 sps:$4 sm:$0x44]   ;;  %v3319_v50 = vunpack.c.l.b16 %v5210_v39 }
  0xe7   : > { %v3270_v31 = vsel %vm246_vm1, %v3269_v26, %v3268_v28  ;;  %v5213_v45 = vld [vmem:[%s5451_s30 + $0x28] ss:$0 sps:$4 sm:$0x44]   ;;  %v5214_v48 = vld [vmem:[%s5451_s30 + $0x34] ss:$0 sps:$4 sm:$0x44]   ;;  %v3320_v56 = vunpack.c.l.b16 %v5211_v41  ;;  %v3321_v57 = vunpack.c.l.b16 %v5212_v42 }
  0xe8   : > { %7137 = vst [vmem:[#allocation6_spill] sm:$0xff] %v6046_v21  ;;  %3041 = vrot.lane.b32.xlu1 %v6046_v21, %s5363_s4  ;;  %v3272_v40 = vsel %vm249_vm2, %v3271_v27, %v3270_v31  ;;  %v5215_v52 = vld [vmem:[%s5451_s30 + $0x40] ss:$0 sps:$4 sm:$0x44]   ;;  %v3322_v60 = vunpack.c.l.b16 %v5213_v45  ;;  %v3323_v61 = vunpack.c.l.b16 %v5214_v48  ;;  %v3327_v49 = vrot.slane %v3319_v50, 5 }
  0xe9   : > { %v3273_v35 = vsel %vm252_vm3, %v3262_v10, %v3272_v40  ;;  %v5216_v55 = vld [vmem:[%s5451_s30 + $0x4c] ss:$0 sps:$4 sm:$0x44]   ;;  %v5217_v59 = vld [vmem:[%s5451_s30 + $0x58] ss:$0 sps:$4 sm:$0x44]   ;;  %v3324_v10 = vunpack.c.l.b16 %v5215_v52 }
  0xea   : > { %v3275_v51 = vsel %vm255_vm4, %v3274_v29, %v3273_v35  ;;  %v3325_v3 = vunpack.c.l.b16 %v5216_v55  ;;  %v3328_v6 = vrot.slane %v3320_v56, 4  ;;  %v3326_v14 = vunpack.c.l.b16 %v5217_v59  ;;  %v5218_v22 = vld [vmem:[%s5451_s30 + $0x4] ss:$0 sps:$4 sm:$0x88]  }
  0xeb   : > { %v3277_v58 = vsel %vm258_vm5, %v3276_v30, %v3275_v51  ;;  %v3330_v15 = vrot.slane %v3321_v57, 3  ;;  %v3332_v16 = vrot.slane %v3322_v60, 2  ;;  %v3334_v19 = vrot.slane %v3323_v61, 1  ;;  %v5219_v27 = vld [vmem:[%s5451_s30 + $0x10] ss:$0 sps:$4 sm:$0x88]  }
  0xec   : > { %v3279_v62 = vsel %vm261_vm6, %v3278_v32, %v3277_v58  ;;  %v3329_v17 = vsel %vm243_vm0, %v3328_v6, %v3327_v49  ;;  %v3337_v20 = vrot.slane %v3325_v3, 7  ;;  %v3339_v12 = vrot.slane %v3326_v14, 6  ;;  %v5220_v28 = vld [vmem:[%s5451_s30 + $0x1c] ss:$0 sps:$4 sm:$0x88]  }
  0xed   : > { %v6065_v7 = vpack.c.b16 %v3279_v62, %v3279_v62  ;;  %v3331_v11 = vsel %vm246_vm1, %v3330_v15, %v3329_v17  ;;  %v5221_v30 = vld [vmem:[%s5451_s30 + $0x28] ss:$0 sps:$4 sm:$0x88]   ;;  %v5222_v31 = vld [vmem:[%s5451_s30 + $0x34] ss:$0 sps:$4 sm:$0x88]   ;;  %v3767_v32 = vunpack.c.l.b16 %v5218_v22  ;;  %v3768_v42 = vunpack.c.l.b16 %v5219_v27 }
  0xee   : > { %v3333_v26 = vsel %vm249_vm2, %v3332_v16, %v3331_v11  ;;  %v5223_v40 = vld [vmem:[%s5451_s30 + $0x40] ss:$0 sps:$4 sm:$0x88]   ;;  %v5224_v41 = vld [vmem:[%s5451_s30 + $0x4c] ss:$0 sps:$4 sm:$0x88]   ;;  %v3769_v35 = vunpack.c.l.b16 %v5220_v28  ;;  %v3770_v50 = vunpack.c.l.b16 %v5221_v30  ;;  %v3771_v51 = vunpack.c.l.b16 %v5222_v31 }
  0xef   : > { %3283 = vrot.lane.b32.xlu0 %v6065_v7, %s5363_s4  ;;  %v3335_v29 = vsel %vm252_vm3, %v3334_v19, %v3333_v26  ;;  %v5225_v48 = vld [vmem:[%s5451_s30 + $0x58] ss:$0 sps:$4 sm:$0x88]   ;;  %v3775_v52 = vrot.slane %v3767_v32, 6  ;;  %v3772_v56 = vunpack.c.l.b16 %v5223_v40  ;;  %v3776_v57 = vrot.slane %v3768_v42, 5  ;;  %v6102_v42 = vpop.permute.xlu1 %413 }
  0xf0   : > { %v3336_v39 = vsel %vm255_vm4, %v3324_v10, %v3335_v29  ;;  %v3774_v59 = vunpack.c.l.b16 %v5225_v48  ;;  %v3778_v60 = vrot.slane %v3769_v35, 4  ;;  %v3780_v61 = vrot.slane %v3770_v50, 3  ;;  %v5226_v16 = vld [vmem:[%s5451_s30 + $0x4] ss:$0 sps:$4 sm:$0x88]  }
  0xf1   : > { %v3338_v45 = vsel %vm258_vm5, %v3337_v20, %v3336_v39  ;;  %v3777_v49 = vsel %vm243_vm0, %v3776_v57, %v3775_v52  ;;  %v3782_v62 = vrot.slane %v3771_v51, 2  ;;  %v3784_v3 = vrot.slane %v3772_v56, 1  ;;  %v5227_v17 = vld [vmem:[%s5451_s30 + $0x10] ss:$0 sps:$4 sm:$0x88]   ;;  %v6107_v56 = vpop.permute.xlu0 %290 }
  0xf2   : > { %v3340_v55 = vsel %vm261_vm6, %v3339_v12, %v3338_v45  ;;  %v3773_v6 = vunpack.c.l.b16 %v5224_v41  ;;  %v3779_v14 = vsel %vm246_vm1, %v3778_v60, %v3777_v49  ;;  %v3787_v15 = vrot.slane %v3774_v59, 7  ;;  %v5228_v19 = vld [vmem:[%s5451_s30 + $0x1c] ss:$0 sps:$4 sm:$0x88]   ;;  %294 = vst.msk [vmem:[#allocation2] sm:$0xf0] %vm293_vm8, %v6107_v56 }
  0xf3   : > { %v6084_v58 = vpack.c.b16 %v3340_v55, %v3340_v55  ;;  %v3781_v10 = vsel %vm249_vm2, %v3780_v61, %v3779_v14  ;;  %v5229_v11 = vld [vmem:[%s5451_s30 + $0x28] ss:$0 sps:$4 sm:$0x88]   ;;  %v5230_v12 = vld [vmem:[%s5451_s30 + $0x34] ss:$0 sps:$4 sm:$0x88]   ;;  %v3380_v22 = vunpack.c.l.b16 %v5226_v16  ;;  %v3381_v29 = vunpack.c.l.b16 %v5227_v17 }
  0xf4   : > { %v3783_v20 = vsel %vm252_vm3, %v3782_v62, %v3781_v10  ;;  %v5231_v27 = vld [vmem:[%s5451_s30 + $0x40] ss:$0 sps:$4 sm:$0x88]   ;;  %v5232_v28 = vld [vmem:[%s5451_s30 + $0x4c] ss:$0 sps:$4 sm:$0x88]   ;;  %v3382_v30 = vunpack.c.l.b16 %v5228_v19  ;;  %v3383_v39 = vunpack.c.l.b16 %v5229_v11  ;;  %v3384_v40 = vunpack.c.l.b16 %v5230_v12 }
  0xf5   : > { %7138 = vst [vmem:[#allocation7_spill] sm:$0xff] %v6084_v58  ;;  %3344 = vrot.lane.b32.xlu1 %v6084_v58, %s5363_s4  ;;  %v3785_v26 = vsel %vm255_vm4, %v3784_v3, %v3783_v20  ;;  %v5233_v32 = vld [vmem:[%s5451_s30 + $0x58] ss:$0 sps:$4 sm:$0x88]   ;;  %v3388_v41 = vrot.slane %v3380_v22, 6  ;;  %v3385_v45 = vunpack.c.l.b16 %v5231_v27  ;;  %v3389_v48 = vrot.slane %v3381_v29, 5  ;;  %v6120_v20 = vpop.permute.xlu1 %784 }
  0xf6   : > { %v3786_v31 = vsel %vm258_vm5, %v3773_v6, %v3785_v26  ;;  %v3387_v51 = vunpack.c.l.b16 %v5233_v32  ;;  %v3391_v52 = vrot.slane %v3382_v30, 4  ;;  %v3393_v55 = vrot.slane %v3383_v39, 3  ;;  %v5234_v3 = vld [vmem:[%s5451_s30 + $0x4] ss:$0 sps:$4 sm:$0x88]   ;;  %v353_v39 = vpop.permute.xlu0 %352 }
  0xf7   : > { %v3788_v35 = vsel %vm261_vm6, %v3787_v15, %v3786_v31  ;;  %v3390_v57 = vsel %vm243_vm0, %v3389_v48, %v3388_v41  ;;  %v3395_v59 = vrot.slane %v3384_v40, 2  ;;  %v3397_v60 = vrot.slane %v3385_v45, 1  ;;  %v5235_v14 = vld [vmem:[%s5451_s30 + $0x10] ss:$0 sps:$4 sm:$0x88]  }
  0xf8   : > { %v6105_v50 = vpack.c.b16 %v3788_v35, %v3788_v35  ;;  %v3386_v61 = vunpack.c.l.b16 %v5232_v28  ;;  %v3392_v49 = vsel %vm246_vm1, %v3391_v52, %v3390_v57  ;;  %v3400_v62 = vrot.slane %v3387_v51, 7  ;;  %v5236_v15 = vld [vmem:[%s5451_s30 + $0x1c] ss:$0 sps:$4 sm:$0x88]   ;;  %416 = vst.msk [vmem:[#allocation2 + $0x10] sm:$0xf0] %vm293_vm8, %v6102_v42 }
  0xf9   : > { %v3394_v6 = vsel %vm249_vm2, %v3393_v55, %v3392_v49  ;;  %v5237_v10 = vld [vmem:[%s5451_s30 + $0x28] ss:$0 sps:$4 sm:$0x88]   ;;  %v5238_v17 = vld [vmem:[%s5451_s30 + $0x34] ss:$0 sps:$4 sm:$0x88]   ;;  %v3828_v19 = vunpack.c.l.b16 %v5234_v3  ;;  %v3829_v26 = vunpack.c.l.b16 %v5235_v14  ;;  %v3830_v27 = vunpack.c.l.b16 %v5236_v15  ;;  %v6136_v3 = vpop.permute.xlu1 %845 }
  0xfa   : > { %7139 = vst [vmem:[#allocation8_spill] sm:$0xff] %v6105_v50  ;;  %3792 = vrot.lane.b32.xlu1 %v6105_v50, %s5363_s4  ;;  %v3396_v16 = vsel %vm252_vm3, %v3395_v59, %v3394_v6  ;;  %v5239_v12 = vld [vmem:[%s5451_s30 + $0x40] ss:$0 sps:$4 sm:$0x88]   ;;  %v3831_v30 = vunpack.c.l.b16 %v5237_v10  ;;  %v3832_v31 = vunpack.c.l.b16 %v5238_v17  ;;  %v475_v6 = vpop.permute.xlu0 %474  ;;  %355 = vst.msk [vmem:[#allocation2 + $0x8] sm:$0xf0] %vm293_vm8, %v353_v39 }
  0xfb   : > { %v3398_v11 = vsel %vm255_vm4, %v3397_v60, %v3396_v16  ;;  %v5240_v22 = vld [vmem:[%s5451_s30 + $0x4c] ss:$0 sps:$4 sm:$0x88]   ;;  %v5241_v29 = vld [vmem:[%s5451_s30 + $0x58] ss:$0 sps:$4 sm:$0x88]   ;;  %v3833_v41 = vunpack.c.l.b16 %v5239_v12 }
  0xfc   : > { %v3399_v28 = vsel %vm258_vm5, %v3386_v61, %v3398_v11  ;;  %v3836_v32 = vrot.slane %v3828_v19, 7  ;;  %v3834_v35 = vunpack.c.l.b16 %v5240_v22  ;;  %v3837_v45 = vrot.slane %v3829_v26, 6  ;;  %v5242_v49 = vld [vmem:[%s5451_s30 + $0x4] ss:$0 sps:$4 sm:$0x88]  }
  0xfd   : > { %v3401_v40 = vsel %vm261_vm6, %v3400_v62, %v3399_v28  ;;  %v3839_v51 = vrot.slane %v3830_v27, 5  ;;  %v3841_v52 = vrot.slane %v3831_v30, 4  ;;  %v3843_v57 = vrot.slane %v3832_v31, 3  ;;  %v5243_v62 = vld [vmem:[%s5451_s30 + $0x10] ss:$0 sps:$4 sm:$0x88]  }
  0xfe   : > { %v6128_v48 = vpack.c.b16 %v3401_v40, %v3401_v40  ;;  %v3838_v55 = vsel %vm243_vm0, %v3837_v45, %v3836_v32  ;;  %v3845_v59 = vrot.slane %v3833_v41, 2  ;;  %v3847_v60 = vrot.slane %v3834_v35, 1  ;;  %v5244_v16 = vld [vmem:[%s5451_s30 + $0x1c] ss:$0 sps:$4 sm:$0x88]  }
  0xff   : > { %v3840_v61 = vsel %vm246_vm1, %v3839_v51, %v3838_v55  ;;  %v3835_v14 = vunpack.c.l.b16 %v5241_v29  ;;  %v5245_v10 = vld [vmem:[%s5451_s30 + $0x28] ss:$0 sps:$4 sm:$0x88]   ;;  %v5246_v19 = vld [vmem:[%s5451_s30 + $0x34] ss:$0 sps:$4 sm:$0x88]   ;;  %v3441_v12 = vunpack.c.l.b16 %v5242_v49  ;;  %v3442_v22 = vunpack.c.l.b16 %v5243_v62  ;;  %v536_v49 = vpop.permute.xlu0 %535 }
 0x100   : > { %7140 = vst [vmem:[#allocation9_spill] sm:$0xff] %v6128_v48  ;;  %3405 = vrot.lane.b32.xlu0 %v6128_v48, %s5363_s4  ;;  %v3842_v15 = vsel %vm249_vm2, %v3841_v52, %v3840_v61  ;;  %v5247_v11 = vld [vmem:[%s5451_s30 + $0x40] ss:$0 sps:$4 sm:$0x88]   ;;  %v3443_v30 = vunpack.c.l.b16 %v5244_v16  ;;  %v3444_v31 = vunpack.c.l.b16 %v5245_v10  ;;  %v3445_v40 = vunpack.c.l.b16 %v5246_v19  ;;  %v6151_v61 = vpop.permute.xlu1 %906  ;;  %477 = vst.msk [vmem:[#allocation2 + $0x18] sm:$0xf0] %vm293_vm8, %v475_v6 }
 0x101   : > { %v3844_v17 = vsel %vm252_vm3, %v3843_v57, %v3842_v15  ;;  %v5248_v27 = vld [vmem:[%s5451_s30 + $0x4c] ss:$0 sps:$4 sm:$0x88]   ;;  %v5249_v28 = vld [vmem:[%s5451_s30 + $0x58] ss:$0 sps:$4 sm:$0x88]   ;;  %v3446_v29 = vunpack.c.l.b16 %v5247_v11 }
 0x102   : > { %v3846_v26 = vsel %vm255_vm4, %v3845_v59, %v3844_v17  ;;  %v3449_v41 = vrot.slane %v3441_v12, 7  ;;  %v3447_v45 = vunpack.c.l.b16 %v5248_v27  ;;  %v3450_v51 = vrot.slane %v3442_v22, 6  ;;  %v6158_v16 = vld [vmem:[%s5451_s30 + $0x8] ss:$0 sps:$4 sm:$0x11]  }
 0x103   : > { %v3848_v32 = vsel %vm258_vm5, %v3847_v60, %v3846_v26  ;;  %v3452_v55 = vrot.slane %v3443_v30, 5  ;;  %v3454_v57 = vrot.slane %v3444_v31, 4  ;;  %v3456_v59 = vrot.slane %v3445_v40, 3  ;;  %v5251_v19 = vld [vmem:[%s5451_s30 + $0x14] ss:$0 sps:$4 sm:$0x11]  }
 0x104   : > { %v3849_v35 = vsel %vm261_vm6, %v3835_v14, %v3848_v32  ;;  %v3451_v60 = vsel %vm243_vm0, %v3450_v51, %v3449_v41  ;;  %v3458_v62 = vrot.slane %v3446_v29, 2  ;;  %v3460_v15 = vrot.slane %v3447_v45, 1  ;;  %v5252_v11 = vld [vmem:[%s5451_s30 + $0x20] ss:$0 sps:$4 sm:$0x11]   ;;  %v6175_v30 = vpop.permute.xlu1 %1028 }
 0x105   : > { %v6149_v52 = vpack.c.b16 %v3849_v35, %v3849_v35  ;;  %v3453_v14 = vsel %vm246_vm1, %v3452_v55, %v3451_v60  ;;  %v3448_v10 = vunpack.c.l.b16 %v5249_v28  ;;  %538 = vst.msk [vmem:[#allocation2 + $0x20] sm:$0xf0] %vm293_vm8, %v536_v49  ;;  %v5253_v22 = vld [vmem:[%s5451_s30 + $0x2c] ss:$0 sps:$4 sm:$0x11]   ;;  %v3889_v27 = vunpack.c.l.b16 %v6158_v16  ;;  %v6183_v49 = vpop.permute.xlu0 %967 }
 0x106   : > { %v3455_v17 = vsel %vm249_vm2, %v3454_v57, %v3453_v14  ;;  %v5254_v26 = vld [vmem:[%s5451_s30 + $0x38] ss:$0 sps:$4 sm:$0x11]   ;;  %v3914_v28 = vunpack.c.h.b16 %v6158_v16  ;;  %v5255_v42 = vld [vmem:[%s5451_s30 + $0x44] ss:$0 sps:$4 sm:$0x11]   ;;  %v3890_v39 = vunpack.c.l.b16 %v5251_v19  ;;  %v3891_v32 = vunpack.c.l.b16 %v5252_v11 }
 0x107   : > { %7141 = vst [vmem:[#allocation10_spill] sm:$0xff] %v6149_v52  ;;  %3853 = vrot.lane.b32.xlu1 %v6149_v52, %s5363_s4  ;;  %v3457_v12 = vsel %vm252_vm3, %v3456_v59, %v3455_v17  ;;  %v5256_v31 = vld [vmem:[%s5451_s30 + $0x50] ss:$0 sps:$4 sm:$0x11]   ;;  %v3915_v40 = vunpack.c.h.b16 %v5251_v19  ;;  %v3892_v41 = vunpack.c.l.b16 %v5253_v22  ;;  %v3893_v35 = vunpack.c.l.b16 %v5254_v26 }
 0x108   : > { %v3459_v56 = vsel %vm255_vm4, %v3458_v62, %v3457_v12  ;;  %v5257_v29 = vld [vmem:[%s5451_s30 + $0x5c] ss:$0 sps:$4 sm:$0x11]   ;;  %v3916_v45 = vunpack.c.h.b16 %v5252_v11  ;;  %v3894_v55 = vunpack.c.l.b16 %v5255_v42  ;;  %v3895_v57 = vunpack.c.l.b16 %v5256_v31  ;;  %v6187_v17 = vpop.permute.xlu1 %1331 }
 0x109   : > { %v3461_v6 = vsel %vm258_vm5, %v3460_v15, %v3459_v56  ;;  %v3897_v59 = vrot.slane %v3890_v39, 7  ;;  %v3896_v62 = vunpack.c.l.b16 %v5257_v29  ;;  %v3899_v14 = vrot.slane %v3891_v32, 6 }
 0x10a   : > { %v3462_v51 = vsel %vm261_vm6, %v3448_v10, %v3461_v6  ;;  %v3901_v16 = vrot.slane %v3892_v41, 5  ;;  %v3903_v19 = vrot.slane %v3893_v35, 4  ;;  %v3905_v12 = vrot.slane %v3894_v55, 3 }
 0x10b   : > { %v6185_v60 = vpack.c.b16 %v3462_v51, %v3462_v51  ;;  %v3898_v15 = vsel %vm243_vm0, %v3897_v59, %v3889_v27  ;;  %v3907_v56 = vrot.slane %v3895_v57, 2  ;;  %v3909_v11 = vrot.slane %v3896_v62, 1  ;;  %v6193_v51 = vld [vmem:[#allocation2] sm:$0xff]  ;;  %v1271_v27 = vpop.permute.xlu0 %1270 }
 0x10c   : > { %v3900_v10 = vsel %vm246_vm1, %v3899_v14, %v3898_v15  ;;  %v3917_v39 = vunpack.c.h.b16 %v5253_v22  ;;  %v3918_v6 = vunpack.c.h.b16 %v5254_v26  ;;  %v3919_v41 = vunpack.c.h.b16 %v5255_v42  ;;  %783 = vst.msk [vmem:[#allocation2] sm:$0xf] %vm265_vm7, %v5534_v36  ;;  %v6204_v57 = vpop.permute.xlu1 %1779  ;;  %v6211_v14 = vld [vmem:[%s5451_s30 + $0x14] ss:$0 sps:$4 sm:$0x11]  }
 0x10d   : > { %7142 = vst [vmem:[#allocation11_spill] sm:$0xff] %v6185_v60  ;;  %3466 = vrot.lane.b32.xlu0 %v6185_v60, %s5363_s4  ;;  %v3902_v32 = vsel %vm249_vm2, %v3901_v16, %v3900_v10  ;;  %v3920_v52 = vunpack.c.h.b16 %v5256_v31  ;;  %v3921_v50 = vunpack.c.h.b16 %v5257_v29  ;;  %787 = vst.msk [vmem:[#allocation2] sm:$0xf0] %vm293_vm8, %v6120_v20  ;;  %v3922_v55 = vrot.slane %v3915_v40, 7  ;;  %v6228_v10 = vld [vmem:[#allocation2 + $0x10] sm:$0xff] }
 0x10e   : > { %v3904_v35 = vsel %vm252_vm3, %v3903_v19, %v3902_v32  ;;  %v3924_v22 = vrot.slane %v3916_v45, 6  ;;  %v3926_v26 = vrot.slane %v3917_v39, 5  ;;  %v3928_v31 = vrot.slane %v3918_v6, 4  ;;  %v6220_v19 = vld [vmem:[%s5451_s30 + $0x20] ss:$0 sps:$4 sm:$0x11]  }
 0x10f   : > { %v3906_v42 = vsel %vm255_vm4, %v3905_v12, %v3904_v35  ;;  %v3923_v36 = vsel %vm243_vm0, %v3922_v55, %v3914_v28  ;;  %v3930_v20 = vrot.slane %v3919_v41, 3  ;;  %v3932_v59 = vrot.slane %v3920_v52, 2  ;;  %v6213_v16 = vpop.permute.xlu0 %1392  ;;  %v6217_v28 = vld [vmem:[%s5451_s30 + $0x8] ss:$0 sps:$4 sm:$0x11]  }
 0x110   : > { %v3908_v29 = vsel %vm258_vm5, %v3907_v56, %v3906_v42  ;;  %v3925_v45 = vsel %vm246_vm1, %v3924_v22, %v3923_v36  ;;  %v3934_v62 = vrot.slane %v3921_v50, 1  ;;  %v6223_v12 = vld [vmem:[%s5451_s30 + $0x2c] ss:$0 sps:$4 sm:$0x11]   ;;  %905 = vst.msk [vmem:[#allocation2 + $0x10] sm:$0xf] %vm265_vm7, %v5589_v1  ;;  %v6256_v22 = vpop.permute.xlu1 %1840  ;;  %v1898_v60 = vpack.c.b16 %v5776_v24, %v5776_v24 }
 0x111   : > { %v6207_v40 = vsel %vm261_vm6, %v3909_v11, %v3908_v29  ;;  %v3927_v15 = vsel %vm249_vm2, %v3926_v26, %v3925_v45  ;;  %v6226_v56 = vld [vmem:[%s5451_s30 + $0x38] ss:$0 sps:$4 sm:$0x11]   ;;  %v6232_v50 = vld [vmem:[%s5451_s30 + $0x44] ss:$0 sps:$4 sm:$0x11]   ;;  %v3528_v26 = vunpack.c.h.b16 %v6211_v14  ;;  %v3529_v29 = vunpack.c.h.b16 %v6220_v19 }
 0x112   : > { %7143 = vst [vmem:[#allocation12_spill] sm:$0xff] %v6207_v40  ;;  %7144 = vst [vmem:[#allocation13_spill] sm:$0xff] %v6226_v56  ;;  %v3929_v52 = vsel %vm252_vm3, %v3928_v31, %v3927_v15  ;;  %v6235_v11 = vld [vmem:[%s5451_s30 + $0x50] ss:$0 sps:$4 sm:$0x11]   ;;  %v6242_v6 = vld [vmem:[#allocation2 + $0x8] sm:$0xff]  ;;  %v3527_v31 = vunpack.c.h.b16 %v6217_v28  ;;  %v3530_v36 = vunpack.c.h.b16 %v6223_v12 }
 0x113   : > { %7145 = vst [vmem:[#allocation14_spill] sm:$0xff] %v6232_v50  ;;  %7146 = vst [vmem:[#allocation15_spill] sm:$0xff] %v6235_v11  ;;  %v6238_v39 = vld [vmem:[%s5451_s30 + $0x5c] ss:$0 sps:$4 sm:$0x11]   ;;  %v3931_v32 = vsel %vm255_vm4, %v3930_v20, %v3929_v52  ;;  %v3531_v20 = vunpack.c.h.b16 %v6226_v56 }
 0x114   : > { %7147 = vst [vmem:[#allocation16_spill] sm:$0xff] %v6238_v39  ;;  %909 = vst.msk [vmem:[#allocation2 + $0x10] sm:$0xf0] %vm293_vm8, %v6151_v61  ;;  %v3933_v41 = vsel %vm258_vm5, %v3932_v59, %v3931_v32  ;;  %v5266_v1 = vld [vmem:[%s5451_s30 + $0x8] ss:$0 sps:$4 sm:$0x11]  }
 0x115   : > { %844 = vst.msk [vmem:[#allocation2 + $0x8] sm:$0xf] %vm265_vm7, %v5553_v2  ;;  %v3935_v35 = vsel %vm261_vm6, %v3934_v62, %v3933_v41  ;;  %v6254_v55 = vld [vmem:[#allocation2] sm:$0xff]  ;;  %v6260_v42 = vld [vmem:[%s5451_s30 + $0x14] ss:$0 sps:$4 sm:$0x11]   ;;  %v3532_v62 = vunpack.c.h.b16 %v6232_v50  ;;  %v3973_v50 = vunpack.c.l.b16 %v5266_v1 }
 0x116   : > { %848 = vst.msk [vmem:[#allocation2 + $0x8] sm:$0xf0] %vm293_vm8, %v6136_v3  ;;  %v3936_v61 = vpack.c.b16 %v3935_v35, %v3935_v35  ;;  %v5268_v2 = vld [vmem:[%s5451_s30 + $0x20] ss:$0 sps:$4 sm:$0x11]   ;;  %v6266_v3 = vpop.permute.xlu0 %1453  ;;  %v3535_v32 = vrot.slane %v3528_v26, 7 }
 0x117   : > { %1269 = vst.msk [vmem:[#allocation2] sm:$0xf] %vm265_vm7, %v5663_v4  ;;  %v5269_v45 = vld [vmem:[%s5451_s30 + $0x2c] ss:$0 sps:$4 sm:$0x11]   ;;  %v3533_v4 = vunpack.c.h.b16 %v6235_v11  ;;  %v3537_v41 = vrot.slane %v3529_v29, 6  ;;  %v6294_v29 = vpop.permute.xlu1 %1924 }
 0x118   : > { %1273 = vst.msk [vmem:[#allocation2] sm:$0xf0] %vm293_vm8, %v1271_v27  ;;  %v5270_v59 = vld [vmem:[%s5451_s30 + $0x38] ss:$0 sps:$4 sm:$0x11]   ;;  %3937 = vrot.lane.b32.xlu1 %v3936_v61, %s5363_s4  ;;  %v3534_v27 = vunpack.c.h.b16 %v6238_v39  ;;  %v3539_v35 = vrot.slane %v3530_v36, 5  ;;  %v1511_v61 = vpack.c.b16 %v5805_v18, %v5805_v18  ;;  %v3536_v11 = vsel %vm243_vm0, %v3535_v32, %v3527_v31 }
 0x119   : > { %v5271_v15 = vld [vmem:[%s5451_s30 + $0x44] ss:$0 sps:$4 sm:$0x11]   ;;  %v5272_v52 = vld [vmem:[%s5451_s30 + $0x50] ss:$0 sps:$4 sm:$0x11]   ;;  %v3538_v36 = vsel %vm246_vm1, %v3537_v41, %v3536_v11 }
 0x11a   : > { %v5273_v40 = vld [vmem:[%s5451_s30 + $0x5c] ss:$0 sps:$4 sm:$0x11]   ;;  %v3541_v21 = vrot.slane %v3531_v20, 4  ;;  %v3543_v48 = vrot.slane %v3532_v62, 3  ;;  %v3545_v56 = vrot.slane %v3533_v4, 2  ;;  %v3974_v20 = vunpack.c.l.b16 %v6260_v42 }
 0x11b   : > { %v3547_v39 = vrot.slane %v3534_v27, 1  ;;  %v6290_v26 = vld [vmem:[#allocation2 + $0x18] sm:$0xff]  ;;  %v3975_v62 = vunpack.c.l.b16 %v5268_v2  ;;  %v3976_v4 = vunpack.c.l.b16 %v5269_v45  ;;  %v3540_v1 = vsel %vm249_vm2, %v3539_v35, %v3538_v36  ;;  %v6305_v11 = vld [vmem:[#allocation2 + $0x10] sm:$0xff]  ;;  %v5274_v41 = vld [vmem:[%s5451_s30 + $0x8] ss:$0 sps:$4 sm:$0x22]  }
 0x11c   : > { %966 = vst.msk [vmem:[#allocation2 + $0x18] sm:$0xf] %vm265_vm7, %v5625_v0  ;;  %v3978_v31 = vunpack.c.l.b16 %v5271_v15  ;;  %v3979_v27 = vunpack.c.l.b16 %v5272_v52  ;;  %v3542_v42 = vsel %vm252_vm3, %v3541_v21, %v3540_v1  ;;  %v3980_v2 = vunpack.c.l.b16 %v5273_v40  ;;  %1391 = vst.msk [vmem:[#allocation2 + $0x10] sm:$0xf] %vm265_vm7, %v5720_v43  ;;  %v6311_v0 = vld [vmem:[#allocation2 + $0x20] sm:$0xff]  ;;  %v6321_v43 = vpop.permute.xlu1 %2046 }
 0x11d   : > { %v6283_v58 = vld [vmem:[#allocation2 + $0x8] sm:$0xff]  ;;  %970 = vst.msk [vmem:[#allocation2 + $0x18] sm:$0xf0] %vm293_vm8, %v6183_v49  ;;  %v3981_v45 = vrot.slane %v3973_v50, 1  ;;  %v3983_v32 = vrot.slane %v3975_v62, 7  ;;  %v3544_v49 = vsel %vm255_vm4, %v3543_v48, %v3542_v42  ;;  %v4034_v1 = vunpack.c.l.b16 %v5274_v41 }
 0x11e   : > { %1330 = vst.msk [vmem:[#allocation2 + $0x8] sm:$0xf] %vm265_vm7, %v5682_v37  ;;  %v6302_v37 = vpop.permute.xlu0 %1537  ;;  %v3989_v21 = vrot.slane %v3978_v31, 4  ;;  %v5275_v40 = vld [vmem:[%s5451_s30 + $0x14] ss:$0 sps:$4 sm:$0x22]   ;;  %v3546_v50 = vsel %vm258_vm5, %v3545_v56, %v3544_v49  ;;  %v2285_v56 = vpack.c.b16 %v5866_v44, %v5866_v44 }
 0x11f   : > { %1334 = vst.msk [vmem:[#allocation2 + $0x8] sm:$0xf0] %vm293_vm8, %v6187_v17  ;;  %v3977_v17 = vunpack.c.l.b16 %v5270_v59  ;;  %1395 = vst.msk [vmem:[#allocation2 + $0x10] sm:$0xf0] %vm293_vm8, %v6213_v16  ;;  %v3985_v59 = vrot.slane %v3976_v4, 6  ;;  %v3982_v16 = vsel %vm243_vm0, %v3974_v20, %v3981_v45  ;;  %v3991_v48 = vrot.slane %v3979_v27, 3 }
 0x120   : > { %1027 = vst.msk [vmem:[#allocation2 + $0x20] sm:$0xf] %vm265_vm7, %v5644_v34  ;;  %v3993_v52 = vrot.slane %v3980_v2, 2  ;;  %v5276_v35 = vld [vmem:[%s5451_s30 + $0x20] ss:$0 sps:$4 sm:$0x22]   ;;  %v3548_v62 = vsel %vm261_vm6, %v3547_v39, %v3546_v50  ;;  %v3984_v34 = vsel %vm246_vm1, %v3983_v32, %v3982_v16 }
 0x121   : > { %v3987_v15 = vrot.slane %v3977_v17, 5  ;;  %1031 = vst.msk [vmem:[#allocation2 + $0x20] sm:$0xf0] %vm293_vm8, %v6175_v30  ;;  %v6326_v36 = vld [vmem:[#allocation2] sm:$0xff]  ;;  %v4035_v17 = vunpack.c.l.b16 %v5275_v40  ;;  %v3549_v20 = vpack.c.b16 %v3548_v62, %v3548_v62  ;;  %v3986_v31 = vsel %vm249_vm2, %v3985_v59, %v3984_v34 }
 0x122   : > { %v5277_v4 = vld [vmem:[%s5451_s30 + $0x2c] ss:$0 sps:$4 sm:$0x22]   ;;  %v5278_v30 = vld [vmem:[%s5451_s30 + $0x38] ss:$0 sps:$4 sm:$0x22]   ;;  %v4036_v42 = vunpack.c.l.b16 %v5276_v35  ;;  %v6341_v2 = vpop.permute.xlu0 %1985 }
 0x123   : > { %1778 = vst.msk [vmem:[#allocation2] sm:$0xf] %vm265_vm7, %v5701_v8  ;;  %v5279_v39 = vld [vmem:[%s5451_s30 + $0x44] ss:$0 sps:$4 sm:$0x22]   ;;  %v3988_v45 = vsel %vm252_vm3, %v3987_v15, %v3986_v31  ;;  %v4037_v41 = vunpack.c.l.b16 %v5277_v4  ;;  %v4038_v49 = vunpack.c.l.b16 %v5278_v30  ;;  %v4042_v8 = vrot.slane %v4034_v1, 2  ;;  %3550 = vrot.lane.b32.xlu0 %v3549_v20, %s5363_s4 }
 0x124   : > { %1782 = vst.msk [vmem:[#allocation2] sm:$0xf0] %vm293_vm8, %v6204_v57  ;;  %v5280_v27 = vld [vmem:[%s5451_s30 + $0x50] ss:$0 sps:$4 sm:$0x22]   ;;  %v6345_v40 = vld [vmem:[#allocation2 + $0x18] sm:$0xff]  ;;  %v3990_v44 = vsel %vm255_vm4, %v3989_v21, %v3988_v45  ;;  %v4039_v59 = vunpack.c.l.b16 %v5279_v39 }
 0x125   : > { %v5281_v32 = vld [vmem:[%s5451_s30 + $0x5c] ss:$0 sps:$4 sm:$0x22]   ;;  %v4040_v16 = vunpack.c.l.b16 %v5280_v27  ;;  %v4043_v35 = vrot.slane %v4035_v17, 1  ;;  %1452 = vst.msk [vmem:[#allocation2 + $0x18] sm:$0xf] %vm265_vm7, %v5758_v53  ;;  %v3992_v15 = vsel %vm258_vm5, %v3991_v48, %v3990_v44 }
 0x126   : > { %v6347_v57 = vld [vmem:[#allocation2 + $0x8] sm:$0xff]  ;;  %1456 = vst.msk [vmem:[#allocation2 + $0x18] sm:$0xf0] %vm293_vm8, %v6266_v3  ;;  %v4041_v62 = vunpack.c.l.b16 %v5281_v32  ;;  %v4046_v34 = vrot.slane %v4037_v41, 7  ;;  %v4048_v21 = vrot.slane %v4038_v49, 6  ;;  %v6360_v4 = vld [vmem:[#allocation2 + $0x10] sm:$0xff]  ;;  %v3994_v30 = vsel %vm261_vm6, %v3993_v52, %v3992_v15 }
 0x127   : > { %1839 = vst.msk [vmem:[#allocation2 + $0x8] sm:$0xf] %vm265_vm7, %v5739_v13  ;;  %v4044_v53 = vsel %vm243_vm0, %v4043_v35, %v4042_v8  ;;  %v4050_v1 = vrot.slane %v4039_v59, 5  ;;  %v4052_v17 = vrot.slane %v4040_v16, 4  ;;  %1900 = vst.msk [vmem:[#allocation2 + $0x10] sm:$0xf] %vm265_vm7, %v1898_v60  ;;  %v6372_v3 = vpack.c.b16 %v3994_v30, %v3994_v30 }
 0x128   : > { %1843 = vst.msk [vmem:[#allocation2 + $0x8] sm:$0xf0] %vm293_vm8, %v6256_v22  ;;  %v6364_v13 = vld [vmem:[#allocation2 + $0x20] sm:$0xff]  ;;  %1927 = vst.msk [vmem:[#allocation2 + $0x10] sm:$0xf0] %vm293_vm8, %v6294_v29  ;;  %v2312_v22 = vpop.permute.xlu0 %2311  ;;  %v4045_v48 = vsel %vm246_vm1, %v4036_v42, %v4044_v53  ;;  %v4054_v52 = vrot.slane %v4041_v62, 3 }
 0x129   : > { %1513 = vst.msk [vmem:[#allocation2 + $0x20] sm:$0xf] %vm265_vm7, %v1511_v61  ;;  %v4047_v24 = vsel %vm249_vm2, %v4046_v34, %v4045_v48  ;;  %v5364_v60 = vmov 0.0   ;;  %3998 = vrot.lane.b32.xlu0 %v6372_v3, %s5363_s4  ;;  %v5365_v61 = vmov 0   ;;  %v7151_v59 = vld [vmem:[#allocation14_spill] sm:$0xff]  ;;  %v7152_v34 = vld [vmem:[#allocation15_spill] sm:$0xff] }
 0x12a   : > { %1540 = vst.msk [vmem:[#allocation2 + $0x20] sm:$0xf0] %vm293_vm8, %v6302_v37  ;;  %4737 = vmatprep.subr.bf16.mxu0 %v5364_v60  ;;  %4757 = vmatprep.subr.bf16.mxu1 %v5364_v60  ;;  %v4049_v18 = vsel %vm252_vm3, %v4048_v21, %v4047_v24  ;;  %v3507_v16 = vunpack.c.l.b16 %v7151_v59  ;;  %v3508_v21 = vunpack.c.l.b16 %v7152_v34  ;;  %v6518_v30 = vld [vmem:[%s7122_s1] sm:$0xff]   ;;  %v7154_v48 = vld [vmem:[#allocation16_spill] sm:$0xff]  ;;  %s5368_s30 = smov [#allocation3]  }
 0x12b   : > { %v6384_v29 = vld [vmem:[#allocation2] sm:$0xff]  ;;  %4738 = vmatpush3.bf16.msra.mxu0 %v6193_v51  ;;  %185 = vst.msk [vmem:[#allocation2 + $0x28] sm:$0xff] %vm184_vm9, %v5365_v61  ;;  %186 = vst.msk [vmem:[#allocation2 + $0x30] sm:$0xff] %vm184_vm9, %v5365_v61  ;;  %v4051_v20 = vsel %vm255_vm4, %v4050_v1, %v4049_v18  ;;  %4758 = vmatpush3.bf16.msra.mxu1 %v6254_v55 }
 0x12c   : > { %v2373_v50 = vpop.permute.xlu1 %2372  ;;  %187 = vst.msk [vmem:[#allocation2 + $0x38] sm:$0xff] %vm184_vm9, %v5365_v61  ;;  %4739 = vmatprep.subr.bf16.mxu0 %v5364_v60  ;;  %v4053_v31 = vsel %vm258_vm5, %v4052_v17, %v4051_v20  ;;  %4759 = vmatprep.subr.bf16.mxu1 %v5364_v60  ;;  %v3518_v53 = vrot.slane %v3507_v16, 3  ;;  %v3520_v24 = vrot.slane %v3508_v21, 2 }
 0x12d   : > { %2287 = vst.msk [vmem:[#allocation2] sm:$0xf] %vm265_vm7, %v2285_v56  ;;  %4753 = vmatprep.mubr.msk.bf16.mxu0 %vm5366_vm10, %v5364_v60  ;;  %v6399_v51 = vld [vmem:[#allocation2 + $0x18] sm:$0xff]  ;;  %v4055_v27 = vsel %vm261_vm6, %v4054_v52, %v4053_v31  ;;  %4773 = vmatprep.mubr.msk.bf16.mxu1 %vm5366_vm10, %v5364_v60  ;;  %v3509_v52 = vunpack.c.l.b16 %v7154_v48 }
 0x12e   : > { %2314 = vst.msk [vmem:[#allocation2] sm:$0xf0] %vm293_vm8, %v2312_v22  ;;  %1988 = vst.msk [vmem:[#allocation2 + $0x18] sm:$0xf0] %vm293_vm8, %v6341_v2  ;;  %4961 = vset.pattern.permute.xlu1 %v5365_v61  ;;  %v6413_v55 = vpack.c.b16 %v4055_v27, %v4055_v27  ;;  %4960 = vset.pattern.permute.xlu0 %v5365_v61  ;;  %v7153_v22 = vld [vmem:[#allocation6_spill] sm:$0xff]  ;;  %v7156_v27 = vld [vmem:[#allocation8_spill] sm:$0xff] }
 0x12f   : > { %v6401_v56 = vld [vmem:[#allocation2 + $0x8] sm:$0xff]  ;;  %1984 = vst.msk [vmem:[#allocation2 + $0x18] sm:$0xf] %vm265_vm7, %v5832_v33  ;;  %4740 = vmatpush3.bf16.msra.mxu0 %v6242_v6  ;;  %v6416_v42 = vld [vmem:[#allocation2 + $0x10] sm:$0xff]  ;;  %v190_v33 = vld [vmem:[%s7123_s2] sm:$0xff]  ;;  %4760 = vmatpush3.bf16.msra.mxu1 %v6283_v58  ;;  %v3522_v61 = vrot.slane %v3509_v52, 1 }
 0x130   : > { %2371 = vst.msk [vmem:[#allocation2 + $0x8] sm:$0xf] %vm265_vm7, %v5894_v47  ;;  %4741 = vmatprep.subr.bf16.mxu0 %v5364_v60  ;;  %2432 = vst.msk [vmem:[#allocation2 + $0x10] sm:$0xf] %vm265_vm7, %v5932_v63  ;;  %4059 = vrot.lane.b32.xlu1 %v6413_v55, %s5363_s4  ;;  %v191_v58 = vld [vmem:[%s7123_s2 + $0x8] sm:$0xff]  ;;  %s5287_s4 = sshll.u32 %s5368_s30, 4  ;;  %s5288_s4 = int_to_ptr.vmem [resolvable:$false] %s5287_s4 }
 0x131   : > { %2375 = vst.msk [vmem:[#allocation2 + $0x8] sm:$0xf0] %vm293_vm8, %v2373_v50  ;;  %v6423_v2 = vld [vmem:[#allocation2 + $0x20] sm:$0xff]  ;;  %4761 = vmatprep.subr.bf16.mxu1 %v5364_v60  ;;  %194 = vperm.xlu0 %4960, %v190_v33   ;;  %s5289_s5 = scalar_lea.vmem %s5288_s4, 4096  ;;  %p5290_p1 = scmp.lt.s32.totalorder %s7063_s23, %s5288_s4 }
 0x132   : > { %v2798_v37 = vpop.permute.xlu1 %2797  ;;  %2045 = vst.msk [vmem:[#allocation2 + $0x20] sm:$0xf] %vm265_vm7, %v5850_v5  ;;  %v6477_v32 = vld [vmem:[#allocation2 + $0x28] sm:$0xff]  ;;  %p5291_p2 = scmp.lt.s32.totalorder %s5289_s5, %s5283_s29 }
 0x133   : > { %2049 = vst.msk [vmem:[#allocation2 + $0x20] sm:$0xf0] %vm293_vm8, %v6321_v43  ;;  %4742 = vmatpush3.bf16.msra.mxu0 %v6228_v10  ;;  %4762 = vmatpush3.bf16.msra.mxu1 %v6305_v11  ;;  %v6509_v15 = vld [vmem:[#allocation2 + $0x38] sm:$0xff] }
 0x134   : > { %4743 = vmatprep.subr.bf16.mxu0 %v5364_v60  ;;  %4763 = vmatprep.subr.bf16.mxu1 %v5364_v60  ;;  %p5292_p3 = por %p5291_p2, %p5290_p1 }
 0x135   : > { %v6439_v63 = vld [vmem:[#allocation2] sm:$0xff]  ;;  %199 = vperm.xlu1 %4961, %v191_v58   ;;  %v7158_v58 = vld [vmem:[#allocation12_spill] sm:$0xff] }
 0x136   : > { %2796 = vst.msk [vmem:[#allocation2] sm:$0xf] %vm265_vm7, %v5913_v25  ;;  %v6447_v5 = vld [vmem:[#allocation2 + $0x18] sm:$0xff]  ;;  %v3503_v25 = vunpack.c.l.b16 %v6211_v14  ;;  %p5293_p5 = pnand %p5292_p3, %p5286_p0 }
 0x137   : > { %2800 = vst.msk [vmem:[#allocation2] sm:$0xf0] %vm293_vm8, %v2798_v37  ;;  %4744 = vmatpush3.bf16.msra.mxu0 %v6290_v26  ;;  %4764 = vmatpush3.bf16.msra.mxu1 %v6345_v40  ;;  %v6498_v40 = vld [vmem:[#allocation2 + $0x30] sm:$0xff] }
 0x138   : > { %v2434_v39 = vpop.permute.xlu0 %2433  ;;  %v6449_v43 = vld [vmem:[#allocation2 + $0x8] sm:$0xff]  ;;  %2493 = vst.msk [vmem:[#allocation2 + $0x18] sm:$0xf] %vm265_vm7, %v5970_v23  ;;  %4745 = vmatprep.subr.bf16.mxu0 %v5364_v60  ;;  %4765 = vmatprep.subr.bf16.mxu1 %v5364_v60  ;;  %v3502_v23 = vunpack.c.l.b16 %v6217_v28  ;;  %v3510_v14 = vrot.slane %v3503_v25, 7 }
 0x139   : > { %2436 = vst.msk [vmem:[#allocation2 + $0x10] sm:$0xf0] %vm293_vm8, %v2434_v39 }
 0x13a   : > { %2857 = vst.msk [vmem:[#allocation2 + $0x8] sm:$0xf] %vm265_vm7, %v5951_v46  ;;  %v6463_v45 = vld [vmem:[#allocation2 + $0x20] sm:$0xff]  ;;  %v3504_v46 = vunpack.c.l.b16 %v6220_v19  ;;  %v3511_v41 = vsel %vm243_vm0, %v3510_v14, %v3502_v23 }
 0x13b   : > { %2554 = vst.msk [vmem:[#allocation2 + $0x20] sm:$0xf] %vm265_vm7, %v6008_v54  ;;  %4746 = vmatpush3.bf16.msra.mxu0 %v6311_v0  ;;  %4766 = vmatpush3.bf16.msra.mxu1 %v6364_v13  ;;  %v7148_v0 = vld [vmem:[#allocation7_spill] sm:$0xff] }
 0x13c   : > { %4747 = vmatprep.subr.bf16.mxu0 %v5364_v60  ;;  %4767 = vmatprep.subr.bf16.mxu1 %v5364_v60  ;;  %v3512_v19 = vrot.slane %v3504_v46, 6 }
 0x13e   : > { %v2859_v47 = vpop.permute.xlu1 %2858  ;;  %v6474_v26 = vld [vmem:[#allocation2] sm:$0xff]  ;;  %v3513_v44 = vsel %vm246_vm1, %v3512_v19, %v3511_v41  ;;  %v600_v19 = vlaneseq }
 0x13f   : > { %2861 = vst.msk [vmem:[#allocation2 + $0x8] sm:$0xf0] %vm293_vm8, %v2859_v47  ;;  %4748 = vmatpush3.bf16.msra.mxu0 %v6477_v32  ;;  %4768 = vmatpush3.bf16.msra.mxu1 %v6477_v32 }
 0x140   : > { %v6459_v11 = vld [vmem:[#allocation2 + $0x10] sm:$0xff]  ;;  %3282 = vst.msk [vmem:[#allocation2] sm:$0xf] %vm265_vm7, %v6065_v7  ;;  %4749 = vmatprep.subr.bf16.mxu0 %v5364_v60  ;;  %4769 = vmatprep.subr.bf16.mxu1 %v5364_v60  ;;  %v601_v41 = vshrl.u32 %v600_v19, 7 }
 0x141   : > { %2918 = vst.msk [vmem:[#allocation2 + $0x10] sm:$0xf] %vm265_vm7, %v5989_v9  ;;  %v3505_v9 = vunpack.c.l.b16 %v6223_v12  ;;  %v7149_v12 = vld [vmem:[#allocation13_spill] sm:$0xff] }
 0x142   : > { %v3506_v8 = vunpack.c.l.b16 %v7149_v12 }
 0x143   : > { %v2495_v6 = vpop.permute.xlu0 %2494  ;;  %v3514_v50 = vrot.slane %v3505_v9, 5  ;;  %4750 = vmatpush3.bf16.msra.mxu0 %v6498_v40  ;;  %4770 = vmatpush3.bf16.msra.mxu1 %v6498_v40 }
 0x144   : > { %2497 = vst.msk [vmem:[#allocation2 + $0x18] sm:$0xf0] %vm293_vm8, %v2495_v6  ;;  %v3516_v35 = vrot.slane %v3506_v8, 4  ;;  %4751 = vmatprep.subr.bf16.mxu0 %v5364_v60  ;;  %4771 = vmatprep.subr.bf16.mxu1 %v5364_v60 }
 0x145   : > { %v3515_v62 = vsel %vm249_vm2, %v3514_v50, %v3513_v44 }
 0x146   : > { %v6486_v28 = vld [vmem:[#allocation2 + $0x8] sm:$0xff]  ;;  %v3517_v13 = vsel %vm252_vm3, %v3516_v35, %v3515_v62 }
 0x147   : > { %3343 = vst.msk [vmem:[#allocation2 + $0x8] sm:$0xf] %vm265_vm7, %v7148_v0  ;;  %4752 = vmatpush3.bf16.msra.mxu0 %v6509_v15  ;;  %4772 = vmatpush3.bf16.msra.mxu1 %v6509_v15  ;;  %v3519_v18 = vsel %vm255_vm4, %v3518_v53, %v3517_v13 }
 0x148   : > { %4777 = vmatprep.subr.bf16.mxu0 %v5364_v60  ;;  %4797 = vmatprep.subr.bf16.mxu1 %v5364_v60  ;;  %v3521_v37 = vsel %vm258_vm5, %v3520_v24, %v3519_v18 }
 0x149   : > { %v2920_v10 = vpop.permute.xlu1 %2919  ;;  %v3523_v31 = vsel %vm261_vm6, %v3522_v61, %v3521_v37 }
 0x14a   : > { %2922 = vst.msk [vmem:[#allocation2 + $0x10] sm:$0xf0] %vm293_vm8, %v2920_v10  ;;  %4754 = vmatmul.mubr.bf16.vlgmr.msra.gmra.mrb[0].mxu0 %v6518_v30  ;;  %4774 = vmatmul.mubr.bf16.vlgmr.msra.gmra.mrb[0].mxu1 %v6518_v30  ;;  %v3524_v39 = vpack.c.b16 %v3523_v31, %v3523_v31 }
 0x14b   : > { %v6484_v54 = vld [vmem:[#allocation2 + $0x18] sm:$0xff]  ;;  %4778 = vmatpush3.bf16.msra.mxu0 %v6326_v36  ;;  %4798 = vmatpush3.bf16.msra.mxu1 %v6384_v29  ;;  %v7155_v29 = vld [vmem:[#allocation11_spill] sm:$0xff] }
 0x14c   : > { %2979 = vst.msk [vmem:[#allocation2 + $0x18] sm:$0xf] %vm265_vm7, %v6027_v38  ;;  %v7150_v38 = vld [vmem:[#allocation9_spill] sm:$0xff]  ;;  %4779 = vmatprep.subr.bf16.mxu0 %v5364_v60  ;;  %4799 = vmatprep.subr.bf16.mxu1 %v5364_v60 }
 0x14d   : > { %4793 = vmatprep.mubr.msk.bf16.mxu0 %vm5366_vm10, %v5364_v60  ;;  %4813 = vmatprep.mubr.msk.bf16.mxu1 %vm5366_vm10, %v5364_v60 }
 0x14f   : > { %v2556_v7 = vpop.permute.xlu0 %2555  ;;  %4780 = vmatpush3.bf16.msra.mxu0 %v6347_v57  ;;  %4800 = vmatpush3.bf16.msra.mxu1 %v6401_v56 }
 0x150   : > { %2558 = vst.msk [vmem:[#allocation2 + $0x20] sm:$0xf0] %vm293_vm8, %v2556_v7  ;;  %4781 = vmatprep.subr.bf16.mxu0 %v5364_v60  ;;  %4801 = vmatprep.subr.bf16.mxu1 %v5364_v60 }
 0x151   : > { %v6494_v49 = vld [vmem:[#allocation2 + $0x10] sm:$0xff] }
 0x152   : > { %3404 = vst.msk [vmem:[#allocation2 + $0x10] sm:$0xf] %vm265_vm7, %v7150_v38 }
 0x153   : > { %4782 = vmatpush3.bf16.msra.mxu0 %v6360_v4  ;;  %4802 = vmatpush3.bf16.msra.mxu1 %v6416_v42 }
 0x154   : > { %v2981_v1 = vpop.permute.xlu0 %2980  ;;  %4783 = vmatprep.subr.bf16.mxu0 %v5364_v60  ;;  %4803 = vmatprep.subr.bf16.mxu1 %v5364_v60 }
 0x155   : > { %2983 = vst.msk [vmem:[#allocation2 + $0x18] sm:$0xf0] %vm293_vm8, %v2981_v1 }
 0x157   : > { %v6521_v17 = vld [vmem:[#allocation2 + $0x20] sm:$0xff]  ;;  %4784 = vmatpush3.bf16.msra.mxu0 %v6399_v51  ;;  %4804 = vmatpush3.bf16.msra.mxu1 %v6447_v5 }
 0x158   : > { %3040 = vst.msk [vmem:[#allocation2 + $0x20] sm:$0xf] %vm265_vm7, %v7153_v22  ;;  %4785 = vmatprep.subr.bf16.mxu0 %v5364_v60  ;;  %4805 = vmatprep.subr.bf16.mxu1 %v5364_v60 }
 0x15a   : > { %v3042_v36 = vpop.permute.xlu1 %3041 }
 0x15b   : > { %3044 = vst.msk [vmem:[#allocation2 + $0x20] sm:$0xf0] %vm293_vm8, %v3042_v36  ;;  %4786 = vmatpush3.bf16.msra.mxu0 %v6423_v2  ;;  %4806 = vmatpush3.bf16.msra.mxu1 %v6463_v45  ;;  %v7157_v2 = vld [vmem:[#allocation10_spill] sm:$0xff] }
 0x15c   : > { %v6544_v20 = vld [vmem:[#allocation2 + $0x18] sm:$0xff]  ;;  %4787 = vmatprep.subr.bf16.mxu0 %v5364_v60  ;;  %4807 = vmatprep.subr.bf16.mxu1 %v5364_v60 }
 0x15d   : > { %3465 = vst.msk [vmem:[#allocation2 + $0x18] sm:$0xf] %vm265_vm7, %v7155_v29 }
 0x15f   : > { %4788 = vmatpush3.bf16.msra.mxu0 %v6477_v32  ;;  %4808 = vmatpush3.bf16.msra.mxu1 %v6477_v32 }
 0x160   : > { %4789 = vmatprep.subr.bf16.mxu0 %v5364_v60  ;;  %4809 = vmatprep.subr.bf16.mxu1 %v5364_v60 }
 0x161   : > { %v3284_v57 = vpop.permute.xlu0 %3283 }
 0x162   : > { %v3049_v56 = vld [vmem:[#allocation2 + $0x20] sm:$0xff]  ;;  %3286 = vst.msk [vmem:[#allocation2] sm:$0xf0] %vm293_vm8, %v3284_v57 }
 0x163   : > { %3526 = vst.msk [vmem:[#allocation2 + $0x20] sm:$0xf] %vm265_vm7, %v3524_v39  ;;  %4790 = vmatpush3.bf16.msra.mxu0 %v6498_v40  ;;  %4810 = vmatpush3.bf16.msra.mxu1 %v6498_v40 }
 0x164   : > { %4791 = vmatprep.subr.bf16.mxu0 %v5364_v60  ;;  %4811 = vmatprep.subr.bf16.mxu1 %v5364_v60 }
 0x167   : > { %v3345_v4 = vpop.permute.xlu1 %3344  ;;  %4792 = vmatpush3.bf16.msra.mxu0 %v6509_v15  ;;  %4812 = vmatpush3.bf16.msra.mxu1 %v6509_v15 }
 0x168   : > { %3347 = vst.msk [vmem:[#allocation2 + $0x8] sm:$0xf0] %vm293_vm8, %v3345_v4  ;;  %4817 = vmatprep.subr.bf16.mxu0 %v5364_v60  ;;  %4837 = vmatprep.subr.bf16.mxu1 %v5364_v60 }
 0x169   : > { %v6568_v51 = vld [vmem:[#allocation2] sm:$0xff] }
 0x16a   : > { %3791 = vst.msk [vmem:[#allocation2] sm:$0xf] %vm265_vm7, %v7156_v27  ;;  %4794 = vmatmul.mubr.bf16.vlgmr.msra.gmra.mrb[4].mxu0 %v6518_v30  ;;  %4814 = vmatmul.mubr.bf16.vlgmr.msra.gmra.mrb[4].mxu1 %v6518_v30 }
 0x16b   : > { %4818 = vmatpush3.bf16.msra.mxu0 %v6439_v63  ;;  %4838 = vmatpush3.bf16.msra.mxu1 %v6474_v26  ;;  %v3911_v63 = vpack.c.b16 %v7158_v58, %v7158_v58 }
 0x16c   : > { %v3793_v42 = vpop.permute.xlu1 %3792  ;;  %4819 = vmatprep.subr.bf16.mxu0 %v5364_v60  ;;  %4839 = vmatprep.subr.bf16.mxu1 %v5364_v60 }
 0x16d   : > { %3795 = vst.msk [vmem:[#allocation2] sm:$0xf0] %vm293_vm8, %v3793_v42  ;;  %4833 = vmatprep.mubr.msk.bf16.mxu0 %vm5366_vm10, %v5364_v60  ;;  %4853 = vmatprep.mubr.msk.bf16.mxu1 %vm5366_vm10, %v5364_v60 }
 0x16f   : > { %v6581_v33 = vld [vmem:[#allocation2 + $0x8] sm:$0xff]  ;;  %4820 = vmatpush3.bf16.msra.mxu0 %v6449_v43  ;;  %4840 = vmatpush3.bf16.msra.mxu1 %v6486_v28 }
 0x170   : > { %3852 = vst.msk [vmem:[#allocation2 + $0x8] sm:$0xf] %vm265_vm7, %v7157_v2  ;;  %4821 = vmatprep.subr.bf16.mxu0 %v5364_v60  ;;  %4841 = vmatprep.subr.bf16.mxu1 %v5364_v60 }
 0x172   : > { %v3406_v47 = vpop.permute.xlu0 %3405 }
 0x173   : > { %3408 = vst.msk [vmem:[#allocation2 + $0x10] sm:$0xf0] %vm293_vm8, %v3406_v47  ;;  %4822 = vmatpush3.bf16.msra.mxu0 %v6459_v11  ;;  %4842 = vmatpush3.bf16.msra.mxu1 %v6494_v49 }
 0x174   : > { %4823 = vmatprep.subr.bf16.mxu0 %v5364_v60  ;;  %4843 = vmatprep.subr.bf16.mxu1 %v5364_v60  ;;  %v4063_v10 = vld [vmem:[#allocation2] sm:$0xff] }
 0x177   : > { %4824 = vmatpush3.bf16.msra.mxu0 %v6484_v54  ;;  %4844 = vmatpush3.bf16.msra.mxu1 %v6544_v20 }
 0x178   : > { %4825 = vmatprep.subr.bf16.mxu0 %v5364_v60  ;;  %4845 = vmatprep.subr.bf16.mxu1 %v5364_v60 }
 0x179   : > { %v3854_v6 = vpop.permute.xlu1 %3853 }
 0x17a   : > { %v3556_v5 = vld [vmem:[#allocation2 + $0x10] sm:$0xff]  ;;  %3856 = vst.msk [vmem:[#allocation2 + $0x8] sm:$0xf0] %vm293_vm8, %v3854_v6 }
 0x17b   : > { %3913 = vst.msk [vmem:[#allocation2 + $0x10] sm:$0xf] %vm265_vm7, %v3911_v63  ;;  %4826 = vmatpush3.bf16.msra.mxu0 %v6521_v17  ;;  %4846 = vmatpush3.bf16.msra.mxu1 %v3049_v56 }
 0x17c   : > { %4827 = vmatprep.subr.bf16.mxu0 %v5364_v60  ;;  %4847 = vmatprep.subr.bf16.mxu1 %v5364_v60 }
 0x17f   : > { %4828 = vmatpush3.bf16.msra.mxu0 %v6477_v32  ;;  %v3467_v43 = vpop.permute.xlu0 %3466  ;;  %4848 = vmatpush3.bf16.msra.mxu1 %v6477_v32 }
 0x180   : > { %4829 = vmatprep.subr.bf16.mxu0 %v5364_v60  ;;  %3469 = vst.msk [vmem:[#allocation2 + $0x18] sm:$0xf0] %vm293_vm8, %v3467_v43  ;;  %4849 = vmatprep.subr.bf16.mxu1 %v5364_v60 }
 0x181   : > { %v4064_v45 = vld [vmem:[#allocation2 + $0x8] sm:$0xff] }
 0x183   : > { %4830 = vmatpush3.bf16.msra.mxu0 %v6498_v40  ;;  %4850 = vmatpush3.bf16.msra.mxu1 %v6498_v40 }
 0x184   : > { %4831 = vmatprep.subr.bf16.mxu0 %v5364_v60  ;;  %4851 = vmatprep.subr.bf16.mxu1 %v5364_v60 }
 0x187   : > { %4832 = vmatpush3.bf16.msra.mxu0 %v6509_v15  ;;  %v3557_v25 = vld [vmem:[#allocation2 + $0x18] sm:$0xff]  ;;  %4852 = vmatpush3.bf16.msra.mxu1 %v6509_v15 }
 0x188   : > { %4857 = vmatprep.subr.bf16.mxu0 %v5364_v60  ;;  %3997 = vst.msk [vmem:[#allocation2 + $0x18] sm:$0xf] %vm265_vm7, %v6372_v3  ;;  %4877 = vmatprep.subr.bf16.mxu1 %v5364_v60 }
 0x18a   : > { %4834 = vmatmul.mubr.bf16.vlgmr.msra.gmra.mrb[8].mxu0 %v6518_v30  ;;  %4854 = vmatmul.mubr.bf16.vlgmr.msra.gmra.mrb[8].mxu1 %v6518_v30  ;;  %v3938_v11 = vpop.permute.xlu1 %3937 }
 0x18b   : > { %4858 = vmatpush3.bf16.msra.mxu0 %v6568_v51  ;;  %4878 = vmatpush3.bf16.msra.mxu1 %v4063_v10  ;;  %3940 = vst.msk [vmem:[#allocation2 + $0x10] sm:$0xf0] %vm293_vm8, %v3938_v11 }
 0x18c   : > { %4859 = vmatprep.subr.bf16.mxu0 %v5364_v60  ;;  %4879 = vmatprep.subr.bf16.mxu1 %v5364_v60 }
 0x18d   : > { %4873 = vmatprep.mubr.msk.bf16.mxu0 %vm5366_vm10, %v5364_v60  ;;  %4893 = vmatprep.mubr.msk.bf16.mxu1 %vm5366_vm10, %v5364_v60 }
 0x18f   : > { %4860 = vmatpush3.bf16.msra.mxu0 %v6581_v33  ;;  %4880 = vmatpush3.bf16.msra.mxu1 %v4064_v45 }
 0x190   : > { %4861 = vmatprep.subr.bf16.mxu0 %v5364_v60  ;;  %4881 = vmatprep.subr.bf16.mxu1 %v5364_v60 }
 0x192   : > { %v4065_v3 = vld [vmem:[#allocation2 + $0x10] sm:$0xff] }
 0x193   : > { %4862 = vmatpush3.bf16.msra.mxu0 %v3556_v5  ;;  %4882 = vmatpush3.bf16.msra.mxu1 %v4065_v3 }
 0x194   : > { %4863 = vmatprep.subr.bf16.mxu0 %v5364_v60  ;;  %4883 = vmatprep.subr.bf16.mxu1 %v5364_v60 }
 0x195   : > { %v3551_v46 = vpop.permute.xlu0 %3550 }
 0x196   : > { %3553 = vst.msk [vmem:[#allocation2 + $0x20] sm:$0xf0] %vm293_vm8, %v3551_v46 }
 0x197   : > { %4864 = vmatpush3.bf16.msra.mxu0 %v3557_v25 }
 0x198   : > { %4865 = vmatprep.subr.bf16.mxu0 %v5364_v60 }
 0x19b   : > { %v3999_v23 = vpop.permute.xlu0 %3998 }
 0x19c   : > { %4001 = vst.msk [vmem:[#allocation2 + $0x18] sm:$0xf0] %vm293_vm8, %v3999_v23 }
 0x19d   : > { %v3558_v14 = vld [vmem:[#allocation2 + $0x20] sm:$0xff] }
 0x19e   : > { %4866 = vmatpush3.bf16.msra.mxu0 %v3558_v14  ;;  %4058 = vst.msk [vmem:[#allocation2 + $0x20] sm:$0xf] %vm265_vm7, %v6413_v55  ;;  %v5367_v55 = vmov 1966171168  }
 0x19f   : > { %4867 = vmatprep.subr.bf16.mxu0 %v5364_v60  ;;  %v598_v28 = vunpack.c.l.s4 %v5367_v55 }
 0x1a1   : > { %v599_v0 = vunpack.c.0.s8 %v598_v28 }
 0x1a2   : > { %v4060_v26 = vpop.permute.xlu1 %4059  ;;  %4868 = vmatpush3.bf16.msra.mxu0 %v6477_v32 }
 0x1a3   : > { %4062 = vst.msk [vmem:[#allocation2 + $0x20] sm:$0xf0] %vm293_vm8, %v4060_v26  ;;  %v4066_v9 = vld [vmem:[#allocation2 + $0x18] sm:$0xff]  ;;  %4869 = vmatprep.subr.bf16.mxu0 %v5364_v60 }
 0x1a4   : > { %4884 = vmatpush3.bf16.msra.mxu1 %v4066_v9 }
 0x1a5   : > { %4885 = vmatprep.subr.bf16.mxu1 %v5364_v60 }
 0x1a6   : > { %4870 = vmatpush3.bf16.msra.mxu0 %v6498_v40 }
 0x1a7   : > { %4871 = vmatprep.subr.bf16.mxu0 %v5364_v60 }
 0x1aa   : > { %v4067_v54 = vld [vmem:[#allocation2 + $0x20] sm:$0xff]  ;;  %4872 = vmatpush3.bf16.msra.mxu0 %v6509_v15 }
 0x1ab   : > { %4886 = vmatpush3.bf16.msra.mxu1 %v4067_v54 }
 0x1ac   : > { %4887 = vmatprep.subr.bf16.mxu1 %v5364_v60 }
 0x1ad   : > { %4874 = vmatmul.mubr.bf16.vlgmr.msra.gmra.mrb[12].mxu0 %v6518_v30 }
 0x1af   : > { %4888 = vmatpush3.bf16.msra.mxu1 %v6477_v32  ;;  %v6672_v32 = vsub.s32 %v599_v0, %v601_v41 }
 0x1b0   : > { %4889 = vmatprep.subr.bf16.mxu1 %v5364_v60  ;;  %v6670_v7 = vpop.permute.xlu0 %194 }
 0x1b3   : > { %4890 = vmatpush3.bf16.msra.mxu1 %v6498_v40 }
 0x1b4   : > { %4891 = vmatprep.subr.bf16.mxu1 %v5364_v60  ;;  %v6675_v12 = vpop.permute.xlu1 %199 }
 0x1b7   : > { %4892 = vmatpush3.bf16.msra.mxu1 %v6509_v15 }
 0x1ba   : > { %4894 = vmatmul.mubr.bf16.vlgmr.msra.gmra.mrb[12].mxu1 %v6518_v30 }
 0x21d   : > { %v587_v49 = vpop.f32.mrb[0].mxu0  ;;  %v1074_v60 = vpop.f32.mrb[0].mxu1 }
 0x21e   : > { %v4755_v8 = vpop.f32.mrb[1].mxu0  ;;  %v588_v40 = vadd.f32 %v587_v49, %v6670_v7  ;;  %v1075_v50 = vadd.f32 %v1074_v60, %v6670_v7  ;;  %v4775_v44 = vpop.f32.mrb[1].mxu1 }
 0x21f   : > { %v590_v38 = vpop.f32.mrb[2].mxu0  ;;  %v1077_v62 = vpop.f32.mrb[2].mxu1 }
 0x220   : > { %v591_v59 = vadd.f32 %v590_v38, %v6675_v12  ;;  %v596_v16 = vcombine.high %v588_v40, %v588_v40  ;;  %v603_v35 = vrot.slane %v588_v40, %v6672_v32  ;;  %v4756_v15 = vpop.f32.mrb[3].mxu0  ;;  %v1083_v34 = vcombine.high %v1075_v50, %v1075_v50  ;;  %v4776_v53 = vpop.f32.mrb[3].mxu1 }
 0x221   : > { %v1090_v21 = vrot.slane %v1075_v50, %v6672_v32  ;;  %v6685_v30 = vadd.f32 %v1077_v62, %v6675_v12 }
 0x222   : > { %v645_v1 = vcombine.high %v591_v59, %v591_v59  ;;  %v652_v17 = vrot.slane %v591_v59, %v6672_v32  ;;  %v610_v13 = vrot.slane %v596_v16, %v6672_v32  ;;  %v611_v22 = vcombine.high %v603_v35, %v603_v35 }
 0x223   : > { %v619_v48 = vrot.slane %v603_v35, %v6672_v32  ;;  %v1097_v52 = vrot.slane %v1083_v34, %v6672_v32  ;;  %v1098_v24 = vcombine.high %v1090_v21, %v1090_v21  ;;  %v1106_v18 = vrot.slane %v1090_v21, %v6672_v32 }
 0x224   : > { %v659_v61 = vrot.slane %v645_v1, %v6672_v32  ;;  %v660_v37 = vcombine.high %v652_v17, %v652_v17  ;;  %v668_v36 = vrot.slane %v652_v17, %v6672_v32  ;;  %v612_v20 = vcombine.high %v610_v13, %v610_v13 }
 0x225   : > { %v626_v29 = vrot.slane %v610_v13, %v6672_v32  ;;  %v633_v31 = vrot.slane %v611_v22, %v6672_v32  ;;  %v641_v39 = vcombine.high %v619_v48, %v619_v48  ;;  %711 = vst.msk [vmem:[%s6696_s19] sm:$0x1] %vm710_vm11, %v619_v48  ;;  %v1099_v57 = vcombine.high %v1097_v52, %v1097_v52 }
 0x226   : > { %1197 = vst.msk [vmem:[%s6696_s19 + $0x1] sm:$0x1] %vm710_vm11, %v1106_v18  ;;  %v661_v56 = vcombine.high %v659_v61, %v659_v61  ;;  %v675_v4 = vrot.slane %v659_v61, %v6672_v32  ;;  %v682_v51 = vrot.slane %v660_v37, %v6672_v32  ;;  %v690_v27 = vcombine.high %v668_v36, %v668_v36 }
 0x227   : > { %719 = vst.msk [vmem:[%s6696_s19 + $0x40] sm:$0x1] %vm710_vm11, %v668_v36  ;;  %v640_v42 = vrot.slane %v612_v20, %v6672_v32  ;;  %v642_v33 = vcombine.high %v626_v29, %v626_v29  ;;  %v643_v2 = vcombine.high %v633_v31, %v633_v31  ;;  %712 = vst.msk [vmem:[%s6696_s19 + $0x8] sm:$0x1] %vm710_vm11, %v633_v31 }
 0x228   : > { %713 = vst.msk [vmem:[%s6696_s19 + $0x10] sm:$0x1] %vm710_vm11, %v641_v39  ;;  %715 = vst.msk [vmem:[%s6696_s19 + $0x20] sm:$0x1] %vm710_vm11, %v626_v29  ;;  %v1113_v47 = vrot.slane %v1097_v52, %v6672_v32  ;;  %v689_v58 = vrot.slane %v661_v56, %v6672_v32  ;;  %v691_v63 = vcombine.high %v675_v4, %v675_v4 }
 0x229   : > { %v692_v6 = vcombine.high %v682_v51, %v682_v51  ;;  %720 = vst.msk [vmem:[%s6696_s19 + $0x48] sm:$0x1] %vm710_vm11, %v682_v51  ;;  %721 = vst.msk [vmem:[%s6696_s19 + $0x50] sm:$0x1] %vm710_vm11, %v690_v27  ;;  %v1120_v5 = vrot.slane %v1098_v24, %v6672_v32  ;;  %v644_v43 = vcombine.high %v640_v42, %v640_v42 }
 0x22a   : > { %723 = vst.msk [vmem:[%s6696_s19 + $0x60] sm:$0x1] %vm710_vm11, %v675_v4  ;;  %714 = vst.msk [vmem:[%s6696_s19 + $0x18] sm:$0x1] %vm710_vm11, %v643_v2  ;;  %v1127_v25 = vrot.slane %v1099_v57, %v6672_v32  ;;  %v1128_v10 = vcombine.high %v1106_v18, %v1106_v18  ;;  %v1129_v11 = vcombine.high %v1113_v47, %v1113_v47 }
 0x22b   : > { %716 = vst.msk [vmem:[%s6696_s19 + $0x28] sm:$0x1] %vm710_vm11, %v640_v42  ;;  %717 = vst.msk [vmem:[%s6696_s19 + $0x30] sm:$0x1] %vm710_vm11, %v642_v33  ;;  %v693_v45 = vcombine.high %v689_v58, %v689_v58  ;;  %v1130_v3 = vcombine.high %v1120_v5, %v1120_v5  ;;  %v1132_v46 = vcombine.high %v6685_v30, %v6685_v30 }
 0x22c   : > { %1201 = vst.msk [vmem:[%s6696_s19 + $0x21] sm:$0x1] %vm710_vm11, %v1113_v47  ;;  %722 = vst.msk [vmem:[%s6696_s19 + $0x58] sm:$0x1] %vm710_vm11, %v692_v6  ;;  %v1139_v23 = vrot.slane %v6685_v30, %v6672_v32  ;;  %v1131_v14 = vcombine.high %v1127_v25, %v1127_v25 }
 0x22d   : > { %724 = vst.msk [vmem:[%s6696_s19 + $0x68] sm:$0x1] %vm710_vm11, %v689_v58  ;;  %725 = vst.msk [vmem:[%s6696_s19 + $0x70] sm:$0x1] %vm710_vm11, %v691_v63  ;;  %v1146_v26 = vrot.slane %v1132_v46, %v6672_v32 }
 0x22e   : > { %1198 = vst.msk [vmem:[%s6696_s19 + $0x9] sm:$0x1] %vm710_vm11, %v1120_v5  ;;  %718 = vst.msk [vmem:[%s6696_s19 + $0x38] sm:$0x1] %vm710_vm11, %v644_v43  ;;  %v1147_v9 = vcombine.high %v1139_v23, %v1139_v23  ;;  %v1155_v54 = vrot.slane %v1139_v23, %v6672_v32 }
 0x22f   : > { %1199 = vst.msk [vmem:[%s6696_s19 + $0x11] sm:$0x1] %vm710_vm11, %v1128_v10  ;;  %1202 = vst.msk [vmem:[%s6696_s19 + $0x29] sm:$0x1] %vm710_vm11, %v1127_v25  ;;  %v1148_v55 = vcombine.high %v1146_v26, %v1146_v26  ;;  %v1162_v28 = vrot.slane %v1146_v26, %v6672_v32 }
 0x230   : > { %1203 = vst.msk [vmem:[%s6696_s19 + $0x31] sm:$0x1] %vm710_vm11, %v1129_v11  ;;  %726 = vst.msk [vmem:[%s6696_s19 + $0x78] sm:$0x1] %vm710_vm11, %v693_v45  ;;  %v1169_v19 = vrot.slane %v1147_v9, %v6672_v32  ;;  %v1177_v0 = vcombine.high %v1155_v54, %v1155_v54 }
 0x231   : > { %1200 = vst.msk [vmem:[%s6696_s19 + $0x19] sm:$0x1] %vm710_vm11, %v1130_v3  ;;  %1204 = vst.msk [vmem:[%s6696_s19 + $0x39] sm:$0x1] %vm710_vm11, %v1131_v14  ;;  %v1176_v41 = vrot.slane %v1148_v55, %v6672_v32  ;;  %v1178_v49 = vcombine.high %v1162_v28, %v1162_v28 }
 0x232   : > { %1205 = vst.msk [vmem:[%s6696_s19 + $0x41] sm:$0x1] %vm710_vm11, %v1155_v54  ;;  %v1179_v8 = vcombine.high %v1169_v19, %v1169_v19  ;;  %1206 = vst.msk [vmem:[%s6696_s19 + $0x49] sm:$0x1] %vm710_vm11, %v1169_v19 }
 0x233   : > { %1207 = vst.msk [vmem:[%s6696_s19 + $0x51] sm:$0x1] %vm710_vm11, %v1177_v0  ;;  %1209 = vst.msk [vmem:[%s6696_s19 + $0x61] sm:$0x1] %vm710_vm11, %v1162_v28  ;;  %v1180_v60 = vcombine.high %v1176_v41, %v1176_v41 }
 0x234   : > { %1208 = vst.msk [vmem:[%s6696_s19 + $0x59] sm:$0x1] %vm710_vm11, %v1179_v8  ;;  %1210 = vst.msk [vmem:[%s6696_s19 + $0x69] sm:$0x1] %vm710_vm11, %v1176_v41 }
 0x235   : > { %1211 = vst.msk [vmem:[%s6696_s19 + $0x71] sm:$0x1] %vm710_vm11, %v1178_v49  ;;  %1212 = vst.msk [vmem:[%s6696_s19 + $0x79] sm:$0x1] %vm710_vm11, %v1180_v60 }
 0x23d   : > { %v1583_v40 = vpop.f32.mrb[4].mxu0  ;;  %v2092_v44 = vpop.f32.mrb[4].mxu1 }
 0x23e   : > { %v1584_v38 = vadd.f32 %v1583_v40, %v6670_v7  ;;  %v4795_v50 = vpop.f32.mrb[5].mxu0  ;;  %v2093_v16 = vadd.f32 %v2092_v44, %v6670_v7  ;;  %v4815_v35 = vpop.f32.mrb[5].mxu1 }
 0x23f   : > { %v1586_v59 = vpop.f32.mrb[6].mxu0  ;;  %v2095_v30 = vpop.f32.mrb[6].mxu1 }
 0x240   : > { %v1592_v15 = vcombine.high %v1584_v38, %v1584_v38  ;;  %v1599_v62 = vrot.slane %v1584_v38, %v6672_v32  ;;  %v1587_v34 = vadd.f32 %v1586_v59, %v6675_v12  ;;  %v4796_v21 = vpop.f32.mrb[7].mxu0  ;;  %v2101_v53 = vcombine.high %v2093_v16, %v2093_v16  ;;  %v4816_v13 = vpop.f32.mrb[7].mxu1 }
 0x241   : > { %v2108_v1 = vrot.slane %v2093_v16, %v6672_v32  ;;  %v6784_v17 = vadd.f32 %v2095_v30, %v6675_v12 }
 0x242   : > { %v1606_v22 = vrot.slane %v1592_v15, %v6672_v32  ;;  %v1607_v48 = vcombine.high %v1599_v62, %v1599_v62  ;;  %v1615_v52 = vrot.slane %v1599_v62, %v6672_v32  ;;  %v1641_v24 = vcombine.high %v1587_v34, %v1587_v34 }
 0x243   : > { %v1648_v18 = vrot.slane %v1587_v34, %v6672_v32  ;;  %v2115_v61 = vrot.slane %v2101_v53, %v6672_v32  ;;  %v2116_v37 = vcombine.high %v2108_v1, %v2108_v1  ;;  %v2124_v36 = vrot.slane %v2108_v1, %v6672_v32 }
 0x244   : > { %v1608_v20 = vcombine.high %v1606_v22, %v1606_v22  ;;  %v1622_v29 = vrot.slane %v1606_v22, %v6672_v32  ;;  %v1629_v31 = vrot.slane %v1607_v48, %v6672_v32  ;;  %v1637_v39 = vcombine.high %v1615_v52, %v1615_v52  ;;  %1706 = vst.msk [vmem:[%s6696_s19 + $0x2] sm:$0x1] %vm710_vm11, %v1615_v52 }
 0x245   : > { %v1655_v57 = vrot.slane %v1641_v24, %v6672_v32  ;;  %v1656_v56 = vcombine.high %v1648_v18, %v1648_v18  ;;  %v1664_v4 = vrot.slane %v1648_v18, %v6672_v32  ;;  %v2117_v51 = vcombine.high %v2115_v61, %v2115_v61  ;;  %2215 = vst.msk [vmem:[%s6696_s19 + $0x3] sm:$0x1] %vm710_vm11, %v2124_v36 }
 0x246   : > { %v1636_v27 = vrot.slane %v1608_v20, %v6672_v32  ;;  %v1638_v42 = vcombine.high %v1622_v29, %v1622_v29  ;;  %v1639_v33 = vcombine.high %v1629_v31, %v1629_v31  ;;  %1707 = vst.msk [vmem:[%s6696_s19 + $0xa] sm:$0x1] %vm710_vm11, %v1629_v31  ;;  %1708 = vst.msk [vmem:[%s6696_s19 + $0x12] sm:$0x1] %vm710_vm11, %v1637_v39 }
 0x247   : > { %1710 = vst.msk [vmem:[%s6696_s19 + $0x22] sm:$0x1] %vm710_vm11, %v1622_v29  ;;  %v2131_v2 = vrot.slane %v2115_v61, %v6672_v32  ;;  %v1657_v47 = vcombine.high %v1655_v57, %v1655_v57  ;;  %v1671_v58 = vrot.slane %v1655_v57, %v6672_v32  ;;  %v1678_v63 = vrot.slane %v1656_v56, %v6672_v32 }
 0x248   : > { %v1686_v6 = vcombine.high %v1664_v4, %v1664_v4  ;;  %1714 = vst.msk [vmem:[%s6696_s19 + $0x42] sm:$0x1] %vm710_vm11, %v1664_v4  ;;  %v1640_v5 = vcombine.high %v1636_v27, %v1636_v27  ;;  %1709 = vst.msk [vmem:[%s6696_s19 + $0x1a] sm:$0x1] %vm710_vm11, %v1639_v33  ;;  %v2138_v43 = vrot.slane %v2116_v37, %v6672_v32 }
 0x249   : > { %1711 = vst.msk [vmem:[%s6696_s19 + $0x2a] sm:$0x1] %vm710_vm11, %v1636_v27  ;;  %1712 = vst.msk [vmem:[%s6696_s19 + $0x32] sm:$0x1] %vm710_vm11, %v1638_v42  ;;  %v2145_v25 = vrot.slane %v2117_v51, %v6672_v32  ;;  %v2146_v10 = vcombine.high %v2124_v36, %v2124_v36  ;;  %v1685_v11 = vrot.slane %v1657_v47, %v6672_v32 }
 0x24a   : > { %2219 = vst.msk [vmem:[%s6696_s19 + $0x23] sm:$0x1] %vm710_vm11, %v2131_v2  ;;  %v1687_v45 = vcombine.high %v1671_v58, %v1671_v58  ;;  %v1688_v3 = vcombine.high %v1678_v63, %v1678_v63  ;;  %1715 = vst.msk [vmem:[%s6696_s19 + $0x4a] sm:$0x1] %vm710_vm11, %v1678_v63  ;;  %v2147_v46 = vcombine.high %v2131_v2, %v2131_v2 }
 0x24b   : > { %1716 = vst.msk [vmem:[%s6696_s19 + $0x52] sm:$0x1] %vm710_vm11, %v1686_v6  ;;  %1718 = vst.msk [vmem:[%s6696_s19 + $0x62] sm:$0x1] %vm710_vm11, %v1671_v58  ;;  %v2148_v23 = vcombine.high %v2138_v43, %v2138_v43  ;;  %v2149_v14 = vcombine.high %v2145_v25, %v2145_v25  ;;  %v2150_v26 = vcombine.high %v6784_v17, %v6784_v17 }
 0x24c   : > { %1713 = vst.msk [vmem:[%s6696_s19 + $0x3a] sm:$0x1] %vm710_vm11, %v1640_v5  ;;  %2216 = vst.msk [vmem:[%s6696_s19 + $0xb] sm:$0x1] %vm710_vm11, %v2138_v43  ;;  %v2157_v9 = vrot.slane %v6784_v17, %v6672_v32  ;;  %v1689_v54 = vcombine.high %v1685_v11, %v1685_v11 }
 0x24d   : > { %2217 = vst.msk [vmem:[%s6696_s19 + $0x13] sm:$0x1] %vm710_vm11, %v2146_v10  ;;  %2220 = vst.msk [vmem:[%s6696_s19 + $0x2b] sm:$0x1] %vm710_vm11, %v2145_v25  ;;  %v2164_v55 = vrot.slane %v2150_v26, %v6672_v32 }
 0x24e   : > { %1717 = vst.msk [vmem:[%s6696_s19 + $0x5a] sm:$0x1] %vm710_vm11, %v1688_v3  ;;  %1719 = vst.msk [vmem:[%s6696_s19 + $0x6a] sm:$0x1] %vm710_vm11, %v1685_v11  ;;  %v2165_v28 = vcombine.high %v2157_v9, %v2157_v9  ;;  %v2173_v19 = vrot.slane %v2157_v9, %v6672_v32 }
 0x24f   : > { %1720 = vst.msk [vmem:[%s6696_s19 + $0x72] sm:$0x1] %vm710_vm11, %v1687_v45  ;;  %2221 = vst.msk [vmem:[%s6696_s19 + $0x33] sm:$0x1] %vm710_vm11, %v2147_v46  ;;  %v2166_v0 = vcombine.high %v2164_v55, %v2164_v55  ;;  %v2180_v41 = vrot.slane %v2164_v55, %v6672_v32 }
 0x250   : > { %2218 = vst.msk [vmem:[%s6696_s19 + $0x1b] sm:$0x1] %vm710_vm11, %v2148_v23  ;;  %2222 = vst.msk [vmem:[%s6696_s19 + $0x3b] sm:$0x1] %vm710_vm11, %v2149_v14  ;;  %v2187_v49 = vrot.slane %v2165_v28, %v6672_v32  ;;  %v2195_v8 = vcombine.high %v2173_v19, %v2173_v19 }
 0x251   : > { %1721 = vst.msk [vmem:[%s6696_s19 + $0x7a] sm:$0x1] %vm710_vm11, %v1689_v54  ;;  %2223 = vst.msk [vmem:[%s6696_s19 + $0x43] sm:$0x1] %vm710_vm11, %v2173_v19  ;;  %v2194_v60 = vrot.slane %v2166_v0, %v6672_v32  ;;  %v2196_v40 = vcombine.high %v2180_v41, %v2180_v41 }
 0x252   : > { %v2197_v38 = vcombine.high %v2187_v49, %v2187_v49  ;;  %2224 = vst.msk [vmem:[%s6696_s19 + $0x4b] sm:$0x1] %vm710_vm11, %v2187_v49  ;;  %2225 = vst.msk [vmem:[%s6696_s19 + $0x53] sm:$0x1] %vm710_vm11, %v2195_v8 }
 0x253   : > { %2227 = vst.msk [vmem:[%s6696_s19 + $0x63] sm:$0x1] %vm710_vm11, %v2180_v41  ;;  %v2198_v50 = vcombine.high %v2194_v60, %v2194_v60  ;;  %2228 = vst.msk [vmem:[%s6696_s19 + $0x6b] sm:$0x1] %vm710_vm11, %v2194_v60 }
 0x254   : > { %2226 = vst.msk [vmem:[%s6696_s19 + $0x5b] sm:$0x1] %vm710_vm11, %v2197_v38  ;;  %2229 = vst.msk [vmem:[%s6696_s19 + $0x73] sm:$0x1] %vm710_vm11, %v2196_v40 }
 0x255   : > { %2230 = vst.msk [vmem:[%s6696_s19 + $0x7b] sm:$0x1] %vm710_vm11, %v2198_v50 }
 0x25d   : > { %v2601_v44 = vpop.f32.mrb[8].mxu0  ;;  %v3087_v35 = vpop.f32.mrb[8].mxu1 }
 0x25e   : > { %v2602_v59 = vadd.f32 %v2601_v44, %v6670_v7  ;;  %v4835_v16 = vpop.f32.mrb[9].mxu0  ;;  %v3088_v62 = vadd.f32 %v3087_v35, %v6670_v7  ;;  %v4855_v34 = vpop.f32.mrb[9].mxu1 }
 0x25f   : > { %v2604_v15 = vpop.f32.mrb[10].mxu0  ;;  %v3090_v17 = vpop.f32.mrb[10].mxu1 }
 0x260   : > { %v2610_v21 = vcombine.high %v2602_v59, %v2602_v59  ;;  %v2617_v30 = vrot.slane %v2602_v59, %v6672_v32  ;;  %v2605_v53 = vadd.f32 %v2604_v15, %v6675_v12  ;;  %v4836_v1 = vpop.f32.mrb[11].mxu0  ;;  %v3096_v13 = vcombine.high %v3088_v62, %v3088_v62  ;;  %v4856_v52 = vpop.f32.mrb[11].mxu1 }
 0x261   : > { %v3103_v22 = vrot.slane %v3088_v62, %v6672_v32  ;;  %v6881_v48 = vadd.f32 %v3090_v17, %v6675_v12 }
 0x262   : > { %v2624_v24 = vrot.slane %v2610_v21, %v6672_v32  ;;  %v2625_v18 = vcombine.high %v2617_v30, %v2617_v30  ;;  %v2633_v61 = vrot.slane %v2617_v30, %v6672_v32  ;;  %v2659_v37 = vcombine.high %v2605_v53, %v2605_v53 }
 0x263   : > { %v2666_v36 = vrot.slane %v2605_v53, %v6672_v32  ;;  %v3110_v20 = vrot.slane %v3096_v13, %v6672_v32  ;;  %v3111_v29 = vcombine.high %v3103_v22, %v3103_v22  ;;  %v3119_v31 = vrot.slane %v3103_v22, %v6672_v32 }
 0x264   : > { %v2626_v39 = vcombine.high %v2624_v24, %v2624_v24  ;;  %v2640_v57 = vrot.slane %v2624_v24, %v6672_v32  ;;  %v2647_v56 = vrot.slane %v2625_v18, %v6672_v32  ;;  %v2655_v4 = vcombine.high %v2633_v61, %v2633_v61  ;;  %2724 = vst.msk [vmem:[%s6696_s19 + $0x4] sm:$0x1] %vm710_vm11, %v2633_v61 }
 0x265   : > { %v2673_v51 = vrot.slane %v2659_v37, %v6672_v32  ;;  %v2674_v27 = vcombine.high %v2666_v36, %v2666_v36  ;;  %v2682_v42 = vrot.slane %v2666_v36, %v6672_v32  ;;  %v3112_v33 = vcombine.high %v3110_v20, %v3110_v20  ;;  %3210 = vst.msk [vmem:[%s6696_s19 + $0x5] sm:$0x1] %vm710_vm11, %v3119_v31 }
 0x266   : > { %v2654_v2 = vrot.slane %v2626_v39, %v6672_v32  ;;  %v2656_v47 = vcombine.high %v2640_v57, %v2640_v57  ;;  %v2657_v58 = vcombine.high %v2647_v56, %v2647_v56  ;;  %2725 = vst.msk [vmem:[%s6696_s19 + $0xc] sm:$0x1] %vm710_vm11, %v2647_v56  ;;  %2726 = vst.msk [vmem:[%s6696_s19 + $0x14] sm:$0x1] %vm710_vm11, %v2655_v4 }
 0x267   : > { %2728 = vst.msk [vmem:[%s6696_s19 + $0x24] sm:$0x1] %vm710_vm11, %v2640_v57  ;;  %v3126_v63 = vrot.slane %v3110_v20, %v6672_v32  ;;  %v2675_v6 = vcombine.high %v2673_v51, %v2673_v51  ;;  %v2689_v5 = vrot.slane %v2673_v51, %v6672_v32  ;;  %v2696_v43 = vrot.slane %v2674_v27, %v6672_v32 }
 0x268   : > { %v2704_v25 = vcombine.high %v2682_v42, %v2682_v42  ;;  %2732 = vst.msk [vmem:[%s6696_s19 + $0x44] sm:$0x1] %vm710_vm11, %v2682_v42  ;;  %v2658_v10 = vcombine.high %v2654_v2, %v2654_v2  ;;  %2727 = vst.msk [vmem:[%s6696_s19 + $0x1c] sm:$0x1] %vm710_vm11, %v2657_v58  ;;  %v3133_v11 = vrot.slane %v3111_v29, %v6672_v32 }
 0x269   : > { %2729 = vst.msk [vmem:[%s6696_s19 + $0x2c] sm:$0x1] %vm710_vm11, %v2654_v2  ;;  %2730 = vst.msk [vmem:[%s6696_s19 + $0x34] sm:$0x1] %vm710_vm11, %v2656_v47  ;;  %v3140_v45 = vrot.slane %v3112_v33, %v6672_v32  ;;  %v3141_v3 = vcombine.high %v3119_v31, %v3119_v31  ;;  %v2703_v46 = vrot.slane %v2675_v6, %v6672_v32 }
 0x26a   : > { %3214 = vst.msk [vmem:[%s6696_s19 + $0x25] sm:$0x1] %vm710_vm11, %v3126_v63  ;;  %v2705_v23 = vcombine.high %v2689_v5, %v2689_v5  ;;  %v2706_v14 = vcombine.high %v2696_v43, %v2696_v43  ;;  %2733 = vst.msk [vmem:[%s6696_s19 + $0x4c] sm:$0x1] %vm710_vm11, %v2696_v43  ;;  %v3142_v26 = vcombine.high %v3126_v63, %v3126_v63 }
 0x26b   : > { %2734 = vst.msk [vmem:[%s6696_s19 + $0x54] sm:$0x1] %vm710_vm11, %v2704_v25  ;;  %2736 = vst.msk [vmem:[%s6696_s19 + $0x64] sm:$0x1] %vm710_vm11, %v2689_v5  ;;  %v3143_v9 = vcombine.high %v3133_v11, %v3133_v11  ;;  %v3144_v54 = vcombine.high %v3140_v45, %v3140_v45  ;;  %v3145_v55 = vcombine.high %v6881_v48, %v6881_v48 }
 0x26c   : > { %2731 = vst.msk [vmem:[%s6696_s19 + $0x3c] sm:$0x1] %vm710_vm11, %v2658_v10  ;;  %3211 = vst.msk [vmem:[%s6696_s19 + $0xd] sm:$0x1] %vm710_vm11, %v3133_v11  ;;  %v3152_v28 = vrot.slane %v6881_v48, %v6672_v32  ;;  %v2707_v19 = vcombine.high %v2703_v46, %v2703_v46 }
 0x26d   : > { %3212 = vst.msk [vmem:[%s6696_s19 + $0x15] sm:$0x1] %vm710_vm11, %v3141_v3  ;;  %3215 = vst.msk [vmem:[%s6696_s19 + $0x2d] sm:$0x1] %vm710_vm11, %v3140_v45  ;;  %v3159_v0 = vrot.slane %v3145_v55, %v6672_v32 }
 0x26e   : > { %2735 = vst.msk [vmem:[%s6696_s19 + $0x5c] sm:$0x1] %vm710_vm11, %v2706_v14  ;;  %2737 = vst.msk [vmem:[%s6696_s19 + $0x6c] sm:$0x1] %vm710_vm11, %v2703_v46  ;;  %v3160_v41 = vcombine.high %v3152_v28, %v3152_v28  ;;  %v3168_v49 = vrot.slane %v3152_v28, %v6672_v32 }
 0x26f   : > { %2738 = vst.msk [vmem:[%s6696_s19 + $0x74] sm:$0x1] %vm710_vm11, %v2705_v23  ;;  %3216 = vst.msk [vmem:[%s6696_s19 + $0x35] sm:$0x1] %vm710_vm11, %v3142_v26  ;;  %v3161_v8 = vcombine.high %v3159_v0, %v3159_v0  ;;  %v3175_v60 = vrot.slane %v3159_v0, %v6672_v32 }
 0x270   : > { %3213 = vst.msk [vmem:[%s6696_s19 + $0x1d] sm:$0x1] %vm710_vm11, %v3143_v9  ;;  %3217 = vst.msk [vmem:[%s6696_s19 + $0x3d] sm:$0x1] %vm710_vm11, %v3144_v54  ;;  %v3182_v40 = vrot.slane %v3160_v41, %v6672_v32  ;;  %v3190_v38 = vcombine.high %v3168_v49, %v3168_v49 }
 0x271   : > { %2739 = vst.msk [vmem:[%s6696_s19 + $0x7c] sm:$0x1] %vm710_vm11, %v2707_v19  ;;  %3218 = vst.msk [vmem:[%s6696_s19 + $0x45] sm:$0x1] %vm710_vm11, %v3168_v49  ;;  %v3189_v50 = vrot.slane %v3161_v8, %v6672_v32  ;;  %v3191_v44 = vcombine.high %v3175_v60, %v3175_v60 }
 0x272   : > { %v3192_v59 = vcombine.high %v3182_v40, %v3182_v40  ;;  %3219 = vst.msk [vmem:[%s6696_s19 + $0x4d] sm:$0x1] %vm710_vm11, %v3182_v40  ;;  %3220 = vst.msk [vmem:[%s6696_s19 + $0x55] sm:$0x1] %vm710_vm11, %v3190_v38 }
 0x273   : > { %3222 = vst.msk [vmem:[%s6696_s19 + $0x65] sm:$0x1] %vm710_vm11, %v3175_v60  ;;  %v3193_v16 = vcombine.high %v3189_v50, %v3189_v50  ;;  %3223 = vst.msk [vmem:[%s6696_s19 + $0x6d] sm:$0x1] %vm710_vm11, %v3189_v50 }
 0x274   : > { %3221 = vst.msk [vmem:[%s6696_s19 + $0x5d] sm:$0x1] %vm710_vm11, %v3192_v59  ;;  %3224 = vst.msk [vmem:[%s6696_s19 + $0x75] sm:$0x1] %vm710_vm11, %v3191_v44 }
 0x275   : > { %3225 = vst.msk [vmem:[%s6696_s19 + $0x7d] sm:$0x1] %vm710_vm11, %v3193_v16 }
 0x280   : > { %v3596_v35 = vpop.f32.mrb[12].mxu0 }
 0x281   : > { %v3597_v15 = vadd.f32 %v3596_v35, %v6670_v7  ;;  %v4875_v62 = vpop.f32.mrb[13].mxu0 }
 0x282   : > { %v3599_v34 = vpop.f32.mrb[14].mxu0 }
 0x283   : > { %v3605_v21 = vcombine.high %v3597_v15, %v3597_v15  ;;  %v3612_v30 = vrot.slane %v3597_v15, %v6672_v32  ;;  %v3600_v53 = vadd.f32 %v3599_v34, %v6675_v12  ;;  %v4876_v1 = vpop.f32.mrb[15].mxu0 }
 0x285   : > { %v3619_v17 = vrot.slane %v3605_v21, %v6672_v32  ;;  %v3620_v13 = vcombine.high %v3612_v30, %v3612_v30  ;;  %v3628_v22 = vrot.slane %v3612_v30, %v6672_v32  ;;  %v3654_v48 = vcombine.high %v3600_v53, %v3600_v53 }
 0x286   : > { %v3661_v52 = vrot.slane %v3600_v53, %v6672_v32 }
 0x287   : > { %v3621_v24 = vcombine.high %v3619_v17, %v3619_v17  ;;  %v3635_v18 = vrot.slane %v3619_v17, %v6672_v32  ;;  %v3642_v61 = vrot.slane %v3620_v13, %v6672_v32  ;;  %v3650_v37 = vcombine.high %v3628_v22, %v3628_v22  ;;  %3719 = vst.msk [vmem:[%s6696_s19 + $0x6] sm:$0x1] %vm710_vm11, %v3628_v22 }
 0x288   : > { %v3668_v36 = vrot.slane %v3654_v48, %v6672_v32  ;;  %v3669_v20 = vcombine.high %v3661_v52, %v3661_v52  ;;  %v3677_v29 = vrot.slane %v3661_v52, %v6672_v32 }
 0x289   : > { %v3649_v31 = vrot.slane %v3621_v24, %v6672_v32  ;;  %v3651_v39 = vcombine.high %v3635_v18, %v3635_v18  ;;  %v3652_v57 = vcombine.high %v3642_v61, %v3642_v61  ;;  %3720 = vst.msk [vmem:[%s6696_s19 + $0xe] sm:$0x1] %vm710_vm11, %v3642_v61  ;;  %3721 = vst.msk [vmem:[%s6696_s19 + $0x16] sm:$0x1] %vm710_vm11, %v3650_v37 }
 0x28a   : > { %3723 = vst.msk [vmem:[%s6696_s19 + $0x26] sm:$0x1] %vm710_vm11, %v3635_v18  ;;  %v3670_v56 = vcombine.high %v3668_v36, %v3668_v36  ;;  %v3684_v4 = vrot.slane %v3668_v36, %v6672_v32  ;;  %v3691_v51 = vrot.slane %v3669_v20, %v6672_v32  ;;  %v3699_v27 = vcombine.high %v3677_v29, %v3677_v29 }
 0x28b   : > { %3727 = vst.msk [vmem:[%s6696_s19 + $0x46] sm:$0x1] %vm710_vm11, %v3677_v29  ;;  %v3653_v42 = vcombine.high %v3649_v31, %v3649_v31  ;;  %3722 = vst.msk [vmem:[%s6696_s19 + $0x1e] sm:$0x1] %vm710_vm11, %v3652_v57 }
 0x28c   : > { %3724 = vst.msk [vmem:[%s6696_s19 + $0x2e] sm:$0x1] %vm710_vm11, %v3649_v31  ;;  %3725 = vst.msk [vmem:[%s6696_s19 + $0x36] sm:$0x1] %vm710_vm11, %v3651_v39  ;;  %v3698_v2 = vrot.slane %v3670_v56, %v6672_v32  ;;  %v3700_v47 = vcombine.high %v3684_v4, %v3684_v4  ;;  %v3701_v58 = vcombine.high %v3691_v51, %v3691_v51 }
 0x28d   : > { %v4105_v33 = vpop.f32.mrb[12].mxu1  ;;  %3728 = vst.msk [vmem:[%s6696_s19 + $0x4e] sm:$0x1] %vm710_vm11, %v3691_v51  ;;  %3729 = vst.msk [vmem:[%s6696_s19 + $0x56] sm:$0x1] %vm710_vm11, %v3699_v27 }
 0x28e   : > { %3731 = vst.msk [vmem:[%s6696_s19 + $0x66] sm:$0x1] %vm710_vm11, %v3684_v4  ;;  %v4106_v63 = vadd.f32 %v4105_v33, %v6670_v7  ;;  %v4895_v6 = vpop.f32.mrb[13].mxu1  ;;  %3726 = vst.msk [vmem:[%s6696_s19 + $0x3e] sm:$0x1] %vm710_vm11, %v3653_v42  ;;  %v3702_v43 = vcombine.high %v3698_v2, %v3698_v2 }
 0x28f   : > { %v4108_v5 = vpop.f32.mrb[14].mxu1  ;;  %3730 = vst.msk [vmem:[%s6696_s19 + $0x5e] sm:$0x1] %vm710_vm11, %v3701_v58  ;;  %3732 = vst.msk [vmem:[%s6696_s19 + $0x6e] sm:$0x1] %vm710_vm11, %v3698_v2 }
 0x290   : > { %3733 = vst.msk [vmem:[%s6696_s19 + $0x76] sm:$0x1] %vm710_vm11, %v3700_v47  ;;  %v4114_v25 = vcombine.high %v4106_v63, %v4106_v63  ;;  %v4121_v10 = vrot.slane %v4106_v63, %v6672_v32  ;;  %v4109_v11 = vadd.f32 %v4108_v5, %v6675_v12  ;;  %v4896_v45 = vpop.f32.mrb[15].mxu1  ;;  %3734 = vst.msk [vmem:[%s6696_s19 + $0x7e] sm:$0x1] %vm710_vm11, %v3702_v43 }
 0x292   : > { %v4128_v7 = vrot.slane %v4114_v25, %v6672_v32  ;;  %v4129_v3 = vcombine.high %v4121_v10, %v4121_v10  ;;  %v4137_v46 = vrot.slane %v4121_v10, %v6672_v32  ;;  %v4163_v23 = vcombine.high %v4109_v11, %v4109_v11 }
 0x293   : > { %v4170_v14 = vrot.slane %v4109_v11, %v6672_v32 }
 0x294   : > { %v4130_v26 = vcombine.high %v4128_v7, %v4128_v7  ;;  %v4144_v9 = vrot.slane %v4128_v7, %v6672_v32  ;;  %v4151_v54 = vrot.slane %v4129_v3, %v6672_v32  ;;  %v4159_v12 = vcombine.high %v4137_v46, %v4137_v46  ;;  %4228 = vst.msk [vmem:[%s6696_s19 + $0x7] sm:$0x1] %vm710_vm11, %v4137_v46 }
 0x295   : > { %v4177_v55 = vrot.slane %v4163_v23, %v6672_v32  ;;  %v4178_v28 = vcombine.high %v4170_v14, %v4170_v14  ;;  %v4186_v19 = vrot.slane %v4170_v14, %v6672_v32 }
 0x296   : > { %v4158_v0 = vrot.slane %v4130_v26, %v6672_v32  ;;  %v4160_v41 = vcombine.high %v4144_v9, %v4144_v9  ;;  %v4161_v49 = vcombine.high %v4151_v54, %v4151_v54  ;;  %4229 = vst.msk [vmem:[%s6696_s19 + $0xf] sm:$0x1] %vm710_vm11, %v4151_v54  ;;  %4230 = vst.msk [vmem:[%s6696_s19 + $0x17] sm:$0x1] %vm710_vm11, %v4159_v12 }
 0x297   : > { %4232 = vst.msk [vmem:[%s6696_s19 + $0x27] sm:$0x1] %vm710_vm11, %v4144_v9  ;;  %v4179_v8 = vcombine.high %v4177_v55, %v4177_v55  ;;  %v4193_v60 = vrot.slane %v4177_v55, %v6672_v32  ;;  %v4200_v40 = vrot.slane %v4178_v28, %v6672_v32  ;;  %v4208_v38 = vcombine.high %v4186_v19, %v4186_v19 }
 0x298   : > { %4236 = vst.msk [vmem:[%s6696_s19 + $0x47] sm:$0x1] %vm710_vm11, %v4186_v19  ;;  %v4162_v50 = vcombine.high %v4158_v0, %v4158_v0  ;;  %4231 = vst.msk [vmem:[%s6696_s19 + $0x1f] sm:$0x1] %vm710_vm11, %v4161_v49 }
 0x299   : > { %4233 = vst.msk [vmem:[%s6696_s19 + $0x2f] sm:$0x1] %vm710_vm11, %v4158_v0  ;;  %4234 = vst.msk [vmem:[%s6696_s19 + $0x37] sm:$0x1] %vm710_vm11, %v4160_v41  ;;  %v4207_v44 = vrot.slane %v4179_v8, %v6672_v32  ;;  %v4209_v59 = vcombine.high %v4193_v60, %v4193_v60  ;;  %v4210_v16 = vcombine.high %v4200_v40, %v4200_v40 }
 0x29a   : > { %4237 = vst.msk [vmem:[%s6696_s19 + $0x4f] sm:$0x1] %vm710_vm11, %v4200_v40  ;;  %4238 = vst.msk [vmem:[%s6696_s19 + $0x57] sm:$0x1] %vm710_vm11, %v4208_v38 }
 0x29b   : > { %4240 = vst.msk [vmem:[%s6696_s19 + $0x67] sm:$0x1] %vm710_vm11, %v4193_v60  ;;  %4235 = vst.msk [vmem:[%s6696_s19 + $0x3f] sm:$0x1] %vm710_vm11, %v4162_v50  ;;  %v4211_v32 = vcombine.high %v4207_v44, %v4207_v44 }
 0x29c   : > { %4239 = vst.msk [vmem:[%s6696_s19 + $0x5f] sm:$0x1] %vm710_vm11, %v4210_v16  ;;  %4241 = vst.msk [vmem:[%s6696_s19 + $0x6f] sm:$0x1] %vm710_vm11, %v4207_v44 }
 0x29d   : > { %4242 = vst.msk [vmem:[%s6696_s19 + $0x77] sm:$0x1] %vm710_vm11, %v4209_v59  ;;  %4243 = vst.msk [vmem:[%s6696_s19 + $0x7f] sm:$0x1] %vm710_vm11, %v4211_v32 }
 0x29e   : > { %5296 = shalt.err (!%p5293_p5)
}
 0x29f   : > { %s5297_s6 = scalar_lea.hbm %s7061_s27, 2048  ;;  %s5301_s9 = scalar_lea.hbm %s7124_s3, 4096 }
 0x2a0   : > { %p5298_p6 = scmp.ne.s32.totalorder %s7061_s27, %s5297_s6  ;;  %p5302_p10 = scmp.lt.u32.totalorder %s7061_s27, %s7124_s3 }
 0x2a1   : > { %p5303_p11 = scmp.lt.u32.totalorder %s5301_s9, %s5297_s6  ;;  %p5305_p13 = scmp.lt.u32.totalorder %s5297_s6, %s7061_s27 }
 0x2a2   : > { %p5299_p7 = pnand %p5298_p6, %p5431_p4 }
 0x2a3   : > { %p5304_p12 = por %p5303_p11, %p5302_p10 }
 0x2a4   : > { %p5300_p9 = pneg %p5299_p7 }
 0x2a5   : > { %p5306_p0 = por %p5305_p13, %p5304_p12 }
 0x2a7   : > { %p5307_p1 = pnand %p5306_p0, %p5300_p9 }
 0x2a9   : > { %5310 = shalt.err (!%p5307_p1)
}
 0x2aa   : > { %s5369_s18 = smov 128   ;;  %s5370_s19 = smov 8  }
 0x2ab   : > { %4898 = dma.vmem_to_hbm [thread:$0]  (%p5431_p4), %s7063_s23, 2048, %s7061_s27, %s7075_s28, %s5369_s18, %s5369_s18, %s5370_s19  }
 0x2ac PF: > { %p4904_p2 = scmp.ge.s32.totalorder %s5361_s17, 2  ;;  %s4274_s21 = sand.u32 1, %s5341_s12  }
 0x2ad   : > { %s4275_s15 = scalar_lea.sflag [#allocation4], %s4274_s21 }
 0x2ae   : > { %p4901_p3 = pnand %p4904_p2, %p5438_p8 }
 0x2b0   : > { %5336 = dma.done.wait (!%p4901_p3), %s4275_s15, 2048  }
 0x2b1   : > { %5338 = vsyncadd (!%p4901_p3), %s4275_s15, 4294965248  ;;  %s16_s17 = sadd.s32 1, %s5361_s17   ;;  %s7159_s12 = smov %s5345_s13 }
 0x2b2   : > { %p13_p5 = scmp.ge.s32.totalorder %s16_s17, 4   ;;  %s7160_s13 = smov %s5349_s14 }
 0x2b3   : > { %s7161_s14 = smov %s5444_s25  ;;  %s7162_s15 = smov %s5357_s16 }
 0x2b4   : > { %s7163_s16 = smov %s7165_s20  ;;  %15 = sbr.rel (!%p13_p5) target bundleno = 4 (0x4), region = 67 }
 0x2bb   :  { %4280 = vsyncpa [#allocation4], 1 }
 0x2bc   :  { %4282 = vsyncpa [#allocation4 + $0x1], 1 }

</bundles_post_ra>
